<compile_context>
chip_gen: v7x
topology: tpu7x:2x2x1
jax: 0.10.0
libtpu: 0.0.40
codegen_flags: <defaults>
</compile_context>

<pallas_src>
import functools
import math

import jax
import jax.numpy as jnp
from jax.experimental import pallas as pl
from jax.experimental.pallas import tpu as pltpu


def _round_up(x, m):
    return ((x + m - 1) // m) * m


# -----------------------------------------------------------------------------
# Kernel: one grid step = (Clenshaw layer l, node-row tile r)
# -----------------------------------------------------------------------------
def _clenshaw_kernel(alphas_ref, thetas_ref,                 # SMEM (K+1,) f32
                     feat_ref, a_ref, w0_ref, b0_ref,        # VMEM blocks
                     wc_ref, bc_ref, w1_ref, b1_ref,
                     out_ref,                                # VMEM out block
                     h0_ref, last_ref, second_ref, new_ref, rst_ref,  # VMEM scratch
                     *, tm, n_classes):
    l = pl.program_id(0)                  # Clenshaw layer index i = 0..K
    r = pl.program_id(1)                  # node-row tile
    n_layers = pl.num_programs(0)         # K + 1
    row = pl.multiple_of(r * tm, tm)
    rows = pl.ds(row, tm)

    alpha = alphas_ref[l]
    theta = thetas_ref[l]

    # ---- rotate state once per layer (first row tile of layers >= 1) ----------
    #   second_last <- last ; last <- x_{l-1}
    @pl.when(jnp.logical_and(l > 0, r == 0))
    def _():
        second_ref[...] = last_ref[...]
        last_ref[...] = new_ref[...]

    # ---- layer 0 (peeled): input projection, rst_0 = alpha_0 * h0 -------------
    # last_h == second_last_h == 0, so the A @ last_h matmul is skipped entirely.
    @pl.when(l == 0)
    def _():
        h = jnp.dot(feat_ref[...], w0_ref[...],
                    preferred_element_type=jnp.float32) + b0_ref[...]
        h0_t = jnp.maximum(h, 0.0)                 # relu; dropout == identity
        h0_ref[rows, :] = h0_t
        rst_ref[...] = alpha * h0_t
        # ensure the rotation into layer 1 yields second_last == 0
        last_ref[rows, :] = jnp.zeros_like(h0_t)

    # ---- layers >= 1: bf16 graph propagation + Clenshaw recurrence ------------
    @pl.when(l > 0)
    def _():
        prop = jnp.dot(a_ref[...], last_ref[...].astype(jnp.bfloat16),
                       preferred_element_type=jnp.float32)   # (tm, H_pad) f32
        rst_ref[...] = (alpha * h0_ref[rows, :] + 2.0 * prop
                        - second_ref[rows, :])

    # ---- shared tail: ChebConv linear mix + conditional relu ------------------
    rst = rst_ref[...]
    rstw = jnp.dot(rst, wc_ref[0], preferred_element_type=jnp.float32) + bc_ref[0]
    x = theta * rstw + (1.0 - theta) * rst
    x = jnp.where(l < n_layers - 2, jnp.maximum(x, 0.0), x)  # relu for i < K-1
    new_ref[rows, :] = x

    # ---- last layer: output head + masked log_softmax -------------------------
    @pl.when(l == n_layers - 1)
    def _():
        xo = jnp.maximum(x, 0.0)                   # relu; dropout == identity
        logits = jnp.dot(xo, w1_ref[...],
                         preferred_element_type=jnp.float32) + b1_ref[...]
        col = jax.lax.broadcasted_iota(jnp.int32, logits.shape, 1)
        valid = col < n_classes                    # mask lane-padded classes
        logits = jnp.where(valid, logits, -1e30)
        m = jnp.max(logits, axis=1, keepdims=True)
        e = jnp.where(valid, jnp.exp(logits - m), 0.0)
        lse = m + jnp.log(jnp.sum(e, axis=1, keepdims=True))
        out_ref[...] = logits - lse


# -----------------------------------------------------------------------------
# Wrapper: padding, BlockSpecs, grid, compiler params
# -----------------------------------------------------------------------------
def clenshaw_forward(alphas_rev, thetas_l, features, A, w0, b0, wc, bc, w1, b1,
                     *, tile_rows=256):
    """Fused Clenshaw-GCN forward. A is the dense GCN-normalized adjacency (N, N)."""
    N, Fin = features.shape
    H = w0.shape[1]
    C = w1.shape[1]
    K = wc.shape[0] - 1

    TM = tile_rows
    N_pad = _round_up(max(N, TM), TM)
    Fin_pad = _round_up(Fin, 128)
    H_pad = _round_up(H, 128)
    C_pad = _round_up(C, 128)
    R = N_pad // TM
    f32 = jnp.float32

    # --- lane-dense / tile-aligned padding (zeros keep the real-column math exact) ---
    feat_p = jnp.zeros((N_pad, Fin_pad), f32).at[:N, :Fin].set(features.astype(f32))
    a_p = jnp.zeros((N_pad, N_pad), jnp.bfloat16).at[:N, :N].set(A.astype(jnp.bfloat16))
    w0_p = jnp.zeros((Fin_pad, H_pad), f32).at[:Fin, :H].set(w0)
    b0_p = jnp.zeros((1, H_pad), f32).at[:, :H].set(jnp.reshape(b0, (1, H)))
    wc_p = jnp.zeros((K + 1, H_pad, H_pad), f32).at[:, :H, :H].set(wc)
    bc_p = jnp.zeros((K + 1, 1, H_pad), f32).at[:, :, :H].set(jnp.reshape(bc, (K + 1, 1, H)))
    w1_p = jnp.zeros((H_pad, C_pad), f32).at[:H, :C].set(w1)
    b1_p = jnp.zeros((1, C_pad), f32).at[:, :C].set(jnp.reshape(b1, (1, C)))

    smem = pl.BlockSpec(memory_space=pltpu.MemorySpace.SMEM)
    in_specs = [
        smem,                                                        # alphas (K+1,)
        smem,                                                        # thetas (K+1,)
        # features: only consumed at layer 0 (input projection); pin block 0 afterwards
        pl.BlockSpec((TM, Fin_pad), lambda l, r: (r * (1 - jnp.minimum(l, 1)), 0)),
        # A row slab: unused at the peeled layer 0 -> pin block 0 (no extra HBM traffic)
        pl.BlockSpec((TM, N_pad), lambda l, r: (r * jnp.minimum(l, 1), 0)),
        pl.BlockSpec((Fin_pad, H_pad), lambda l, r: (0, 0)),         # w0
        pl.BlockSpec((1, H_pad), lambda l, r: (0, 0)),               # b0
        pl.BlockSpec((1, H_pad, H_pad), lambda l, r: (l, 0, 0)),     # wc[l]
        pl.BlockSpec((1, 1, H_pad), lambda l, r: (l, 0, 0)),         # bc[l]
        pl.BlockSpec((H_pad, C_pad), lambda l, r: (0, 0)),           # w1
        pl.BlockSpec((1, C_pad), lambda l, r: (0, 0)),               # b1
    ]
    out_spec = pl.BlockSpec((TM, C_pad), lambda l, r: (r, 0))

    scratch_shapes = [
        pltpu.VMEM((N_pad, H_pad), f32),     # h0
        pltpu.VMEM((N_pad, H_pad), f32),     # last_h
        pltpu.VMEM((N_pad, H_pad), f32),     # second_last_h
        pltpu.VMEM((N_pad, H_pad), f32),     # x_l being produced this layer
        pltpu.VMEM((TM, H_pad), f32),        # rst for the current row tile
    ]

    # resident-set estimate -> explicit scoped-VMEM limit (default is only 16/32 MiB)
    est = (2 * TM * Fin_pad * 4 + 2 * TM * N_pad * 2                 # feat + A (dbl buf)
           + Fin_pad * H_pad * 4 + H_pad * 4                         # w0, b0
           + 2 * (H_pad * H_pad * 4 + H_pad * 4)                     # wc[l], bc[l] (dbl buf)
           + H_pad * C_pad * 4 + C_pad * 4                           # w1, b1
           + 2 * TM * C_pad * 4                                      # out block
           + 4 * N_pad * H_pad * 4 + TM * H_pad * 4                  # scratch
           + N_pad * H_pad * 2)                                      # bf16 copy of last_h
    vmem_limit = int(min(60 * 2**20, max(32 * 2**20, 2 * est)))

    flops = (2 * K * N_pad * N_pad * H_pad                           # propagation (i=0 peeled)
             + 2 * (K + 1) * N_pad * H_pad * H_pad                   # ChebConv weights
             + 2 * N_pad * (Fin_pad * H_pad + H_pad * C_pad))        # in/out projections
    bytes_accessed = (K * N_pad * N_pad * 2 + N_pad * Fin_pad * 4
                      + (K + 1) * H_pad * H_pad * 4 + N_pad * C_pad * 4)

    out_p = pl.pallas_call(
        functools.partial(_clenshaw_kernel, tm=TM, n_classes=C),
        out_shape=jax.ShapeDtypeStruct((N_pad, C_pad), f32),
        grid=(K + 1, R),
        in_specs=in_specs,
        out_specs=out_spec,
        scratch_shapes=scratch_shapes,
        compiler_params=pltpu.CompilerParams(
            # layer axis is a sequential recurrence; row tiles update shared VMEM state,
            # so both axes must stay on one TensorCore.
            # TODO(synk): v7x dual-TensorCore split of the row-tile axis (replicated state)
            #             is not implemented here.
            dimension_semantics=("arbitrary", "arbitrary"),
            vmem_limit_bytes=vmem_limit,
        ),
        cost_estimate=pl.CostEstimate(
            flops=flops, transcendentals=N_pad * C_pad, bytes_accessed=bytes_accessed),
    )(alphas_rev.astype(f32), thetas_l.astype(f32), feat_p, a_p,
      w0_p, b0_p, wc_p, bc_p, w1_p, b1_p)

    return out_p[:N, :C]


# -----------------------------------------------------------------------------
# Pure-JAX reference (mirrors the module semantics in eval mode, with the same
# bf16 propagation numerics as the kernel).
# -----------------------------------------------------------------------------
def reference_forward(alphas_rev, thetas_l, features, A_bf16, w0, b0, wc, bc, w1, b1):
    K = wc.shape[0] - 1
    h0 = jnp.maximum(features @ w0 + b0, 0.0)
    last = jnp.zeros_like(h0)
    second = jnp.zeros_like(h0)
    for i in range(K + 1):
        if i == 0:
            rst = alphas_rev[0] * h0
        else:
            prop = jnp.dot(A_bf16, last.astype(jnp.bfloat16),
                           preferred_element_type=jnp.float32)
            rst = alphas_rev[i] * h0 + 2.0 * prop - second
        rstw = rst @ wc[i] + bc[i]
        x = thetas_l[i] * rstw + (1.0 - thetas_l[i]) * rst
        if i < K - 1:
            x = jnp.maximum(x, 0.0)
        second, last = last, x
    xo = jnp.maximum(last, 0.0)
    logits = xo @ w1 + b1
    return logits - jax.scipy.special.logsumexp(logits, axis=1, keepdims=True)


if __name__ == "__main__":
    # --- small deterministic problem ---
    N, Fin, H, C, K = 16, 8, 32, 4, 4
    lamda = 1.0
    key = jax.random.PRNGKey(0)
    k_feat, k_w0, k_b0, k_wc, k_bc, k_w1, k_b1, k_alpha = jax.random.split(key, 8)

    features = jax.random.normal(k_feat, (N, Fin), dtype=jnp.float32)

    # graph: undirected ring + self loops, GCN-style symmetric normalization
    src = jnp.arange(N, dtype=jnp.int32)
    dst = (src + 1) % N
    edge_src = jnp.concatenate([src, dst, src])
    edge_dst = jnp.concatenate([dst, src, src])
    deg = jnp.zeros((N,), jnp.float32).at[edge_dst].add(1.0)
    norm_A = 1.0 / jnp.sqrt(deg[edge_src] * deg[edge_dst])
    # dense adjacency: A[dst, src] = norm  (propagate(x)[dst] = sum_e norm_e * x[src_e])
    A = jnp.zeros((N, N), jnp.float32).at[edge_dst, edge_src].add(norm_A)

    # --- deterministic parameter init (shapes from the module's __init__) ---
    bnd0 = 1.0 / math.sqrt(Fin)
    w0 = jax.random.uniform(k_w0, (Fin, H), jnp.float32, -bnd0, bnd0)
    b0 = jax.random.uniform(k_b0, (1, H), jnp.float32, -bnd0, bnd0)
    bndc = 1.0 / math.sqrt(H)
    wc = jax.random.uniform(k_wc, (K + 1, H, H), jnp.float32, -bndc, bndc)
    # ChebConv bias init is zeros; use a small random (valid trained) state so the
    # bias path is actually exercised by the check.
    bc = 0.1 * jax.random.normal(k_bc, (K + 1, 1, H), jnp.float32)
    w1 = jax.random.uniform(k_w1, (H, C), jnp.float32, -bndc, bndc)
    b1 = jax.random.uniform(k_b1, (1, C), jnp.float32, -bndc, bndc)

    # alpha_params: init zeros with t[0]=1, plus a small perturbation (valid trained
    # state) so every Clenshaw layer carries non-trivial data; used REVERSED per layer.
    alpha_params = jnp.zeros((K + 1,), jnp.float32).at[0].set(1.0)
    alpha_params = alpha_params + 0.2 * jax.random.normal(k_alpha, (K + 1,), jnp.float32)
    alphas_rev = alpha_params[::-1]

    # thetas = min(log(lamda/(arange(K)+1)+1), 1); layer i uses thetas[i-1] (i=0 -> thetas[-1])
    thetas_base = jnp.minimum(
        jnp.log(lamda / (jnp.arange(K, dtype=jnp.float32) + 1.0) + 1.0), 1.0)
    thetas_l = jnp.concatenate([thetas_base[K - 1:K], thetas_base[:K]])

    # --- run kernel and check against reference ---
    # TODO(synk): dropout / dropout2 are stochastic in training mode; eval-mode identity here.
    out = clenshaw_forward(alphas_rev, thetas_l, features, A, w0, b0, wc, bc, w1, b1)
    out = jax.block_until_ready(out)

    ref = reference_forward(alphas_rev, thetas_l, features, A.astype(jnp.bfloat16),
                            w0, b0, wc, bc, w1, b1)
    ref = jax.block_until_ready(ref)

    # tolerance accounts for bf16 rounding of last_h differing at knife-edge values
    if not jnp.allclose(out, ref, atol=2e-2, rtol=2e-2):
        raise AssertionError("Pallas kernel output does not match reference")

    print("KERNEL_OK")
</pallas_src>

<mosaic_0001>
module attributes {stable_mosaic.version = 11 : i64} {
  func.func @_clenshaw_kernel(%arg0: i32, %arg1: i32, %arg2: memref<5xf32, #tpu.memory_space<smem>>, %arg3: memref<5xf32, #tpu.memory_space<smem>>, %arg4: memref<256x128xf32, #tpu.memory_space<vmem>>, %arg5: memref<256x256xbf16, #tpu.memory_space<vmem>>, %arg6: memref<128x128xf32, #tpu.memory_space<vmem>>, %arg7: memref<1x128xf32, #tpu.memory_space<vmem>>, %arg8: memref<1x128x128xf32, #tpu.memory_space<vmem>>, %arg9: memref<1x1x128xf32, #tpu.memory_space<vmem>>, %arg10: memref<128x128xf32, #tpu.memory_space<vmem>>, %arg11: memref<1x128xf32, #tpu.memory_space<vmem>>, %arg12: memref<256x128xf32, #tpu.memory_space<vmem>>, %arg13: memref<256x128xf32, #tpu.memory_space<vmem>>, %arg14: memref<256x128xf32, #tpu.memory_space<vmem>>, %arg15: memref<256x128xf32, #tpu.memory_space<vmem>>, %arg16: memref<256x128xf32, #tpu.memory_space<vmem>>, %arg17: memref<256x128xf32, #tpu.memory_space<vmem>>) attributes {dimension_semantics = [#tpu.dimension_semantics<arbitrary>, #tpu.dimension_semantics<arbitrary>], iteration_bounds = array<i64: 5, 1>, scalar_prefetch = 0 : i64, scratch_operands = 5 : i64, tpu.core_type = #tpu.core_type<tc>, window_params = [{transform_indices = @transform_0, window_bounds = array<i64: 5>}, {transform_indices = @transform_1, window_bounds = array<i64: 5>}, {transform_indices = @transform_2, window_bounds = array<i64: 256, 128>}, {transform_indices = @transform_3, window_bounds = array<i64: 256, 256>}, {pipeline_mode = #tpu.pipeline_mode<synchronous>, transform_indices = @transform_4, window_bounds = array<i64: 128, 128>}, {pipeline_mode = #tpu.pipeline_mode<synchronous>, transform_indices = @transform_5, window_bounds = array<i64: 1, 128>}, {transform_indices = @transform_6, window_bounds = array<i64: 1, 128, 128>}, {transform_indices = @transform_7, window_bounds = array<i64: 1, 1, 128>}, {pipeline_mode = #tpu.pipeline_mode<synchronous>, transform_indices = @transform_8, window_bounds = array<i64: 128, 128>}, {pipeline_mode = #tpu.pipeline_mode<synchronous>, transform_indices = @transform_9, window_bounds = array<i64: 1, 128>}, {transform_indices = @transform_10, window_bounds = array<i64: 256, 128>}]} {
    %c256_i32 = arith.constant 256 : i32
    %0 = arith.muli %arg1, %c256_i32 : i32
    %1 = tpu.assume_multiple %0, 256 : i32
    %2 = arith.index_cast %arg0 : i32 to index
    %3 = memref.load %arg2[%2] : memref<5xf32, #tpu.memory_space<smem>>
    %4 = arith.index_cast %arg0 : i32 to index
    %5 = memref.load %arg3[%4] : memref<5xf32, #tpu.memory_space<smem>>
    %c0_i32 = arith.constant 0 : i32
    %6 = arith.cmpi sgt, %arg0, %c0_i32 : i32
    %c0_i32_0 = arith.constant 0 : i32
    %7 = arith.cmpi eq, %arg1, %c0_i32_0 : i32
    %8 = arith.andi %6, %7 : i1
    %9 = arith.extui %8 : i1 to i32
    %c0_i32_1 = arith.constant 0 : i32
    %10 = arith.cmpi ne, %9, %c0_i32_1 : i32
    scf.if %10 {
      %c0_17 = arith.constant 0 : index
      %c0_18 = arith.constant 0 : index
      %40 = vector.load %arg14[%c0_17, %c0_18] : memref<256x128xf32, #tpu.memory_space<vmem>>, vector<256x128xf32>
      %c0_19 = arith.constant 0 : index
      %c0_20 = arith.constant 0 : index
      %41 = vector.load %arg15[%c0_19, %c0_20] : memref<256x128xf32, #tpu.memory_space<vmem>>, vector<256x128xf32>
      tpu.vector_store %arg15[%c0_19, %c0_20], %40 {strides = array<i32>} : memref<256x128xf32, #tpu.memory_space<vmem>>, vector<256x128xf32>,
      %c0_21 = arith.constant 0 : index
      %c0_22 = arith.constant 0 : index
      %42 = vector.load %arg16[%c0_21, %c0_22] : memref<256x128xf32, #tpu.memory_space<vmem>>, vector<256x128xf32>
      %c0_23 = arith.constant 0 : index
      %c0_24 = arith.constant 0 : index
      %43 = vector.load %arg14[%c0_23, %c0_24] : memref<256x128xf32, #tpu.memory_space<vmem>>, vector<256x128xf32>
      tpu.vector_store %arg14[%c0_23, %c0_24], %42 {strides = array<i32>} : memref<256x128xf32, #tpu.memory_space<vmem>>, vector<256x128xf32>,
    } else {
    }
    %c0_i32_2 = arith.constant 0 : i32
    %11 = arith.cmpi eq, %arg0, %c0_i32_2 : i32
    %12 = arith.extui %11 : i1 to i32
    %c0_i32_3 = arith.constant 0 : i32
    %13 = arith.cmpi ne, %12, %c0_i32_3 : i32
    scf.if %13 {
      %c0_17 = arith.constant 0 : index
      %c0_18 = arith.constant 0 : index
      %40 = vector.load %arg4[%c0_17, %c0_18] : memref<256x128xf32, #tpu.memory_space<vmem>>, vector<256x128xf32>
      %c0_19 = arith.constant 0 : index
      %c0_20 = arith.constant 0 : index
      %41 = vector.load %arg6[%c0_19, %c0_20] : memref<128x128xf32, #tpu.memory_space<vmem>>, vector<128x128xf32>
      %cst_21 = arith.constant dense<0.000000e+00> : vector<256x128xf32>
      %42 = tpu.matmul %40, %41, %cst_21 {dimension_numbers = #tpu.dot_dimension_numbers<[1], [0], [0], [1], [0, 0, 1, 1], [], []>} : vector<256x128xf32>, vector<128x128xf32>, vector<256x128xf32> -> vector<256x128xf32>
      %c0_22 = arith.constant 0 : index
      %c0_23 = arith.constant 0 : index
      %43 = vector.load %arg7[%c0_22, %c0_23] : memref<1x128xf32, #tpu.memory_space<vmem>>, vector<1x128xf32>
      %44 = vector.broadcast %43 : vector<1x128xf32> to vector<256x128xf32>
      %45 = arith.addf %42, %44 : vector<256x128xf32>
      %cst_24 = arith.constant 0.000000e+00 : f32
      %46 = vector.broadcast %cst_24 : f32 to vector<256x128xf32>
      %47 = arith.maximumf %45, %46 : vector<256x128xf32>
      %48 = arith.index_cast %1 : i32 to index
      %c0_25 = arith.constant 0 : index
      %49 = vector.load %arg13[%48, %c0_25] : memref<256x128xf32, #tpu.memory_space<vmem>>, vector<256x128xf32>
      tpu.vector_store %arg13[%48, %c0_25], %47 {strides = array<i32>} : memref<256x128xf32, #tpu.memory_space<vmem>>, vector<256x128xf32>,
      %50 = vector.broadcast %3 : f32 to vector<256x128xf32>
      %51 = arith.mulf %50, %47 : vector<256x128xf32>
      %c0_26 = arith.constant 0 : index
      %c0_27 = arith.constant 0 : index
      %52 = vector.load %arg17[%c0_26, %c0_27] : memref<256x128xf32, #tpu.memory_space<vmem>>, vector<256x128xf32>
      tpu.vector_store %arg17[%c0_26, %c0_27], %51 {strides = array<i32>} : memref<256x128xf32, #tpu.memory_space<vmem>>, vector<256x128xf32>,
      %cst_28 = arith.constant 0.000000e+00 : f32
      %53 = vector.broadcast %cst_28 : f32 to vector<256x128xf32>
      %54 = arith.index_cast %1 : i32 to index
      %c0_29 = arith.constant 0 : index
      %55 = vector.load %arg14[%54, %c0_29] : memref<256x128xf32, #tpu.memory_space<vmem>>, vector<256x128xf32>
      tpu.vector_store %arg14[%54, %c0_29], %53 {strides = array<i32>} : memref<256x128xf32, #tpu.memory_space<vmem>>, vector<256x128xf32>,
    } else {
    }
    %c0_i32_4 = arith.constant 0 : i32
    %14 = arith.cmpi sgt, %arg0, %c0_i32_4 : i32
    %15 = arith.extui %14 : i1 to i32
    %c0_i32_5 = arith.constant 0 : i32
    %16 = arith.cmpi ne, %15, %c0_i32_5 : i32
    scf.if %16 {
      %c0_17 = arith.constant 0 : index
      %c0_18 = arith.constant 0 : index
      %40 = vector.load %arg5[%c0_17, %c0_18] : memref<256x256xbf16, #tpu.memory_space<vmem>>, vector<256x256xbf16>
      %c0_19 = arith.constant 0 : index
      %c0_20 = arith.constant 0 : index
      %41 = vector.load %arg14[%c0_19, %c0_20] : memref<256x128xf32, #tpu.memory_space<vmem>>, vector<256x128xf32>
      %42 = arith.truncf %41 : vector<256x128xf32> to vector<256x128xbf16>
      %cst_21 = arith.constant dense<0.000000e+00> : vector<256x128xf32>
      %43 = tpu.matmul %40, %42, %cst_21 {dimension_numbers = #tpu.dot_dimension_numbers<[1], [0], [0], [1], [0, 0, 1, 1], [], []>} : vector<256x256xbf16>, vector<256x128xbf16>, vector<256x128xf32> -> vector<256x128xf32>
      %44 = arith.index_cast %1 : i32 to index
      %c0_22 = arith.constant 0 : index
      %45 = vector.load %arg13[%44, %c0_22] : memref<256x128xf32, #tpu.memory_space<vmem>>, vector<256x128xf32>
      %46 = vector.broadcast %3 : f32 to vector<256x128xf32>
      %47 = arith.mulf %46, %45 : vector<256x128xf32>
      %cst_23 = arith.constant 2.000000e+00 : f32
      %48 = vector.broadcast %cst_23 : f32 to vector<256x128xf32>
      %49 = arith.mulf %48, %43 : vector<256x128xf32>
      %50 = arith.addf %47, %49 : vector<256x128xf32>
      %51 = arith.index_cast %1 : i32 to index
      %c0_24 = arith.constant 0 : index
      %52 = vector.load %arg15[%51, %c0_24] : memref<256x128xf32, #tpu.memory_space<vmem>>, vector<256x128xf32>
      %53 = arith.subf %50, %52 : vector<256x128xf32>
      %c0_25 = arith.constant 0 : index
      %c0_26 = arith.constant 0 : index
      %54 = vector.load %arg17[%c0_25, %c0_26] : memref<256x128xf32, #tpu.memory_space<vmem>>, vector<256x128xf32>
      tpu.vector_store %arg17[%c0_25, %c0_26], %53 {strides = array<i32>} : memref<256x128xf32, #tpu.memory_space<vmem>>, vector<256x128xf32>,
    } else {
    }
    %c0 = arith.constant 0 : index
    %c0_6 = arith.constant 0 : index
    %17 = vector.load %arg17[%c0, %c0_6] : memref<256x128xf32, #tpu.memory_space<vmem>>, vector<256x128xf32>
    %c0_7 = arith.constant 0 : index
    %c0_8 = arith.constant 0 : index
    %c0_9 = arith.constant 0 : index
    %18 = vector.load %arg8[%c0_7, %c0_8, %c0_9] : memref<1x128x128xf32, #tpu.memory_space<vmem>>, vector<1x128x128xf32>
    %19 = vector.shape_cast %18 : vector<1x128x128xf32> to vector<128x128xf32>
    %cst = arith.constant dense<0.000000e+00> : vector<256x128xf32>
    %20 = tpu.matmul %17, %19, %cst {dimension_numbers = #tpu.dot_dimension_numbers<[1], [0], [0], [1], [0, 0, 1, 1], [], []>} : vector<256x128xf32>, vector<128x128xf32>, vector<256x128xf32> -> vector<256x128xf32>
    %c0_10 = arith.constant 0 : index
    %c0_11 = arith.constant 0 : index
    %c0_12 = arith.constant 0 : index
    %21 = vector.load %arg9[%c0_10, %c0_11, %c0_12] : memref<1x1x128xf32, #tpu.memory_space<vmem>>, vector<1x1x128xf32>
    %22 = vector.shape_cast %21 : vector<1x1x128xf32> to vector<1x128xf32>
    %23 = vector.broadcast %22 : vector<1x128xf32> to vector<256x128xf32>
    %24 = arith.addf %20, %23 : vector<256x128xf32>
    %25 = vector.broadcast %5 : f32 to vector<256x128xf32>
    %26 = arith.mulf %25, %24 : vector<256x128xf32>
    %cst_13 = arith.constant 1.000000e+00 : f32
    %27 = arith.subf %cst_13, %5 : f32
    %28 = vector.broadcast %27 : f32 to vector<256x128xf32>
    %29 = arith.mulf %28, %17 : vector<256x128xf32>
    %30 = arith.addf %26, %29 : vector<256x128xf32>
    %c3_i32 = arith.constant 3 : i32
    %31 = arith.cmpi slt, %arg0, %c3_i32 : i32
    %cst_14 = arith.constant 0.000000e+00 : f32
    %32 = vector.broadcast %cst_14 : f32 to vector<256x128xf32>
    %33 = arith.maximumf %30, %32 : vector<256x128xf32>
    %34 = arith.select %31, %33, %30 : vector<256x128xf32>
    %35 = arith.index_cast %1 : i32 to index
    %c0_15 = arith.constant 0 : index
    %36 = vector.load %arg16[%35, %c0_15] : memref<256x128xf32, #tpu.memory_space<vmem>>, vector<256x128xf32>
    tpu.vector_store %arg16[%35, %c0_15], %34 {strides = array<i32>} : memref<256x128xf32, #tpu.memory_space<vmem>>, vector<256x128xf32>,
    %c4_i32 = arith.constant 4 : i32
    %37 = arith.cmpi eq, %arg0, %c4_i32 : i32
    %38 = arith.extui %37 : i1 to i32
    %c0_i32_16 = arith.constant 0 : i32
    %39 = arith.cmpi ne, %38, %c0_i32_16 : i32
    scf.if %39 {
      %cst_17 = arith.constant 0.000000e+00 : f32
      %40 = vector.broadcast %cst_17 : f32 to vector<256x128xf32>
      %41 = arith.maximumf %34, %40 : vector<256x128xf32>
      %c0_18 = arith.constant 0 : index
      %c0_19 = arith.constant 0 : index
      %42 = vector.load %arg10[%c0_18, %c0_19] : memref<128x128xf32, #tpu.memory_space<vmem>>, vector<128x128xf32>
      %cst_20 = arith.constant dense<0.000000e+00> : vector<256x128xf32>
      %43 = tpu.matmul %41, %42, %cst_20 {dimension_numbers = #tpu.dot_dimension_numbers<[1], [0], [0], [1], [0, 0, 1, 1], [], []>} : vector<256x128xf32>, vector<128x128xf32>, vector<256x128xf32> -> vector<256x128xf32>
      %c0_21 = arith.constant 0 : index
      %c0_22 = arith.constant 0 : index
      %44 = vector.load %arg11[%c0_21, %c0_22] : memref<1x128xf32, #tpu.memory_space<vmem>>, vector<1x128xf32>
      %45 = vector.broadcast %44 : vector<1x128xf32> to vector<256x128xf32>
      %46 = arith.addf %43, %45 : vector<256x128xf32>
      %47 = tpu.iota {dimensions = array<i32: 1>} : vector<256x128xi32>
      %c4_i32_23 = arith.constant 4 : i32
      %48 = vector.broadcast %c4_i32_23 : i32 to vector<256x128xi32>
      %49 = arith.cmpi slt, %47, %48 : vector<256x128xi32>
      %cst_24 = arith.constant -1.000000e+30 : f32
      %50 = vector.broadcast %cst_24 : f32 to vector<256x128xf32>
      %51 = arith.select %49, %46, %50 : vector<256x128xi1>, vector<256x128xf32>
      %cst_25 = arith.constant dense<0xFF800000> : vector<256xf32>
      %52 = vector.multi_reduction <maximumf>, %51, %cst_25 [1] : vector<256x128xf32> to vector<256xf32>
      %53 = vector.shape_cast %52 : vector<256xf32> to vector<256x1xf32>
      %54 = vector.broadcast %53 : vector<256x1xf32> to vector<256x128xf32>
      %55 = arith.subf %51, %54 : vector<256x128xf32>
      %56 = math.exp %55 : vector<256x128xf32>
      %cst_26 = arith.constant 0.000000e+00 : f32
      %57 = vector.broadcast %cst_26 : f32 to vector<256x128xf32>
      %58 = arith.select %49, %56, %57 : vector<256x128xi1>, vector<256x128xf32>
      %cst_27 = arith.constant dense<0.000000e+00> : vector<256xf32>
      %59 = vector.multi_reduction <add>, %58, %cst_27 [1] : vector<256x128xf32> to vector<256xf32>
      %60 = vector.shape_cast %59 : vector<256xf32> to vector<256x1xf32>
      %61 = math.log %60 : vector<256x1xf32>
      %62 = arith.addf %53, %61 : vector<256x1xf32>
      %63 = vector.broadcast %62 : vector<256x1xf32> to vector<256x128xf32>
      %64 = arith.subf %51, %63 : vector<256x128xf32>
      %c0_28 = arith.constant 0 : index
      %c0_29 = arith.constant 0 : index
      %65 = vector.load %arg12[%c0_28, %c0_29] : memref<256x128xf32, #tpu.memory_space<vmem>>, vector<256x128xf32>
      tpu.vector_store %arg12[%c0_28, %c0_29], %64 {strides = array<i32>} : memref<256x128xf32, #tpu.memory_space<vmem>>, vector<256x128xf32>,
    } else {
    }
    return
  }
  func.func @transform_0(%arg0: i32, %arg1: i32) -> i32 {
    %c0_i32 = arith.constant 0 : i32
    %c0_i32_0 = arith.constant 0 : i32
    return %c0_i32 : i32
  }
  func.func @transform_1(%arg0: i32, %arg1: i32) -> i32 {
    %c0_i32 = arith.constant 0 : i32
    %c0_i32_0 = arith.constant 0 : i32
    return %c0_i32 : i32
  }
  func.func @transform_2(%arg0: i32, %arg1: i32) -> (i32, i32) {
    %c1_i32 = arith.constant 1 : i32
    %0 = arith.minsi %arg0, %c1_i32 : i32
    %c1_i32_0 = arith.constant 1 : i32
    %1 = arith.subi %c1_i32_0, %0 : i32
    %2 = arith.muli %arg1, %1 : i32
    %c0_i32 = arith.constant 0 : i32
    %c0_i32_1 = arith.constant 0 : i32
    return %2, %c0_i32 : i32, i32
  }
  func.func @transform_3(%arg0: i32, %arg1: i32) -> (i32, i32) {
    %c1_i32 = arith.constant 1 : i32
    %0 = arith.minsi %arg0, %c1_i32 : i32
    %1 = arith.muli %arg1, %0 : i32
    %c0_i32 = arith.constant 0 : i32
    %c0_i32_0 = arith.constant 0 : i32
    return %1, %c0_i32 : i32, i32
  }
  func.func @transform_4(%arg0: i32, %arg1: i32) -> (i32, i32) {
    %c0_i32 = arith.constant 0 : i32
    %c0_i32_0 = arith.constant 0 : i32
    %c0_i32_1 = arith.constant 0 : i32
    return %c0_i32, %c0_i32_0 : i32, i32
  }
  func.func @transform_5(%arg0: i32, %arg1: i32) -> (i32, i32) {
    %c0_i32 = arith.constant 0 : i32
    %c0_i32_0 = arith.constant 0 : i32
    %c0_i32_1 = arith.constant 0 : i32
    return %c0_i32, %c0_i32_0 : i32, i32
  }
  func.func @transform_6(%arg0: i32, %arg1: i32) -> (i32, i32, i32) {
    %c0_i32 = arith.constant 0 : i32
    %c0_i32_0 = arith.constant 0 : i32
    %c0_i32_1 = arith.constant 0 : i32
    return %arg0, %c0_i32, %c0_i32_0 : i32, i32, i32
  }
  func.func @transform_7(%arg0: i32, %arg1: i32) -> (i32, i32, i32) {
    %c0_i32 = arith.constant 0 : i32
    %c0_i32_0 = arith.constant 0 : i32
    %c0_i32_1 = arith.constant 0 : i32
    return %arg0, %c0_i32, %c0_i32_0 : i32, i32, i32
  }
  func.func @transform_8(%arg0: i32, %arg1: i32) -> (i32, i32) {
    %c0_i32 = arith.constant 0 : i32
    %c0_i32_0 = arith.constant 0 : i32
    %c0_i32_1 = arith.constant 0 : i32
    return %c0_i32, %c0_i32_0 : i32, i32
  }
  func.func @transform_9(%arg0: i32, %arg1: i32) -> (i32, i32) {
    %c0_i32 = arith.constant 0 : i32
    %c0_i32_0 = arith.constant 0 : i32
    %c0_i32_1 = arith.constant 0 : i32
    return %c0_i32, %c0_i32_0 : i32, i32
  }
  func.func @transform_10(%arg0: i32, %arg1: i32) -> (i32, i32) {
    %c0_i32 = arith.constant 0 : i32
    %c0_i32_0 = arith.constant 0 : i32
    return %arg1, %c0_i32 : i32, i32
  }
}

</mosaic_0001>

<bundles_post_ra>
// kernel: tpu_custom_call.1
= control target key start
LH: loop header
LB: loop body
LE: loop exit
PB: predicated region body
PF: predicated region fallthrough
CT: control target
= control target key end

     0   :  { %s5862_s0 = inlined_call_operand.hbm [shape: f32[5], index: 0, kind: input, shape index: {}]   ;;  %s5863_s1 = inlined_call_operand.vmem [shape: f32[5], index: 1, kind: input, shape index: {}]   ;;  %s5864_s2 = inlined_call_operand.hbm [shape: f32[256,128], index: 2, kind: input, shape index: {}]   ;;  %s5865_s3 = inlined_call_operand.hbm [shape: bf16[256,256], index: 3, kind: input, shape index: {}]   ;;  %s5866_s4 = inlined_call_operand.hbm [shape: f32[128,128], index: 4, kind: input, shape index: {}]   ;;  %s5867_s5 = inlined_call_operand.vmem [shape: f32[1,128], index: 5, kind: input, shape index: {}]   ;;  %s5868_s6 = inlined_call_operand.hbm [shape: f32[5,128,128], index: 6, kind: input, shape index: {}]   ;;  %s5869_s7 = inlined_call_operand.vmem [shape: f32[5,1,128], index: 7, kind: input, shape index: {}]   ;;  %s5870_s8 = inlined_call_operand.hbm [shape: f32[128,128], index: 8, kind: input, shape index: {}]   ;;  %s5871_s9 = inlined_call_operand.vmem [shape: f32[1,128], index: 9, kind: input, shape index: {}]   ;;  %s5872_s10 = inlined_call_operand.hbm [shape: f32[256,128], index: 10, kind: output, shape index: {}]  }
   0x1   :  { %5893 = sst [smem:[#allocation44_spill]] %s5862_s0 }
   0x2   :  { %5894 = sst [smem:[#allocation45_spill]] %s5867_s5 }
   0x3   :  { %5895 = sst [smem:[#allocation46_spill]] %s5871_s9 }
   0x4   :  { %5896 = sst [smem:[#allocation47_spill]] %s5872_s10 }
   0x5   :  { %15 = vsyncpa [#allocation10], 0 }
   0x6   :  { %16 = vsyncpa [#allocation11], 0 }
   0x7   :  { %17 = vsyncpa [#allocation8], 0 }
   0x8   :  { %19 = vsyncpa [#allocation8 + $0x1], 0 }
   0x9   :  { %20 = vsyncpa [#allocation15], 0 }
   0xa   :  { %22 = vsyncpa [#allocation15 + $0x1], 0 }
   0xb   :  { %23 = vsyncpa [#allocation18], 0 }
   0xc   :  { %25 = vsyncpa [#allocation18 + $0x1], 0 }
   0xd   :  { %26 = vsyncpa [#allocation9], 0  ;;  %s4542_s13 = smov 0   ;;  %s4544_s14 = smov 0  }
   0xe   :  { %s4546_s15 = smov 0   ;;  %s4548_s16 = smov 0  }
   0xf   :  { %s4550_s17 = smov 0   ;;  %s4552_s18 = smov 0  }
  0x10 LB: > { %s4474_s19 = smov [#allocation16]   ;;  %s4573_s21 = sadd.s32 4294967295, %s4472_s18   ;;  %s4472_s18 = sphi %s4552_s18, %s32_s18   ;;  %s4468_s17 = sphi %s4550_s17, %s5959_s17   ;;  %s4464_s16 = sphi %s4548_s16, %s5958_s16   ;;  %s4460_s15 = sphi %s4546_s15, %s5957_s15   ;;  %s4456_s14 = sphi %s4544_s14, %s5956_s14   ;;  %s4452_s13 = sphi %s4542_s13, %s5955_s13  }
  0x11   : > { %s351_s20 = sshll.u32 %s4474_s19, 4  ;;  %p3174_p0 = scmp.ge.s32.totalorder %s4472_s18, 1  ;;  %s4578_s20 = int_to_ptr.vmem [resolvable:$true] %s351_s20 }
  0x12   : > { %p5874_p1 = scmp.eq.s32.totalorder %s4573_s21, 0  ;;  %p319_p2 = scmp.lt.s32.totalorder %s4472_s18, 6 }
  0x13   : > { %s4475_s24 = smov [#allocation19]   ;;  %s4198_s28 = scalar_lea.hbm %s5866_s4, 2048 }
  0x14   : > { %p4580_p3 = pnand %p3174_p0, %p319_p2  ;;  %s367_s25 = sshll.u32 %s4475_s24, 4  ;;  %s4592_s25 = int_to_ptr.vmem [resolvable:$true] %s367_s25 }
  0x15   : > { %p4199_p6 = scmp.ne.s32.totalorder %s5866_s4, %s4198_s28  ;;  %p4205_p10 = scmp.lt.u32.totalorder %s4198_s28, %s5866_s4 }
  0x16   : > { %s5897_s22 = scalar_select %p4580_p3, 1, 0 }
  0x17   : > { %p3924_p4 = pneg %p4580_p3 }
  0x19   : > { %p4588_p5 = pnand %p3924_p4, %p5874_p1 }
  0x1b   : > { %p4602_p7 = pneg %p4588_p5 }
  0x1d   : > { %p4201_p8 = pnand %p4602_p7, %p4199_p6 }
  0x1f   : > { %p4202_p9 = pneg %p4201_p8 }
  0x21   : > { %p4207_p11 = pnand %p4205_p10, %p4202_p9 }
  0x23   : > { %4210 = shalt.err (!%p4207_p11)
}
  0x24   : > { %s4211_s24 = scalar_lea.vmem %s4578_s20, 2048  ;;  %p4219_p2 = scmp.lt.s32.totalorder %s4578_s20, %s4578_s20 }
  0x25   : > { %p4212_p12 = scmp.ne.s32.totalorder %s4578_s20, %s4211_s24  ;;  %p4220_p4 = scmp.lt.s32.totalorder %s4211_s24, %s4211_s24 }
  0x27   : > { %p4214_p13 = pnand %p4212_p12, %p4602_p7  ;;  %p4221_p6 = por %p4220_p4, %p4219_p2 }
  0x29   : > { %p4215_p0 = pneg %p4214_p13 }
  0x2b   : > { %p4222_p8 = pnand %p4221_p6, %p4215_p0 }
  0x2d   : > { %4225 = shalt.err (!%p4222_p8)
}
  0x2e   : > { %s4476_s26 = smov 128   ;;  %s4477_s27 = smov 8  }
  0x2f   : > { %3933 = dma.hbm_to_vmem [thread:$0]  (!%p4588_p5), %s5866_s4, 2048, %s4578_s20, [#allocation15], %s4476_s26, %s4476_s26, %s4477_s27  }
  0x30   : > { %s4226_s19 = scalar_lea.hbm %s5870_s8, 2048 }
  0x31   : > { %p4227_p9 = scmp.ne.s32.totalorder %s5870_s8, %s4226_s19  ;;  %p4233_p12 = scmp.lt.u32.totalorder %s4226_s19, %s5870_s8 }
  0x33   : > { %p4229_p10 = pnand %p4227_p9, %p4602_p7 }
  0x35   : > { %p4230_p11 = pneg %p4229_p10 }
  0x37   : > { %p4235_p13 = pnand %p4233_p12, %p4230_p11 }
  0x39   : > { %4238 = shalt.err (!%p4235_p13)
}
  0x3a   : > { %s4239_s20 = scalar_lea.vmem %s4592_s25, 2048  ;;  %p4247_p6 = scmp.lt.s32.totalorder %s4592_s25, %s4592_s25 }
  0x3b   : > { %p4240_p0 = scmp.ne.s32.totalorder %s4592_s25, %s4239_s20  ;;  %p4248_p8 = scmp.lt.s32.totalorder %s4239_s20, %s4239_s20 }
  0x3d   : > { %p4242_p2 = pnand %p4240_p0, %p4602_p7  ;;  %p4249_p9 = por %p4248_p8, %p4247_p6 }
  0x3f   : > { %p4243_p4 = pneg %p4242_p2 }
  0x41   : > { %p4250_p10 = pnand %p4249_p9, %p4243_p4 }
  0x43   : > { %4253 = shalt.err (!%p4250_p10)
}
  0x44   : > { %3936 = dma.hbm_to_vmem [thread:$0]  (!%p4588_p5), %s5870_s8, 2048, %s4592_s25, [#allocation18], %s4476_s26, %s4476_s26, %s4477_s27  }
  0x45   : > { %s5900_s0 = sld [smem:[#allocation44_spill]] }
  0x4b   : > { %s4254_s29 = scalar_lea.hbm %s5900_s0, 16 }
  0x4c   : > { %p4255_p11 = scmp.ne.s32.totalorder %s5900_s0, %s4254_s29  ;;  %p4261_p0 = scmp.lt.u32.totalorder %s4254_s29, %s5900_s0 }
  0x4e   : > { %p4257_p12 = pnand %p4255_p11, %p4602_p7 }
  0x50   : > { %p4258_p13 = pneg %p4257_p12 }
  0x52   : > { %p4263_p2 = pnand %p4261_p0, %p4258_p13 }
  0x54   : > { %4266 = shalt.err (!%p4263_p2)
}
  0x55   : > { %s4478_s20 = smov [#allocation7]   ;;  %s341_s28 = sshll.u32 %s5863_s1, 4  ;;  %s342_s28 = int_to_ptr.vmem [resolvable:$true] %s341_s28 }
  0x56   : > { %3927 = dma.hbm_to_smem (!%p4588_p5), %s5900_s0, 16, %s4478_s20, [#allocation10]  }
  0x57   : > { %s4267_s30 = scalar_lea.vmem %s342_s28, 16  ;;  %p4275_p9 = scmp.lt.s32.totalorder %s342_s28, %s342_s28 }
  0x58   : > { %p4268_p4 = scmp.ne.s32.totalorder %s342_s28, %s4267_s30  ;;  %p4276_p10 = scmp.lt.s32.totalorder %s4267_s30, %s4267_s30 }
  0x5a   : > { %p4270_p6 = pnand %p4268_p4, %p4602_p7  ;;  %p4277_p11 = por %p4276_p10, %p4275_p9 }
  0x5c   : > { %p4271_p8 = pneg %p4270_p6 }
  0x5e   : > { %p4278_p12 = pnand %p4277_p11, %p4271_p8 }
  0x60   : > { %4281 = shalt.err (!%p4278_p12)
}
  0x61   : > { %s4479_s29 = smov [#allocation12]   ;;  %p208_p13 = scmp.ne.s32.totalorder %s4460_s15, %s4456_s14 }
  0x62   : > { %3930 = dma.vmem_to_smem (!%p4588_p5), %s342_s28, 16, %s4479_s29, [#allocation11]  }
  0x63   : > { %p209_p7 = scmp.eq.s32.totalorder %s4472_s18, 0  ;;  %p214_p0 = scmp.ne.s32.totalorder %s4456_s14, %s4452_s13 }
  0x64   : > { %p3951_p2 = scmp.lt.s32.totalorder %s4472_s18, 5  ;;  %s4480_s23 = smov [#allocation13]  }
  0x65   : > { %p210_p4 = por %p209_p7, %p208_p13  ;;  %p4683_p6 = por %p5874_p1, %p214_p0 }
  0x66   : > { %s399_s12 = sshll.u32 %s4480_s23, 4  ;;  %p4687_p8 = pnand %p3951_p2, %p209_p7  ;;  %s400_s12 = int_to_ptr.vmem [resolvable:$true] %s399_s12 }
  0x67   : > { %s5901_s11 = scalar_select %p4683_p6, 1, 0 }
  0x68   : > { %p4691_p5 = pnand %p3951_p2, %p210_p4  ;;  %s409_s13 = sand.u32 1, %s4472_s18  }
  0x69   : > { %s4282_s5 = scalar_lea.hbm %s5864_s2, 4096  ;;  %p4284_p10 = pneg %p4687_p8 }
  0x6a   : > { %s5903_s24 = scalar_select %p4691_p5, 1, 0 }
  0x6b   : > { %p4283_p9 = scmp.ne.s32.totalorder %s5864_s2, %s4282_s5  ;;  %p4289_p13 = scmp.lt.u32.totalorder %s4282_s5, %s5864_s2 }
  0x6d   : > { %p4285_p11 = pnand %p4284_p10, %p4283_p9 }
  0x6f   : > { %p4286_p12 = pneg %p4285_p11 }
  0x71   : > { %p4291_p7 = pnand %p4289_p13, %p4286_p12 }
  0x73   : > { %4294 = shalt.err (!%p4291_p7)
}
  0x74   : > { %s4295_s29 = scalar_lea.vmem %s400_s12, 4096  ;;  %s4302_s23 = scalar_lea.vmem %s400_s12, 8192 }
  0x75   : > { %p4296_p0 = scmp.ne.s32.totalorder %s400_s12, %s4295_s29  ;;  %p4303_p1 = scmp.lt.s32.totalorder %s400_s12, %s400_s12 }
  0x76   : > { %p4304_p6 = scmp.lt.s32.totalorder %s4302_s23, %s4295_s29 }
  0x77   : > { %p4298_p2 = pnand %p4296_p0, %p4284_p10 }
  0x78   : > { %p4305_p3 = por %p4304_p6, %p4303_p1 }
  0x79   : > { %p4299_p4 = pneg %p4298_p2 }
  0x7b   : > { %p4306_p5 = pnand %p4305_p3, %p4299_p4 }
  0x7d   : > { %4309 = shalt.err (!%p4306_p5)
}
  0x7e   : > { %3940 = dma.hbm_to_vmem [thread:$0]  (!%p4687_p8), %s5864_s2, 4096, %s400_s12, [#allocation8], %s4476_s26, %s4476_s26, %s4477_s27  }
  0x7f   : > { %s4481_s5 = smov [#allocation14]   ;;  %s410_s10 = scalar_lea.sflag [#allocation15], %s409_s13 }
  0x80   : > { %s424_s9 = sshll.u32 %s4481_s5, 4  ;;  %s4310_s29 = scalar_lea.hbm %s5865_s3, 4096  ;;  %s425_s9 = int_to_ptr.vmem [resolvable:$true] %s424_s9 }
  0x81   : > { %p4311_p1 = scmp.ne.s32.totalorder %s5865_s3, %s4310_s29  ;;  %p4317_p5 = scmp.lt.u32.totalorder %s4310_s29, %s5865_s3 }
  0x83   : > { %p4313_p3 = pnand %p4311_p1, %p4284_p10 }
  0x85   : > { %p4314_p6 = pneg %p4313_p3 }
  0x87   : > { %p4319_p9 = pnand %p4317_p5, %p4314_p6 }
  0x89   : > { %4322 = shalt.err (!%p4319_p9)
}
  0x8a   : > { %s4323_s12 = scalar_lea.vmem %s425_s9, 4096  ;;  %s4330_s5 = scalar_lea.vmem %s425_s9, 8192 }
  0x8b   : > { %p4324_p11 = scmp.ne.s32.totalorder %s425_s9, %s4323_s12  ;;  %p4331_p7 = scmp.lt.s32.totalorder %s425_s9, %s425_s9 }
  0x8c   : > { %p4332_p0 = scmp.lt.s32.totalorder %s4330_s5, %s4323_s12 }
  0x8d   : > { %p4326_p12 = pnand %p4324_p11, %p4284_p10 }
  0x8e   : > { %p4333_p2 = por %p4332_p0, %p4331_p7 }
  0x8f   : > { %p4327_p13 = pneg %p4326_p12 }
  0x91   : > { %p4334_p4 = pnand %p4333_p2, %p4327_p13 }
  0x93   : > { %4337 = shalt.err (!%p4334_p4)
}
  0x94   : > { %3943 = dma.hbm_to_vmem [thread:$0]  (!%p4687_p8), %s5865_s3, 4096, %s425_s9, %s410_s10, %s4476_s26, %s4476_s26, %s4477_s27  }
  0x95   : > { %s436_s30 = sand.u32 1, %s4460_s15   ;;  %s44_s29 = sadd.s32 1, %s4468_s17 }
  0x96   : > { %s3182_s23 = sshll.u32 %s436_s30, 7  ;;  %p46_p10 = scmp.ge.s32.totalorder %s44_s29, 5 }
  0x97   : > { %s3236_s19 = sshll.u32 %s4468_s17, 11  ;;  %s438_s20 = scalar_lea.vmem [#allocation17], %s3182_s23 }
  0x98   : > { %s445_s25 = sshll.u32 %s438_s20, 4  ;;  %s5961_s29 = smov (%p46_p10, %s44_s29), 0  ;;  %s4756_s25 = int_to_ptr.vmem [resolvable:$true] %s445_s25 }
  0x99   : > { %s4754_s0 = scalar_lea.hbm %s5868_s6, %s3236_s19  ;;  %s201_s9 = sadd.s32 1, %s4460_s15 }
  0x9a   : > { %s198_s10 = ssub.s32 %s4468_s17, %s5961_s29  ;;  %s4767_s30 = scalar_lea.sflag [#allocation18], %s409_s13 }
  0x9b   : > { %p4761_p8 = scmp.eq.s32.totalorder %s198_s10, 0  ;;  %s4338_s23 = scalar_lea.hbm %s4754_s0, 2048 }
  0x9c   : > { %p4339_p1 = scmp.ne.s32.totalorder %s4754_s0, %s4338_s23  ;;  %p5905_p3 = scmp.ne.s32.totalorder %s5903_s24, 0 }
  0x9d   : > { %s4343_s12 = scalar_lea.hbm %s5868_s6, 10240  ;;  %p4344_p11 = scmp.lt.u32.totalorder %s4754_s0, %s5868_s6 }
  0x9e   : > { %p4340_p6 = pneg %p5905_p3  ;;  %p4345_p12 = scmp.lt.u32.totalorder %s4343_s12, %s4338_s23 }
  0x9f   : > { %p4347_p7 = scmp.lt.u32.totalorder %s4338_s23, %s4754_s0 }
  0xa0   : > { %p4341_p5 = pnand %p4340_p6, %p4339_p1  ;;  %p4346_p13 = por %p4345_p12, %p4344_p11 }
  0xa2   : > { %p4342_p9 = pneg %p4341_p5  ;;  %p4348_p0 = por %p4347_p7, %p4346_p13 }
  0xa4   : > { %p4349_p2 = pnand %p4348_p0, %p4342_p9 }
  0xa6   : > { %4352 = shalt.err (!%p4349_p2)
}
  0xa7   : > { %s4353_s13 = scalar_lea.vmem %s4756_s25, 2048  ;;  %s4482_s19 = smov [#allocation17]  }
  0xa8   : > { %p4354_p4 = scmp.ne.s32.totalorder %s4756_s25, %s4353_s13  ;;  %s4358_s20 = sshll.u32 %s4482_s19, 4  ;;  %s4359_s20 = int_to_ptr.vmem [resolvable:$false] %s4358_s20 }
  0xa9   : > { %s4360_s5 = scalar_lea.vmem %s4359_s20, 4096  ;;  %p4361_p5 = scmp.lt.s32.totalorder %s4756_s25, %s4359_s20 }
  0xaa   : > { %p4356_p10 = pnand %p4354_p4, %p4340_p6  ;;  %p4362_p11 = scmp.lt.s32.totalorder %s4360_s5, %s4353_s13 }
  0xac   : > { %p4357_p1 = pneg %p4356_p10  ;;  %p4363_p12 = por %p4362_p11, %p4361_p5 }
  0xae   : > { %p4364_p13 = pnand %p4363_p12, %p4357_p1 }
  0xb0   : > { %4367 = shalt.err (!%p4364_p13)
}
  0xb1   : > { %3946 = dma.hbm_to_vmem [thread:$0]  (!%p5905_p3), %s4754_s0, 2048, %s4756_s25, %s4767_s30, %s4476_s26, %s4476_s26, %s4477_s27  }
  0xb2   : > { %s4803_s23 = scalar_select %p4761_p8, %s4460_s15, %s201_s9  }
  0xb3   : > { %p5906_p6 = scmp.ne.s32.totalorder %s5897_s22, 0 }
  0xb4   : > { %p5907_p9 = scmp.eq.s32.totalorder (!%p5906_p6), %s4573_s21, 0 }
  0xb5   : > { %463 = sbr.rel (%p5906_p6) target bundleno = 1807 (0x70f), region = 60 }
  0xbc   : > { %4419 = dma.done.wait (%p5907_p9), [#allocation10], 16   ;;  %p5908_p7 = pmov %p5907_p9 }
  0xbe   : > { %4421 = vsyncadd (%p5908_p7), [#allocation10], 4294967280  ;;  %p5909_p0 = pmov %p5908_p7 }
  0xc0   : > { %4423 = dma.done.wait (%p5909_p0), [#allocation11], 16   ;;  %p5910_p2 = pmov %p5909_p0 }
  0xc1   : > { %p5911_p3 = pmov %p5909_p0 }
  0xc2   : > { %4425 = vsyncadd (%p5910_p2), [#allocation11], 4294967280 }
  0xc3   : > { %4427 = dma.done.wait (%p5911_p3), [#allocation8], 4096   ;;  %p5912_p8 = pmov %p5909_p0 }
  0xc4   : > { %s482_s22 = sand.u32 1, %s4573_s21   ;;  %p5913_p4 = pmov %p5909_p0 }
  0xc5   : > { %4429 = vsyncadd (%p5912_p8), [#allocation8], 4294963200  ;;  %s483_s26 = scalar_lea.sflag [#allocation15], %s482_s22 }
  0xc6   : > { %4431 = dma.done.wait (%p5913_p4), %s483_s26, 4096   ;;  %p5914_p10 = pmov %p5909_p0 }
  0xc7   : > { %p5915_p1 = pmov %p5909_p0 }
  0xc8   : > { %4433 = vsyncadd (%p5914_p10), %s483_s26, 4294963200 }
  0xc9   : > { %4435 = dma.done.wait (%p5915_p1), [#allocation15], 2048   ;;  %p5916_p5 = pmov %p5909_p0 }
  0xca   : > { %s497_s27 = sand.u32 1, %s4456_s14   ;;  %s496_s25 = scalar_lea.sflag [#allocation18], %s482_s22 }
  0xcb   : > { %4437 = vsyncadd (%p5916_p5), [#allocation15], 4294965248  ;;  %s3191_s24 = sshll.u32 %s497_s27, 7  ;;  %p5917_p11 = scmp.ne.s32.totalorder %s5901_s11, 0 }
  0xcc   : > { %s4829_s0 = scalar_lea.vmem [#allocation17], %s3191_s24 }
  0xcd   : > { %4439 = dma.done.wait (%p5917_p11), %s496_s25, 2048  }
  0xce   : > { %4441 = vsyncadd (%p5917_p11), %s496_s25, 4294965248  ;;  %p5918_p12 = pmov %p5909_p0 }
  0xcf   : > { %p5919_p13 = pmov %p5909_p0 }
  0xd0   : > { %4443 = dma.done.wait (%p5918_p12), [#allocation18], 2048  }
  0xd1   : > { %4445 = vsyncadd (%p5919_p13), [#allocation18], 4294965248 }
  0xd2   : > { %508 = sfence }
  0xd3   : > { %p558_p6 = scmp.lt.s32.totalorder %s4464_s16, 4  ;;  %s4841_s9 = sld [smem:[#allocation7 + %s4464_s16]] }
  0xd4   : > { %s4844_s28 = sld [smem:[#allocation12 + %s4464_s16]]  ;;  %p566_p9 = scmp.gt.s32.totalorder %s4464_s16, 0 }
  0xd5   : > { %s4848_s11 = scalar_select %p558_p6, %s4464_s16, 4 }
  0xd6   : > { %571 = sbr.rel (!%p566_p9) target bundleno = 247 (0xf7), region = 92  ;;  %v572_v0 = vld [vmem:[#allocation3] sm:$0xff] (%p566_p9)  ;;  %v573_v1 = vld [vmem:[#allocation3 + $0x8] sm:$0xff] (%p566_p9)  ;;  %v574_v2 = vld [vmem:[#allocation3 + $0x10] sm:$0xff] (%p566_p9) }
  0xd7   : > { %s560_s10 = scalar_lea.vmem %s5869_s7, %s4848_s11  ;;  %604 = vst [vmem:[#allocation4] sm:$0xff] (%p566_p9), %v572_v0  ;;  %605 = vst [vmem:[#allocation4 + $0x8] sm:$0xff] (%p566_p9), %v573_v1  ;;  %v575_v3 = vld [vmem:[#allocation3 + $0x18] sm:$0xff] (%p566_p9)  ;;  %v576_v4 = vld [vmem:[#allocation3 + $0x20] sm:$0xff] (%p566_p9) }
  0xd8   : > { %606 = vst [vmem:[#allocation4 + $0x10] sm:$0xff] (%p566_p9), %v574_v2  ;;  %v577_v5 = vld [vmem:[#allocation3 + $0x28] sm:$0xff] (%p566_p9)  ;;  %607 = vst [vmem:[#allocation4 + $0x18] sm:$0xff] (%p566_p9), %v575_v3  ;;  %v578_v6 = vld [vmem:[#allocation3 + $0x30] sm:$0xff] (%p566_p9) }
  0xd9   : > { %608 = vst [vmem:[#allocation4 + $0x20] sm:$0xff] (%p566_p9), %v576_v4  ;;  %609 = vst [vmem:[#allocation4 + $0x28] sm:$0xff] (%p566_p9), %v577_v5  ;;  %v579_v7 = vld [vmem:[#allocation3 + $0x38] sm:$0xff] (%p566_p9)  ;;  %v580_v8 = vld [vmem:[#allocation3 + $0x40] sm:$0xff] (%p566_p9) }
  0xda   : > { %610 = vst [vmem:[#allocation4 + $0x30] sm:$0xff] (%p566_p9), %v578_v6  ;;  %611 = vst [vmem:[#allocation4 + $0x38] sm:$0xff] (%p566_p9), %v579_v7  ;;  %v581_v9 = vld [vmem:[#allocation3 + $0x48] sm:$0xff] (%p566_p9)  ;;  %v582_v10 = vld [vmem:[#allocation3 + $0x50] sm:$0xff] (%p566_p9) }
  0xdb   : > { %612 = vst [vmem:[#allocation4 + $0x40] sm:$0xff] (%p566_p9), %v580_v8  ;;  %v583_v11 = vld [vmem:[#allocation3 + $0x58] sm:$0xff] (%p566_p9)  ;;  %613 = vst [vmem:[#allocation4 + $0x48] sm:$0xff] (%p566_p9), %v581_v9  ;;  %v584_v12 = vld [vmem:[#allocation3 + $0x60] sm:$0xff] (%p566_p9) }
  0xdc   : > { %614 = vst [vmem:[#allocation4 + $0x50] sm:$0xff] (%p566_p9), %v582_v10  ;;  %615 = vst [vmem:[#allocation4 + $0x58] sm:$0xff] (%p566_p9), %v583_v11  ;;  %v585_v13 = vld [vmem:[#allocation3 + $0x68] sm:$0xff] (%p566_p9)  ;;  %v586_v14 = vld [vmem:[#allocation3 + $0x70] sm:$0xff] (%p566_p9) }
  0xdd   : > { %616 = vst [vmem:[#allocation4 + $0x60] sm:$0xff] %v584_v12  ;;  %617 = vst [vmem:[#allocation4 + $0x68] sm:$0xff] %v585_v13  ;;  %v587_v15 = vld [vmem:[#allocation3 + $0x78] sm:$0xff]  ;;  %v588_v16 = vld [vmem:[#allocation3 + $0x80] sm:$0xff] }
  0xde   : > { %618 = vst [vmem:[#allocation4 + $0x70] sm:$0xff] %v586_v14  ;;  %v589_v17 = vld [vmem:[#allocation3 + $0x88] sm:$0xff]  ;;  %619 = vst [vmem:[#allocation4 + $0x78] sm:$0xff] %v587_v15  ;;  %v590_v18 = vld [vmem:[#allocation3 + $0x90] sm:$0xff] }
  0xdf   : > { %620 = vst [vmem:[#allocation4 + $0x80] sm:$0xff] %v588_v16  ;;  %621 = vst [vmem:[#allocation4 + $0x88] sm:$0xff] %v589_v17  ;;  %v591_v19 = vld [vmem:[#allocation3 + $0x98] sm:$0xff]  ;;  %v592_v20 = vld [vmem:[#allocation3 + $0xa0] sm:$0xff] }
  0xe0   : > { %622 = vst [vmem:[#allocation4 + $0x90] sm:$0xff] %v590_v18  ;;  %623 = vst [vmem:[#allocation4 + $0x98] sm:$0xff] %v591_v19  ;;  %v593_v21 = vld [vmem:[#allocation3 + $0xa8] sm:$0xff]  ;;  %v594_v22 = vld [vmem:[#allocation3 + $0xb0] sm:$0xff] }
  0xe1   : > { %624 = vst [vmem:[#allocation4 + $0xa0] sm:$0xff] %v592_v20  ;;  %v595_v23 = vld [vmem:[#allocation3 + $0xb8] sm:$0xff]  ;;  %625 = vst [vmem:[#allocation4 + $0xa8] sm:$0xff] %v593_v21  ;;  %v596_v24 = vld [vmem:[#allocation3 + $0xc0] sm:$0xff] }
  0xe2   : > { %626 = vst [vmem:[#allocation4 + $0xb0] sm:$0xff] %v594_v22  ;;  %627 = vst [vmem:[#allocation4 + $0xb8] sm:$0xff] %v595_v23  ;;  %v597_v25 = vld [vmem:[#allocation3 + $0xc8] sm:$0xff]  ;;  %v598_v26 = vld [vmem:[#allocation3 + $0xd0] sm:$0xff] }
  0xe3   : > { %628 = vst [vmem:[#allocation4 + $0xc0] sm:$0xff] %v596_v24  ;;  %629 = vst [vmem:[#allocation4 + $0xc8] sm:$0xff] %v597_v25  ;;  %v599_v27 = vld [vmem:[#allocation3 + $0xd8] sm:$0xff]  ;;  %v600_v28 = vld [vmem:[#allocation3 + $0xe0] sm:$0xff] }
  0xe4   : > { %630 = vst [vmem:[#allocation4 + $0xd0] sm:$0xff] %v598_v26  ;;  %v601_v29 = vld [vmem:[#allocation3 + $0xe8] sm:$0xff]  ;;  %631 = vst [vmem:[#allocation4 + $0xd8] sm:$0xff] %v599_v27  ;;  %v602_v30 = vld [vmem:[#allocation3 + $0xf0] sm:$0xff] }
  0xe5   : > { %632 = vst [vmem:[#allocation4 + $0xe0] sm:$0xff] %v600_v28  ;;  %633 = vst [vmem:[#allocation4 + $0xe8] sm:$0xff] %v601_v29  ;;  %v603_v31 = vld [vmem:[#allocation3 + $0xf8] sm:$0xff]  ;;  %v636_v32 = vld [vmem:[#allocation5] sm:$0xff] }
  0xe6   : > { %634 = vst [vmem:[#allocation4 + $0xf0] sm:$0xff] %v602_v30  ;;  %635 = vst [vmem:[#allocation4 + $0xf8] sm:$0xff] %v603_v31  ;;  %v637_v33 = vld [vmem:[#allocation5 + $0x8] sm:$0xff]  ;;  %v638_v34 = vld [vmem:[#allocation5 + $0x10] sm:$0xff] }
  0xe7   : > { %668 = vst [vmem:[#allocation3] sm:$0xff] %v636_v32  ;;  %v639_v35 = vld [vmem:[#allocation5 + $0x18] sm:$0xff]  ;;  %669 = vst [vmem:[#allocation3 + $0x8] sm:$0xff] %v637_v33  ;;  %v640_v36 = vld [vmem:[#allocation5 + $0x20] sm:$0xff] }
  0xe8   : > { %670 = vst [vmem:[#allocation3 + $0x10] sm:$0xff] %v638_v34  ;;  %671 = vst [vmem:[#allocation3 + $0x18] sm:$0xff] %v639_v35  ;;  %v641_v37 = vld [vmem:[#allocation5 + $0x28] sm:$0xff]  ;;  %v642_v38 = vld [vmem:[#allocation5 + $0x30] sm:$0xff] }
  0xe9   : > { %672 = vst [vmem:[#allocation3 + $0x20] sm:$0xff] %v640_v36  ;;  %673 = vst [vmem:[#allocation3 + $0x28] sm:$0xff] %v641_v37  ;;  %v643_v39 = vld [vmem:[#allocation5 + $0x38] sm:$0xff]  ;;  %v644_v40 = vld [vmem:[#allocation5 + $0x40] sm:$0xff] }
  0xea   : > { %674 = vst [vmem:[#allocation3 + $0x30] sm:$0xff] %v642_v38  ;;  %v645_v41 = vld [vmem:[#allocation5 + $0x48] sm:$0xff]  ;;  %675 = vst [vmem:[#allocation3 + $0x38] sm:$0xff] %v643_v39  ;;  %v646_v42 = vld [vmem:[#allocation5 + $0x50] sm:$0xff] }
  0xeb   : > { %676 = vst [vmem:[#allocation3 + $0x40] sm:$0xff] %v644_v40  ;;  %677 = vst [vmem:[#allocation3 + $0x48] sm:$0xff] %v645_v41  ;;  %v647_v43 = vld [vmem:[#allocation5 + $0x58] sm:$0xff]  ;;  %v648_v44 = vld [vmem:[#allocation5 + $0x60] sm:$0xff] }
  0xec   : > { %678 = vst [vmem:[#allocation3 + $0x50] sm:$0xff] %v646_v42  ;;  %679 = vst [vmem:[#allocation3 + $0x58] sm:$0xff] %v647_v43  ;;  %v649_v45 = vld [vmem:[#allocation5 + $0x68] sm:$0xff]  ;;  %v650_v46 = vld [vmem:[#allocation5 + $0x70] sm:$0xff] }
  0xed   : > { %680 = vst [vmem:[#allocation3 + $0x60] sm:$0xff] %v648_v44  ;;  %v651_v47 = vld [vmem:[#allocation5 + $0x78] sm:$0xff]  ;;  %681 = vst [vmem:[#allocation3 + $0x68] sm:$0xff] %v649_v45  ;;  %v652_v48 = vld [vmem:[#allocation5 + $0x80] sm:$0xff] }
  0xee   : > { %682 = vst [vmem:[#allocation3 + $0x70] sm:$0xff] %v650_v46  ;;  %683 = vst [vmem:[#allocation3 + $0x78] sm:$0xff] %v651_v47  ;;  %v653_v49 = vld [vmem:[#allocation5 + $0x88] sm:$0xff]  ;;  %v654_v50 = vld [vmem:[#allocation5 + $0x90] sm:$0xff] }
  0xef   : > { %684 = vst [vmem:[#allocation3 + $0x80] sm:$0xff] %v652_v48  ;;  %685 = vst [vmem:[#allocation3 + $0x88] sm:$0xff] %v653_v49  ;;  %v655_v51 = vld [vmem:[#allocation5 + $0x98] sm:$0xff]  ;;  %v656_v52 = vld [vmem:[#allocation5 + $0xa0] sm:$0xff] }
  0xf0   : > { %686 = vst [vmem:[#allocation3 + $0x90] sm:$0xff] %v654_v50  ;;  %v657_v53 = vld [vmem:[#allocation5 + $0xa8] sm:$0xff]  ;;  %687 = vst [vmem:[#allocation3 + $0x98] sm:$0xff] %v655_v51  ;;  %v658_v54 = vld [vmem:[#allocation5 + $0xb0] sm:$0xff] }
  0xf1   : > { %688 = vst [vmem:[#allocation3 + $0xa0] sm:$0xff] %v656_v52  ;;  %689 = vst [vmem:[#allocation3 + $0xa8] sm:$0xff] %v657_v53  ;;  %v659_v55 = vld [vmem:[#allocation5 + $0xb8] sm:$0xff]  ;;  %v660_v56 = vld [vmem:[#allocation5 + $0xc0] sm:$0xff] }
  0xf2   : > { %690 = vst [vmem:[#allocation3 + $0xb0] sm:$0xff] %v658_v54  ;;  %691 = vst [vmem:[#allocation3 + $0xb8] sm:$0xff] %v659_v55  ;;  %v661_v57 = vld [vmem:[#allocation5 + $0xc8] sm:$0xff]  ;;  %v662_v58 = vld [vmem:[#allocation5 + $0xd0] sm:$0xff] }
  0xf3   : > { %692 = vst [vmem:[#allocation3 + $0xc0] sm:$0xff] %v660_v56  ;;  %v663_v59 = vld [vmem:[#allocation5 + $0xd8] sm:$0xff]  ;;  %693 = vst [vmem:[#allocation3 + $0xc8] sm:$0xff] %v661_v57  ;;  %v664_v60 = vld [vmem:[#allocation5 + $0xe0] sm:$0xff] }
  0xf4   : > { %694 = vst [vmem:[#allocation3 + $0xd0] sm:$0xff] %v662_v58  ;;  %695 = vst [vmem:[#allocation3 + $0xd8] sm:$0xff] %v663_v59  ;;  %v665_v61 = vld [vmem:[#allocation5 + $0xe8] sm:$0xff]  ;;  %v666_v62 = vld [vmem:[#allocation5 + $0xf0] sm:$0xff] }
  0xf5   : > { %696 = vst [vmem:[#allocation3 + $0xe0] sm:$0xff] %v664_v60  ;;  %697 = vst [vmem:[#allocation3 + $0xe8] sm:$0xff] %v665_v61  ;;  %v667_v63 = vld [vmem:[#allocation5 + $0xf8] sm:$0xff] }
  0xf6   : > { %698 = vst [vmem:[#allocation3 + $0xf0] sm:$0xff] %v666_v62  ;;  %699 = vst [vmem:[#allocation3 + $0xf8] sm:$0xff] %v667_v63 }
  0xf7 PF: > { %p3194_p7 = scmp.ne.s32.totalorder %s4464_s16, 0 }
  0xf8   : > { %v736_v0 = vld [vmem:[#allocation16] sm:$0xff] (!%p3194_p7)  ;;  %v737_v1 = vld [vmem:[#allocation16 + $0x8] sm:$0xff] (!%p3194_p7)  ;;  %v738_v2 = vld [vmem:[#allocation16 + $0x10] sm:$0xff] (!%p3194_p7)  ;;  %v4483_v56 = vmov (!%p3194_p7), 0.0   ;;  %s5920_s20 = sld [smem:[#allocation45_spill]] (!%p3194_p7) }
  0xf9   : > { %703 = sbr.rel (%p3194_p7) target bundleno = 532 (0x214), region = 96  ;;  %v3734_v3 = vpack.c.bf16 (!%p3194_p7), %v737_v1, %v736_v0  ;;  %v739_v4 = vld [vmem:[#allocation16 + $0x18] sm:$0xff] (!%p3194_p7)  ;;  %v740_v6 = vld [vmem:[#allocation16 + $0x20] sm:$0xff] (!%p3194_p7)  ;;  %v741_v7 = vld [vmem:[#allocation16 + $0x28] sm:$0xff] (!%p3194_p7)  ;;  %1115 = vst [vmem:[#allocation3] sm:$0xff] (!%p3194_p7), %v4483_v56  ;;  %v4863_v0 = vstv (!%p3194_p7), %s4841_s9 }
  0xfa   : > { %v3738_v5 = vpack.c.bf16 (!%p3194_p7), %v739_v4, %v738_v2  ;;  %v3742_v8 = vpack.c.bf16 (!%p3194_p7), %v741_v7, %v740_v6  ;;  %v704_v9 = vld [vmem:[#allocation13] sm:$0xff] (!%p3194_p7)  ;;  %v742_v11 = vld [vmem:[#allocation16 + $0x30] sm:$0xff] (!%p3194_p7)  ;;  %v743_v12 = vld [vmem:[#allocation16 + $0x38] sm:$0xff] (!%p3194_p7)  ;;  %1116 = vst [vmem:[#allocation3 + $0x8] sm:$0xff] (!%p3194_p7), %v4483_v56 }
  0xfb   : > { %3735 = vmatprep.subr.bf16.mxu0 (!%p3194_p7), %v3734_v3  ;;  %3830 = vmatprep.subr.bf16.mxu1 (!%p3194_p7), %v3734_v3  ;;  %v720_v10 = vld [vmem:[#allocation13 + $0x80] sm:$0xff] (!%p3194_p7)  ;;  %v3746_v13 = vpack.c.bf16 (!%p3194_p7), %v743_v12, %v742_v11  ;;  %v745_v15 = vld [vmem:[#allocation16 + $0x48] sm:$0xff] (!%p3194_p7)  ;;  %v746_v17 = vld [vmem:[#allocation16 + $0x50] sm:$0xff] (!%p3194_p7)  ;;  %1117 = vst [vmem:[#allocation3 + $0x10] sm:$0xff] (!%p3194_p7), %v4483_v56 }
  0xfc   : > { %3737 = vmatpush3.bf16.msra.mxu0 (!%p3194_p7), %v3734_v3  ;;  %3838 = vmatpush3.bf16.msra.mxu1 (!%p3194_p7), %v3734_v3  ;;  %v744_v14 = vld [vmem:[#allocation16 + $0x40] sm:$0xff] (!%p3194_p7)  ;;  %v747_v18 = vld [vmem:[#allocation16 + $0x58] sm:$0xff] (!%p3194_p7)  ;;  %v749_v21 = vld [vmem:[#allocation16 + $0x68] sm:$0xff] (!%p3194_p7)  ;;  %1118 = vst [vmem:[#allocation3 + $0x18] sm:$0xff] (!%p3194_p7), %v4483_v56 }
  0xfd   : > { %3739 = vmatprep.subr.bf16.mxu0 (!%p3194_p7), %v3738_v5  ;;  %3831 = vmatprep.subr.bf16.mxu1 (!%p3194_p7), %v3738_v5  ;;  %v3750_v16 = vpack.c.bf16 (!%p3194_p7), %v745_v15, %v744_v14  ;;  %v3754_v19 = vpack.c.bf16 (!%p3194_p7), %v747_v18, %v746_v17  ;;  %v748_v20 = vld [vmem:[#allocation16 + $0x60] sm:$0xff] (!%p3194_p7)  ;;  %v750_v23 = vld [vmem:[#allocation16 + $0x70] sm:$0xff] (!%p3194_p7)  ;;  %v751_v24 = vld [vmem:[#allocation16 + $0x78] sm:$0xff] (!%p3194_p7)  ;;  %1119 = vst [vmem:[#allocation3 + $0x20] sm:$0xff] (!%p3194_p7), %v4483_v56 }
  0xfe   : > { %3526 = vmatprep.mubr.f32.mxu0 (!%p3194_p7), %v704_v9  ;;  %3550 = vmatprep.mubr.f32.mxu1 (!%p3194_p7), %v720_v10  ;;  %v3758_v22 = vpack.c.bf16 (!%p3194_p7), %v749_v21, %v748_v20  ;;  %v3762_v25 = vpack.c.bf16 (!%p3194_p7), %v751_v24, %v750_v23  ;;  %v705_v26 = vld [vmem:[#allocation13 + $0x8] sm:$0xff] (!%p3194_p7)  ;;  %v706_v28 = vld [vmem:[#allocation13 + $0x10] sm:$0xff] (!%p3194_p7)  ;;  %v707_v30 = vld [vmem:[#allocation13 + $0x18] sm:$0xff] (!%p3194_p7)  ;;  %1120 = vst [vmem:[#allocation3 + $0x28] sm:$0xff] (!%p3194_p7), %v4483_v56 }
  0xff   : > { %v721_v27 = vld [vmem:[#allocation13 + $0x88] sm:$0xff] (!%p3194_p7)  ;;  %v722_v29 = vld [vmem:[#allocation13 + $0x90] sm:$0xff] (!%p3194_p7)  ;;  %v723_v31 = vld [vmem:[#allocation13 + $0x98] sm:$0xff] (!%p3194_p7)  ;;  %1121 = vst [vmem:[#allocation3 + $0x30] sm:$0xff] (!%p3194_p7), %v4483_v56 }
 0x100   : > { %3741 = vmatpush3.bf16.msra.mxu0 %v3738_v5  ;;  %3839 = vmatpush3.bf16.msra.mxu1 %v3738_v5  ;;  %v708_v32 = vld [vmem:[#allocation13 + $0x20] sm:$0xff]  ;;  %v709_v34 = vld [vmem:[#allocation13 + $0x28] sm:$0xff]  ;;  %v710_v36 = vld [vmem:[#allocation13 + $0x30] sm:$0xff]  ;;  %1122 = vst [vmem:[#allocation3 + $0x38] sm:$0xff] %v4483_v56 }
 0x101   : > { %3743 = vmatprep.subr.bf16.mxu0 %v3742_v8  ;;  %3832 = vmatprep.subr.bf16.mxu1 %v3742_v8  ;;  %v724_v33 = vld [vmem:[#allocation13 + $0xa0] sm:$0xff]  ;;  %v725_v35 = vld [vmem:[#allocation13 + $0xa8] sm:$0xff]  ;;  %v726_v37 = vld [vmem:[#allocation13 + $0xb0] sm:$0xff]  ;;  %1123 = vst [vmem:[#allocation3 + $0x40] sm:$0xff] %v4483_v56 }
 0x102   : > { %v711_v38 = vld [vmem:[#allocation13 + $0x38] sm:$0xff]  ;;  %v712_v40 = vld [vmem:[#allocation13 + $0x40] sm:$0xff]  ;;  %v713_v42 = vld [vmem:[#allocation13 + $0x48] sm:$0xff]  ;;  %1124 = vst [vmem:[#allocation3 + $0x48] sm:$0xff] %v4483_v56 }
 0x103   : > { %v727_v39 = vld [vmem:[#allocation13 + $0xb8] sm:$0xff]  ;;  %v728_v41 = vld [vmem:[#allocation13 + $0xc0] sm:$0xff]  ;;  %v729_v43 = vld [vmem:[#allocation13 + $0xc8] sm:$0xff]  ;;  %1125 = vst [vmem:[#allocation3 + $0x50] sm:$0xff] %v4483_v56 }
 0x104   : > { %3745 = vmatpush3.bf16.msra.mxu0 %v3742_v8  ;;  %3840 = vmatpush3.bf16.msra.mxu1 %v3742_v8  ;;  %v714_v44 = vld [vmem:[#allocation13 + $0x50] sm:$0xff]  ;;  %v715_v46 = vld [vmem:[#allocation13 + $0x58] sm:$0xff]  ;;  %v716_v48 = vld [vmem:[#allocation13 + $0x60] sm:$0xff]  ;;  %1126 = vst [vmem:[#allocation3 + $0x58] sm:$0xff] %v4483_v56 }
 0x105   : > { %3747 = vmatprep.subr.bf16.mxu0 %v3746_v13  ;;  %3833 = vmatprep.subr.bf16.mxu1 %v3746_v13  ;;  %v730_v45 = vld [vmem:[#allocation13 + $0xd0] sm:$0xff]  ;;  %v731_v47 = vld [vmem:[#allocation13 + $0xd8] sm:$0xff]  ;;  %v732_v49 = vld [vmem:[#allocation13 + $0xe0] sm:$0xff]  ;;  %1127 = vst [vmem:[#allocation3 + $0x60] sm:$0xff] %v4483_v56 }
 0x106   : > { %v717_v50 = vld [vmem:[#allocation13 + $0x68] sm:$0xff]  ;;  %v718_v52 = vld [vmem:[#allocation13 + $0x70] sm:$0xff]  ;;  %v719_v54 = vld [vmem:[#allocation13 + $0x78] sm:$0xff]  ;;  %1128 = vst [vmem:[#allocation3 + $0x68] sm:$0xff] %v4483_v56 }
 0x107   : > { %v733_v51 = vld [vmem:[#allocation13 + $0xe8] sm:$0xff]  ;;  %v734_v53 = vld [vmem:[#allocation13 + $0xf0] sm:$0xff]  ;;  %v735_v55 = vld [vmem:[#allocation13 + $0xf8] sm:$0xff]  ;;  %1129 = vst [vmem:[#allocation3 + $0x70] sm:$0xff] %v4483_v56 }
 0x108   : > { %3749 = vmatpush3.bf16.msra.mxu0 %v3746_v13  ;;  %3841 = vmatpush3.bf16.msra.mxu1 %v3746_v13  ;;  %1130 = vst [vmem:[#allocation3 + $0x78] sm:$0xff] %v4483_v56  ;;  %1131 = vst [vmem:[#allocation3 + $0x80] sm:$0xff] %v4483_v56  ;;  %v4858_v57 = vld [vmem:[%s5920_s20] ss:$0 sm:$0xff] }
 0x109   : > { %3751 = vmatprep.subr.bf16.mxu0 %v3750_v16  ;;  %3834 = vmatprep.subr.bf16.mxu1 %v3750_v16  ;;  %1132 = vst [vmem:[#allocation3 + $0x88] sm:$0xff] %v4483_v56  ;;  %1133 = vst [vmem:[#allocation3 + $0x90] sm:$0xff] %v4483_v56 }
 0x10a   : > { %1134 = vst [vmem:[#allocation3 + $0x98] sm:$0xff] %v4483_v56  ;;  %1135 = vst [vmem:[#allocation3 + $0xa0] sm:$0xff] %v4483_v56 }
 0x10b   : > { %1136 = vst [vmem:[#allocation3 + $0xa8] sm:$0xff] %v4483_v56  ;;  %1137 = vst [vmem:[#allocation3 + $0xb0] sm:$0xff] %v4483_v56 }
 0x10c   : > { %3753 = vmatpush3.bf16.msra.mxu0 %v3750_v16  ;;  %3842 = vmatpush3.bf16.msra.mxu1 %v3750_v16  ;;  %1138 = vst [vmem:[#allocation3 + $0xb8] sm:$0xff] %v4483_v56  ;;  %1139 = vst [vmem:[#allocation3 + $0xc0] sm:$0xff] %v4483_v56 }
 0x10d   : > { %3755 = vmatprep.subr.bf16.mxu0 %v3754_v19  ;;  %3835 = vmatprep.subr.bf16.mxu1 %v3754_v19  ;;  %1140 = vst [vmem:[#allocation3 + $0xc8] sm:$0xff] %v4483_v56  ;;  %1141 = vst [vmem:[#allocation3 + $0xd0] sm:$0xff] %v4483_v56 }
 0x10e   : > { %1142 = vst [vmem:[#allocation3 + $0xd8] sm:$0xff] %v4483_v56  ;;  %1143 = vst [vmem:[#allocation3 + $0xe0] sm:$0xff] %v4483_v56 }
 0x10f   : > { %1144 = vst [vmem:[#allocation3 + $0xe8] sm:$0xff] %v4483_v56  ;;  %1145 = vst [vmem:[#allocation3 + $0xf0] sm:$0xff] %v4483_v56 }
 0x110   : > { %3757 = vmatpush3.bf16.msra.mxu0 %v3754_v19  ;;  %3843 = vmatpush3.bf16.msra.mxu1 %v3754_v19  ;;  %1146 = vst [vmem:[#allocation3 + $0xf8] sm:$0xff] %v4483_v56 }
 0x111   : > { %3759 = vmatprep.subr.bf16.mxu0 %v3758_v22  ;;  %3836 = vmatprep.subr.bf16.mxu1 %v3758_v22 }
 0x114   : > { %3761 = vmatpush3.bf16.msra.mxu0 %v3758_v22  ;;  %3844 = vmatpush3.bf16.msra.mxu1 %v3758_v22 }
 0x115   : > { %3763 = vmatprep.subr.bf16.mxu0 %v3762_v25  ;;  %3837 = vmatprep.subr.bf16.mxu1 %v3762_v25 }
 0x118   : > { %3765 = vmatpush3.bf16.msra.mxu0 %v3762_v25  ;;  %3845 = vmatpush3.bf16.msra.mxu1 %v3762_v25 }
 0x11b   : > { %3527 = vmatmul.mubr.f32.vlgmr.msra.gmra.mrb[0].mxu0 %v705_v26  ;;  %3551 = vmatmul.mubr.f32.vlgmr.msra.gmra.mrb[0].mxu1 %v721_v27 }
 0x11c   : > { %3529 = vmatprep.mubr.f32.mxu0 %v706_v28  ;;  %3553 = vmatprep.mubr.f32.mxu1 %v722_v29 }
 0x11f   : > { %3530 = vmatmul.mubr.f32.gmra.mrb[2].mxu0 %v707_v30  ;;  %3554 = vmatmul.mubr.f32.gmra.mrb[2].mxu1 %v723_v31 }
 0x120   : > { %3532 = vmatprep.mubr.f32.mxu0 %v708_v32  ;;  %3556 = vmatprep.mubr.f32.mxu1 %v724_v33 }
 0x123   : > { %3533 = vmatmul.mubr.f32.gmra.mrb[4].mxu0 %v709_v34  ;;  %3557 = vmatmul.mubr.f32.gmra.mrb[4].mxu1 %v725_v35 }
 0x124   : > { %3535 = vmatprep.mubr.f32.mxu0 %v710_v36  ;;  %3559 = vmatprep.mubr.f32.mxu1 %v726_v37 }
 0x127   : > { %3536 = vmatmul.mubr.f32.gmra.mrb[6].mxu0 %v711_v38  ;;  %3560 = vmatmul.mubr.f32.gmra.mrb[6].mxu1 %v727_v39 }
 0x128   : > { %3538 = vmatprep.mubr.f32.mxu0 %v712_v40  ;;  %3562 = vmatprep.mubr.f32.mxu1 %v728_v41 }
 0x12b   : > { %3539 = vmatmul.mubr.f32.gmra.mrb[8].mxu0 %v713_v42  ;;  %3563 = vmatmul.mubr.f32.gmra.mrb[8].mxu1 %v729_v43 }
 0x12c   : > { %3541 = vmatprep.mubr.f32.mxu0 %v714_v44  ;;  %3565 = vmatprep.mubr.f32.mxu1 %v730_v45 }
 0x12f   : > { %3542 = vmatmul.mubr.f32.gmra.mrb[10].mxu0 %v715_v46  ;;  %3566 = vmatmul.mubr.f32.gmra.mrb[10].mxu1 %v731_v47 }
 0x130   : > { %3544 = vmatprep.mubr.f32.mxu0 %v716_v48  ;;  %3568 = vmatprep.mubr.f32.mxu1 %v732_v49 }
 0x133   : > { %3545 = vmatmul.mubr.f32.gmra.mrb[12].mxu0 %v717_v50  ;;  %3569 = vmatmul.mubr.f32.gmra.mrb[12].mxu1 %v733_v51 }
 0x134   : > { %3547 = vmatprep.mubr.f32.mxu0 %v718_v52  ;;  %3571 = vmatprep.mubr.f32.mxu1 %v734_v53 }
 0x137   : > { %3548 = vmatmul.mubr.f32.gmra.mrb[14].mxu0 %v719_v54  ;;  %3572 = vmatmul.mubr.f32.gmra.mrb[14].mxu1 %v735_v55 }
 0x1ee   : > { %v3528_v58 = vpop.f32.mrb[0].mxu0  ;;  %v3552_v59 = vpop.f32.mrb[0].mxu1 }
 0x1ef   : > { %v831_v60 = vadd.f32 %v3528_v58, %v4858_v57  ;;  %v911_v61 = vadd.f32 %v3552_v59, %v4858_v57  ;;  %v825_v62 = vpop.f32.mrb[1].mxu0  ;;  %v905_v63 = vpop.f32.mrb[1].mxu1 }
 0x1f0   : > { %v826_v1 = vadd.f32 %v4858_v57, %v825_v62  ;;  %v906_v2 = vadd.f32 %v4858_v57, %v905_v63 }
 0x1f1   : > { %v985_v3 = vmax.f32 %v831_v60, 0.0  ;;  %v1001_v4 = vmax.f32 %v911_v61, 0.0 }
 0x1f2   : > { %v984_v5 = vmax.f32 %v826_v1, 0.0  ;;  %v1000_v6 = vmax.f32 %v906_v2, 0.0  ;;  %v3531_v7 = vpop.f32.mrb[2].mxu0  ;;  %v3555_v8 = vpop.f32.mrb[2].mxu1 }
 0x1f3   : > { %1018 = vst [vmem:[#allocation2 + $0x8] sm:$0xff] %v985_v3  ;;  %v1051_v9 = vmul.f32 %v4863_v0, %v985_v3  ;;  %1034 = vst [vmem:[#allocation2 + $0x88] sm:$0xff] %v1001_v4  ;;  %v1067_v10 = vmul.f32 %v4863_v0, %v1001_v4  ;;  %v841_v11 = vadd.f32 %v3531_v7, %v4858_v57  ;;  %v835_v13 = vpop.f32.mrb[3].mxu0  ;;  %v915_v14 = vpop.f32.mrb[3].mxu1 }
 0x1f4   : > { %v921_v12 = vadd.f32 %v3555_v8, %v4858_v57  ;;  %1017 = vst [vmem:[#allocation2] sm:$0xff] %v984_v5  ;;  %v1050_v15 = vmul.f32 %v4863_v0, %v984_v5  ;;  %1033 = vst [vmem:[#allocation2 + $0x80] sm:$0xff] %v1000_v6  ;;  %v1066_v16 = vmul.f32 %v4863_v0, %v1000_v6 }
 0x1f5   : > { %v836_v17 = vadd.f32 %v4858_v57, %v835_v13  ;;  %v916_v18 = vadd.f32 %v4858_v57, %v915_v14  ;;  %1083 = vst [vmem:[#allocation6 + $0x8] sm:$0xff] %v1051_v9  ;;  %1099 = vst [vmem:[#allocation6 + $0x88] sm:$0xff] %v1067_v10  ;;  %v987_v19 = vmax.f32 %v841_v11, 0.0 }
 0x1f6   : > { %v1003_v20 = vmax.f32 %v921_v12, 0.0  ;;  %1082 = vst [vmem:[#allocation6] sm:$0xff] %v1050_v15  ;;  %1098 = vst [vmem:[#allocation6 + $0x80] sm:$0xff] %v1066_v16  ;;  %v3534_v23 = vpop.f32.mrb[4].mxu0  ;;  %v3558_v24 = vpop.f32.mrb[4].mxu1 }
 0x1f7   : > { %v986_v21 = vmax.f32 %v836_v17, 0.0  ;;  %v1002_v22 = vmax.f32 %v916_v18, 0.0  ;;  %1020 = vst [vmem:[#allocation2 + $0x18] sm:$0xff] %v987_v19  ;;  %v1053_v25 = vmul.f32 %v4863_v0, %v987_v19  ;;  %v851_v27 = vadd.f32 %v3534_v23, %v4858_v57  ;;  %v845_v29 = vpop.f32.mrb[5].mxu0  ;;  %v925_v30 = vpop.f32.mrb[5].mxu1 }
 0x1f8   : > { %1036 = vst [vmem:[#allocation2 + $0x98] sm:$0xff] %v1003_v20  ;;  %v1069_v26 = vmul.f32 %v4863_v0, %v1003_v20  ;;  %v931_v28 = vadd.f32 %v3558_v24, %v4858_v57  ;;  %v846_v33 = vadd.f32 %v4858_v57, %v845_v29  ;;  %v926_v34 = vadd.f32 %v4858_v57, %v925_v30 }
 0x1f9   : > { %1019 = vst [vmem:[#allocation2 + $0x10] sm:$0xff] %v986_v21  ;;  %v1052_v31 = vmul.f32 %v4863_v0, %v986_v21  ;;  %1035 = vst [vmem:[#allocation2 + $0x90] sm:$0xff] %v1002_v22  ;;  %v1068_v32 = vmul.f32 %v4863_v0, %v1002_v22  ;;  %v989_v35 = vmax.f32 %v851_v27, 0.0 }
 0x1fa   : > { %1085 = vst [vmem:[#allocation6 + $0x18] sm:$0xff] %v1053_v25  ;;  %1101 = vst [vmem:[#allocation6 + $0x98] sm:$0xff] %v1069_v26  ;;  %v1005_v36 = vmax.f32 %v931_v28, 0.0  ;;  %v988_v37 = vmax.f32 %v846_v33, 0.0  ;;  %v1004_v38 = vmax.f32 %v926_v34, 0.0  ;;  %v3537_v39 = vpop.f32.mrb[6].mxu0 }
 0x1fb   : > { %1084 = vst [vmem:[#allocation6 + $0x10] sm:$0xff] %v1052_v31  ;;  %1100 = vst [vmem:[#allocation6 + $0x90] sm:$0xff] %v1068_v32  ;;  %v3561_v40 = vpop.f32.mrb[6].mxu1  ;;  %v1055_v41 = vmul.f32 %v4863_v0, %v989_v35  ;;  %v861_v43 = vadd.f32 %v3537_v39, %v4858_v57  ;;  %v855_v45 = vpop.f32.mrb[7].mxu0 }
 0x1fc   : > { %1022 = vst [vmem:[#allocation2 + $0x28] sm:$0xff] %v989_v35  ;;  %1038 = vst [vmem:[#allocation2 + $0xa8] sm:$0xff] %v1005_v36  ;;  %v1071_v42 = vmul.f32 %v4863_v0, %v1005_v36  ;;  %v941_v44 = vadd.f32 %v3561_v40, %v4858_v57  ;;  %v935_v46 = vpop.f32.mrb[7].mxu1  ;;  %v1054_v47 = vmul.f32 %v4863_v0, %v988_v37 }
 0x1fd   : > { %1021 = vst [vmem:[#allocation2 + $0x20] sm:$0xff] %v988_v37  ;;  %1037 = vst [vmem:[#allocation2 + $0xa0] sm:$0xff] %v1004_v38  ;;  %v1070_v48 = vmul.f32 %v4863_v0, %v1004_v38  ;;  %v856_v49 = vadd.f32 %v4858_v57, %v855_v45  ;;  %v936_v50 = vadd.f32 %v4858_v57, %v935_v46  ;;  %v991_v51 = vmax.f32 %v861_v43, 0.0 }
 0x1fe   : > { %1087 = vst [vmem:[#allocation6 + $0x28] sm:$0xff] %v1055_v41  ;;  %1103 = vst [vmem:[#allocation6 + $0xa8] sm:$0xff] %v1071_v42  ;;  %v1007_v52 = vmax.f32 %v941_v44, 0.0  ;;  %v3540_v55 = vpop.f32.mrb[8].mxu0  ;;  %v3564_v56 = vpop.f32.mrb[8].mxu1 }
 0x1ff   : > { %1086 = vst [vmem:[#allocation6 + $0x20] sm:$0xff] %v1054_v47  ;;  %1102 = vst [vmem:[#allocation6 + $0xa0] sm:$0xff] %v1070_v48  ;;  %v990_v53 = vmax.f32 %v856_v49, 0.0  ;;  %v1006_v54 = vmax.f32 %v936_v50, 0.0  ;;  %v1057_v58 = vmul.f32 %v4863_v0, %v991_v51  ;;  %v871_v60 = vadd.f32 %v3540_v55, %v4858_v57  ;;  %v865_v62 = vpop.f32.mrb[9].mxu0  ;;  %v945_v63 = vpop.f32.mrb[9].mxu1 }
 0x200   : > { %1024 = vst [vmem:[#allocation2 + $0x38] sm:$0xff] %v991_v51  ;;  %1040 = vst [vmem:[#allocation2 + $0xb8] sm:$0xff] %v1007_v52  ;;  %v1073_v59 = vmul.f32 %v4863_v0, %v1007_v52  ;;  %v951_v61 = vadd.f32 %v3564_v56, %v4858_v57  ;;  %v866_v3 = vadd.f32 %v4858_v57, %v865_v62 }
 0x201   : > { %1023 = vst [vmem:[#allocation2 + $0x30] sm:$0xff] %v990_v53  ;;  %v1056_v1 = vmul.f32 %v4863_v0, %v990_v53  ;;  %1039 = vst [vmem:[#allocation2 + $0xb0] sm:$0xff] %v1006_v54  ;;  %v1072_v2 = vmul.f32 %v4863_v0, %v1006_v54  ;;  %v946_v4 = vadd.f32 %v4858_v57, %v945_v63  ;;  %v993_v5 = vmax.f32 %v871_v60, 0.0 }
 0x202   : > { %1089 = vst [vmem:[#allocation6 + $0x38] sm:$0xff] %v1057_v58  ;;  %1105 = vst [vmem:[#allocation6 + $0xb8] sm:$0xff] %v1073_v59  ;;  %v1009_v6 = vmax.f32 %v951_v61, 0.0  ;;  %v992_v7 = vmax.f32 %v866_v3, 0.0  ;;  %v3543_v9 = vpop.f32.mrb[10].mxu0  ;;  %v3567_v10 = vpop.f32.mrb[10].mxu1 }
 0x203   : > { %1088 = vst [vmem:[#allocation6 + $0x30] sm:$0xff] %v1056_v1  ;;  %1104 = vst [vmem:[#allocation6 + $0xb0] sm:$0xff] %v1072_v2  ;;  %v1008_v8 = vmax.f32 %v946_v4, 0.0  ;;  %v1059_v11 = vmul.f32 %v4863_v0, %v993_v5  ;;  %v881_v13 = vadd.f32 %v3543_v9, %v4858_v57  ;;  %v961_v14 = vadd.f32 %v3567_v10, %v4858_v57  ;;  %v875_v15 = vpop.f32.mrb[11].mxu0  ;;  %v955_v16 = vpop.f32.mrb[11].mxu1 }
 0x204   : > { %1026 = vst [vmem:[#allocation2 + $0x48] sm:$0xff] %v993_v5  ;;  %1042 = vst [vmem:[#allocation2 + $0xc8] sm:$0xff] %v1009_v6  ;;  %v1075_v12 = vmul.f32 %v4863_v0, %v1009_v6  ;;  %v1058_v17 = vmul.f32 %v4863_v0, %v992_v7  ;;  %v876_v19 = vadd.f32 %v4858_v57, %v875_v15 }
 0x205   : > { %1025 = vst [vmem:[#allocation2 + $0x40] sm:$0xff] %v992_v7  ;;  %1041 = vst [vmem:[#allocation2 + $0xc0] sm:$0xff] %v1008_v8  ;;  %v1074_v18 = vmul.f32 %v4863_v0, %v1008_v8  ;;  %v956_v20 = vadd.f32 %v4858_v57, %v955_v16  ;;  %v995_v21 = vmax.f32 %v881_v13, 0.0  ;;  %v1011_v22 = vmax.f32 %v961_v14, 0.0 }
 0x206   : > { %1091 = vst [vmem:[#allocation6 + $0x48] sm:$0xff] %v1059_v11  ;;  %1107 = vst [vmem:[#allocation6 + $0xc8] sm:$0xff] %v1075_v12  ;;  %v994_v23 = vmax.f32 %v876_v19, 0.0  ;;  %v3546_v25 = vpop.f32.mrb[12].mxu0  ;;  %v3570_v26 = vpop.f32.mrb[12].mxu1 }
 0x207   : > { %1090 = vst [vmem:[#allocation6 + $0x40] sm:$0xff] %v1058_v17  ;;  %1106 = vst [vmem:[#allocation6 + $0xc0] sm:$0xff] %v1074_v18  ;;  %v1010_v24 = vmax.f32 %v956_v20, 0.0  ;;  %v1061_v27 = vmul.f32 %v4863_v0, %v995_v21  ;;  %v1077_v28 = vmul.f32 %v4863_v0, %v1011_v22  ;;  %v891_v29 = vadd.f32 %v3546_v25, %v4858_v57  ;;  %v885_v31 = vpop.f32.mrb[13].mxu0  ;;  %v965_v32 = vpop.f32.mrb[13].mxu1 }
 0x208   : > { %1028 = vst [vmem:[#allocation2 + $0x58] sm:$0xff] %v995_v21  ;;  %1044 = vst [vmem:[#allocation2 + $0xd8] sm:$0xff] %v1011_v22  ;;  %v971_v30 = vadd.f32 %v3570_v26, %v4858_v57  ;;  %v1060_v33 = vmul.f32 %v4863_v0, %v994_v23  ;;  %v886_v35 = vadd.f32 %v4858_v57, %v885_v31 }
 0x209   : > { %1027 = vst [vmem:[#allocation2 + $0x50] sm:$0xff] %v994_v23  ;;  %1043 = vst [vmem:[#allocation2 + $0xd0] sm:$0xff] %v1010_v24  ;;  %v1076_v34 = vmul.f32 %v4863_v0, %v1010_v24  ;;  %v966_v36 = vadd.f32 %v4858_v57, %v965_v32  ;;  %v997_v37 = vmax.f32 %v891_v29, 0.0 }
 0x20a   : > { %1093 = vst [vmem:[#allocation6 + $0x58] sm:$0xff] %v1061_v27  ;;  %1109 = vst [vmem:[#allocation6 + $0xd8] sm:$0xff] %v1077_v28  ;;  %v1013_v38 = vmax.f32 %v971_v30, 0.0  ;;  %v996_v39 = vmax.f32 %v886_v35, 0.0  ;;  %v3549_v41 = vpop.f32.mrb[14].mxu0  ;;  %v3573_v42 = vpop.f32.mrb[14].mxu1 }
 0x20b   : > { %1092 = vst [vmem:[#allocation6 + $0x50] sm:$0xff] %v1060_v33  ;;  %1108 = vst [vmem:[#allocation6 + $0xd0] sm:$0xff] %v1076_v34  ;;  %v1012_v40 = vmax.f32 %v966_v36, 0.0  ;;  %v1063_v43 = vmul.f32 %v4863_v0, %v997_v37  ;;  %v901_v45 = vadd.f32 %v3549_v41, %v4858_v57  ;;  %v981_v46 = vadd.f32 %v3573_v42, %v4858_v57  ;;  %v895_v47 = vpop.f32.mrb[15].mxu0  ;;  %v975_v48 = vpop.f32.mrb[15].mxu1 }
 0x20c   : > { %1030 = vst [vmem:[#allocation2 + $0x68] sm:$0xff] %v997_v37  ;;  %1046 = vst [vmem:[#allocation2 + $0xe8] sm:$0xff] %v1013_v38  ;;  %v1079_v44 = vmul.f32 %v4863_v0, %v1013_v38  ;;  %v1062_v49 = vmul.f32 %v4863_v0, %v996_v39  ;;  %v896_v51 = vadd.f32 %v4858_v57, %v895_v47 }
 0x20d   : > { %1029 = vst [vmem:[#allocation2 + $0x60] sm:$0xff] %v996_v39  ;;  %1045 = vst [vmem:[#allocation2 + $0xe0] sm:$0xff] %v1012_v40  ;;  %v1078_v50 = vmul.f32 %v4863_v0, %v1012_v40  ;;  %v976_v52 = vadd.f32 %v4858_v57, %v975_v48  ;;  %v999_v53 = vmax.f32 %v901_v45, 0.0  ;;  %v1015_v54 = vmax.f32 %v981_v46, 0.0 }
 0x20e   : > { %1095 = vst [vmem:[#allocation6 + $0x68] sm:$0xff] %v1063_v43  ;;  %1111 = vst [vmem:[#allocation6 + $0xe8] sm:$0xff] %v1079_v44  ;;  %v998_v55 = vmax.f32 %v896_v51, 0.0 }
 0x20f   : > { %1094 = vst [vmem:[#allocation6 + $0x60] sm:$0xff] %v1062_v49  ;;  %1110 = vst [vmem:[#allocation6 + $0xe0] sm:$0xff] %v1078_v50  ;;  %v1014_v56 = vmax.f32 %v976_v52, 0.0  ;;  %v1065_v58 = vmul.f32 %v4863_v0, %v999_v53  ;;  %v1081_v59 = vmul.f32 %v4863_v0, %v1015_v54 }
 0x210   : > { %1032 = vst [vmem:[#allocation2 + $0x78] sm:$0xff] %v999_v53  ;;  %1048 = vst [vmem:[#allocation2 + $0xf8] sm:$0xff] %v1015_v54  ;;  %v1064_v60 = vmul.f32 %v4863_v0, %v998_v55 }
 0x211   : > { %1031 = vst [vmem:[#allocation2 + $0x70] sm:$0xff] %v998_v55  ;;  %1047 = vst [vmem:[#allocation2 + $0xf0] sm:$0xff] %v1014_v56  ;;  %v1080_v57 = vmul.f32 %v4863_v0, %v1014_v56 }
 0x212   : > { %1097 = vst [vmem:[#allocation6 + $0x78] sm:$0xff] %v1065_v58  ;;  %1113 = vst [vmem:[#allocation6 + $0xf8] sm:$0xff] %v1081_v59 }
 0x213   : > { %1096 = vst [vmem:[#allocation6 + $0x70] sm:$0xff] %v1064_v60  ;;  %1112 = vst [vmem:[#allocation6 + $0xf0] sm:$0xff] %v1080_v57 }
 0x214 PF: > { %p3196_p0 = scmp.le.s32.totalorder %s4464_s16, 0 }
 0x215   : > { %v1198_v61 = vld [vmem:[#allocation3 + $0x80] sm:$0xff] (!%p3196_p0)  ;;  %v1199_v62 = vld [vmem:[#allocation3 + $0x88] sm:$0xff] (!%p3196_p0)  ;;  %v1200_v3 = vld [vmem:[#allocation3 + $0x90] sm:$0xff] (!%p3196_p0) }
 0x216   : > { %1149 = sbr.rel (%p3196_p0) target bundleno = 848 (0x350), region = 100  ;;  %v1182_v63 = vld [vmem:[#allocation3] sm:$0xff] (!%p3196_p0)  ;;  %v1222_v1 = vpack.c.bf16 (!%p3196_p0), %v1199_v62, %v1198_v61  ;;  %v1183_v2 = vld [vmem:[#allocation3 + $0x8] sm:$0xff] (!%p3196_p0)  ;;  %v1201_v4 = vld [vmem:[#allocation3 + $0x98] sm:$0xff] (!%p3196_p0) }
 0x217   : > { %v1214_v5 = vpack.c.bf16 (!%p3196_p0), %v1183_v2, %v1182_v63  ;;  %v1223_v6 = vpack.c.bf16 (!%p3196_p0), %v1201_v4, %v1200_v3  ;;  %v1184_v7 = vld [vmem:[#allocation3 + $0x10] sm:$0xff] (!%p3196_p0)  ;;  %v1185_v8 = vld [vmem:[#allocation3 + $0x18] sm:$0xff] (!%p3196_p0)  ;;  %v1202_v0 = vld [vmem:[#allocation3 + $0xa0] sm:$0xff] (!%p3196_p0) }
 0x218   : > { %3286 = vmatprep.subr.bf16.mxu0 (!%p3196_p0), %v1222_v1  ;;  %3846 = vmatprep.subr.bf16.mxu1 (!%p3196_p0), %v1222_v1  ;;  %v1203_v9 = vld [vmem:[#allocation3 + $0xa8] sm:$0xff] (!%p3196_p0)  ;;  %v1215_v10 = vpack.c.bf16 (!%p3196_p0), %v1185_v8, %v1184_v7  ;;  %v1186_v12 = vld [vmem:[#allocation3 + $0x20] sm:$0xff] (!%p3196_p0)  ;;  %v1204_v14 = vld [vmem:[#allocation3 + $0xb0] sm:$0xff] (!%p3196_p0) }
 0x219   : > { %3287 = vmatpush3.bf16.msra.mxu0 (!%p3196_p0), %v1214_v5  ;;  %3854 = vmatpush3.bf16.msra.mxu1 (!%p3196_p0), %v1214_v5  ;;  %v1224_v11 = vpack.c.bf16 (!%p3196_p0), %v1203_v9, %v1202_v0  ;;  %v1187_v13 = vld [vmem:[#allocation3 + $0x28] sm:$0xff] (!%p3196_p0)  ;;  %v1205_v15 = vld [vmem:[#allocation3 + $0xb8] sm:$0xff] (!%p3196_p0)  ;;  %v1206_v20 = vld [vmem:[#allocation3 + $0xc0] sm:$0xff] (!%p3196_p0) }
 0x21a   : > { %3288 = vmatprep.subr.bf16.mxu0 (!%p3196_p0), %v1223_v6  ;;  %3847 = vmatprep.subr.bf16.mxu1 (!%p3196_p0), %v1223_v6  ;;  %v1216_v16 = vpack.c.bf16 (!%p3196_p0), %v1187_v13, %v1186_v12  ;;  %v1225_v17 = vpack.c.bf16 (!%p3196_p0), %v1205_v15, %v1204_v14  ;;  %v1188_v18 = vld [vmem:[#allocation3 + $0x30] sm:$0xff] (!%p3196_p0)  ;;  %v1207_v21 = vld [vmem:[#allocation3 + $0xc8] sm:$0xff] (!%p3196_p0)  ;;  %v1190_v22 = vld [vmem:[#allocation3 + $0x40] sm:$0xff] (!%p3196_p0)  ;;  %v4929_v14 = vstv (!%p3196_p0), %s4841_s9 }
 0x21b   : > { %v1189_v19 = vld [vmem:[#allocation3 + $0x38] sm:$0xff] (!%p3196_p0)  ;;  %v1191_v23 = vld [vmem:[#allocation3 + $0x48] sm:$0xff] (!%p3196_p0)  ;;  %v1208_v26 = vld [vmem:[#allocation3 + $0xd0] sm:$0xff] (!%p3196_p0)  ;;  %v1226_v27 = vpack.c.bf16 (!%p3196_p0), %v1207_v21, %v1206_v20 }
 0x21c   : > { %v4024_v24 = vld [vmem:[#allocation14 + $0x4] ss:$8 sps:$4 sm:$0xff] (!%p3196_p0)   ;;  %v1217_v25 = vpack.c.bf16 (!%p3196_p0), %v1189_v19, %v1188_v18  ;;  %v1209_v29 = vld [vmem:[#allocation3 + $0xd8] sm:$0xff] (!%p3196_p0)  ;;  %v1218_v30 = vpack.c.bf16 (!%p3196_p0), %v1191_v23, %v1190_v22  ;;  %v1192_v31 = vld [vmem:[#allocation3 + $0x50] sm:$0xff] (!%p3196_p0) }
 0x21d   : > { %3289 = vmatpush3.bf16.msra.mxu0 %v1215_v10  ;;  %3855 = vmatpush3.bf16.msra.mxu1 %v1215_v10  ;;  %v4027_v28 = vld [vmem:[#allocation14 + $0x84] ss:$8 sps:$4 sm:$0xff]   ;;  %v1227_v32 = vpack.c.bf16 %v1209_v29, %v1208_v26  ;;  %v1193_v33 = vld [vmem:[#allocation3 + $0x58] sm:$0xff]  ;;  %v1212_v40 = vld [vmem:[#allocation3 + $0xf0] sm:$0xff] }
 0x21e   : > { %3290 = vmatprep.subr.bf16.mxu0 %v1224_v11  ;;  %3848 = vmatprep.subr.bf16.mxu1 %v1224_v11  ;;  %v1210_v34 = vld [vmem:[#allocation3 + $0xe0] sm:$0xff]  ;;  %v1211_v35 = vld [vmem:[#allocation3 + $0xe8] sm:$0xff]  ;;  %v1219_v36 = vpack.c.bf16 %v1193_v33, %v1192_v31  ;;  %v1213_v41 = vld [vmem:[#allocation3 + $0xf8] sm:$0xff] }
 0x21f   : > { %1422 = vmatprep.mubr.bf16.mxu0 %v4024_v24  ;;  %1486 = vmatprep.mubr.bf16.mxu1 %v4027_v28  ;;  %v1194_v37 = vld [vmem:[#allocation3 + $0x60] sm:$0xff]  ;;  %v1195_v38 = vld [vmem:[#allocation3 + $0x68] sm:$0xff]  ;;  %v1228_v39 = vpack.c.bf16 %v1211_v35, %v1210_v34  ;;  %v1196_v43 = vld [vmem:[#allocation3 + $0x70] sm:$0xff]  ;;  %v1229_v44 = vpack.c.bf16 %v1213_v41, %v1212_v40 }
 0x220   : > { %v1220_v42 = vpack.c.bf16 %v1195_v38, %v1194_v37  ;;  %v1197_v45 = vld [vmem:[#allocation3 + $0x78] sm:$0xff]  ;;  %v4022_v47 = vld [vmem:[#allocation14] ss:$8 sps:$4 sm:$0xff]   ;;  %v4034_v53 = vld [vmem:[#allocation14 + $0x24] ss:$8 sps:$4 sm:$0xff]  }
 0x221   : > { %3291 = vmatpush3.bf16.msra.mxu0 %v1216_v16  ;;  %3856 = vmatpush3.bf16.msra.mxu1 %v1216_v16  ;;  %v1221_v46 = vpack.c.bf16 %v1197_v45, %v1196_v43  ;;  %v4025_v48 = vld [vmem:[#allocation14 + $0x80] ss:$8 sps:$4 sm:$0xff]   ;;  %v4028_v49 = vld [vmem:[#allocation14 + $0x14] ss:$8 sps:$4 sm:$0xff]   ;;  %v4032_v51 = vld [vmem:[#allocation14 + $0x10] ss:$8 sps:$4 sm:$0xff]  }
 0x222   : > { %3292 = vmatprep.subr.bf16.mxu0 %v1225_v17  ;;  %3849 = vmatprep.subr.bf16.mxu1 %v1225_v17  ;;  %v4030_v50 = vld [vmem:[#allocation14 + $0x94] ss:$8 sps:$4 sm:$0xff]   ;;  %v4033_v52 = vld [vmem:[#allocation14 + $0x90] ss:$8 sps:$4 sm:$0xff]   ;;  %v4036_v54 = vld [vmem:[#allocation14 + $0xa4] ss:$8 sps:$4 sm:$0xff]  }
 0x223   : > { %v4038_v55 = vld [vmem:[#allocation14 + $0x20] ss:$8 sps:$4 sm:$0xff]   ;;  %v4040_v58 = vld [vmem:[#allocation14 + $0x34] ss:$8 sps:$4 sm:$0xff]   ;;  %v4044_v60 = vld [vmem:[#allocation14 + $0x30] ss:$8 sps:$4 sm:$0xff]  }
 0x224   : > { %v4039_v56 = vld [vmem:[#allocation14 + $0xa0] ss:$8 sps:$4 sm:$0xff]   ;;  %v4042_v59 = vld [vmem:[#allocation14 + $0xb4] ss:$8 sps:$4 sm:$0xff]   ;;  %v4045_v57 = vld [vmem:[#allocation14 + $0xb0] ss:$8 sps:$4 sm:$0xff]  }
 0x225   : > { %3293 = vmatpush3.bf16.msra.mxu0 %v1217_v25  ;;  %3857 = vmatpush3.bf16.msra.mxu1 %v1217_v25  ;;  %v4046_v61 = vld [vmem:[#allocation14 + $0x44] ss:$8 sps:$4 sm:$0xff]   ;;  %v4050_v63 = vld [vmem:[#allocation14 + $0x40] ss:$8 sps:$4 sm:$0xff]   ;;  %v4052_v2 = vld [vmem:[#allocation14 + $0x54] ss:$8 sps:$4 sm:$0xff]  }
 0x226   : > { %3294 = vmatprep.subr.bf16.mxu0 %v1226_v27  ;;  %3850 = vmatprep.subr.bf16.mxu1 %v1226_v27  ;;  %v4048_v62 = vld [vmem:[#allocation14 + $0xc4] ss:$8 sps:$4 sm:$0xff]   ;;  %v4051_v1 = vld [vmem:[#allocation14 + $0xc0] ss:$8 sps:$4 sm:$0xff]   ;;  %v4054_v3 = vld [vmem:[#allocation14 + $0xd4] ss:$8 sps:$4 sm:$0xff]  }
 0x227   : > { %v4056_v4 = vld [vmem:[#allocation14 + $0x50] ss:$8 sps:$4 sm:$0xff]   ;;  %v4058_v6 = vld [vmem:[#allocation14 + $0x64] ss:$8 sps:$4 sm:$0xff]   ;;  %v4062_v8 = vld [vmem:[#allocation14 + $0x60] ss:$8 sps:$4 sm:$0xff]  }
 0x228   : > { %v4057_v5 = vld [vmem:[#allocation14 + $0xd0] ss:$8 sps:$4 sm:$0xff]   ;;  %v4060_v7 = vld [vmem:[#allocation14 + $0xe4] ss:$8 sps:$4 sm:$0xff]   ;;  %v4063_v0 = vld [vmem:[#allocation14 + $0xe0] ss:$8 sps:$4 sm:$0xff]  }
 0x229   : > { %3295 = vmatpush3.bf16.msra.mxu0 %v1218_v30  ;;  %3858 = vmatpush3.bf16.msra.mxu1 %v1218_v30  ;;  %v4064_v9 = vld [vmem:[#allocation14 + $0x74] ss:$8 sps:$4 sm:$0xff]   ;;  %v4068_v11 = vld [vmem:[#allocation14 + $0x70] ss:$8 sps:$4 sm:$0xff]   ;;  %v1552_v13 = vld [vmem:[#allocation2] sm:$0xff] }
 0x22a   : > { %3296 = vmatprep.subr.bf16.mxu0 %v1227_v32  ;;  %3851 = vmatprep.subr.bf16.mxu1 %v1227_v32  ;;  %v4066_v10 = vld [vmem:[#allocation14 + $0xf4] ss:$8 sps:$4 sm:$0xff]   ;;  %v4069_v12 = vld [vmem:[#allocation14 + $0xf0] ss:$8 sps:$4 sm:$0xff]   ;;  %v1568_v15 = vld [vmem:[#allocation2 + $0x80] sm:$0xff]  ;;  %v1585_v23 = vmul.f32 %v4929_v14, %v1552_v13 }
 0x22b   : > { %v1553_v18 = vld [vmem:[#allocation2 + $0x8] sm:$0xff]  ;;  %v1601_v25 = vmul.f32 %v4929_v14, %v1568_v15  ;;  %v1698_v37 = vld [vmem:[#allocation4 + $0x80] sm:$0xff]  ;;  %v1570_v43 = vld [vmem:[#allocation2 + $0x90] sm:$0xff] }
 0x22c   : > { %v1569_v19 = vld [vmem:[#allocation2 + $0x88] sm:$0xff]  ;;  %v1586_v29 = vmul.f32 %v4929_v14, %v1553_v18  ;;  %v1556_v15 = vld [vmem:[#allocation2 + $0x20] sm:$0xff]  ;;  %v1701_v18 = vld [vmem:[#allocation4 + $0x98] sm:$0xff] }
 0x22d   : > { %3297 = vmatpush3.bf16.msra.mxu0 %v1219_v36  ;;  %3859 = vmatpush3.bf16.msra.mxu1 %v1219_v36  ;;  %v1602_v31 = vmul.f32 %v4929_v14, %v1569_v19  ;;  %v1682_v36 = vld [vmem:[#allocation4] sm:$0xff]  ;;  %v1699_v45 = vld [vmem:[#allocation4 + $0x88] sm:$0xff] }
 0x22e   : > { %3298 = vmatprep.subr.bf16.mxu0 %v1228_v39  ;;  %3852 = vmatprep.subr.bf16.mxu1 %v1228_v39 }
 0x231   : > { %3299 = vmatpush3.bf16.msra.mxu0 %v1220_v42  ;;  %3860 = vmatpush3.bf16.msra.mxu1 %v1220_v42  ;;  %v1554_v42 = vld [vmem:[#allocation2 + $0x10] sm:$0xff] }
 0x232   : > { %3300 = vmatprep.subr.bf16.mxu0 %v1229_v44  ;;  %3853 = vmatprep.subr.bf16.mxu1 %v1229_v44  ;;  %v1683_v44 = vld [vmem:[#allocation4 + $0x8] sm:$0xff] }
 0x235   : > { %3301 = vmatpush3.bf16.msra.mxu0 %v1221_v46  ;;  %3861 = vmatpush3.bf16.msra.mxu1 %v1221_v46 }
 0x238   : > { %1423 = vmatmul.mubr.bf16.vlgmr.msra.gmra.mrb[0].mxu0 %v4022_v47  ;;  %1487 = vmatmul.mubr.bf16.vlgmr.msra.gmra.mrb[0].mxu1 %v4025_v48 }
 0x239   : > { %1430 = vmatprep.mubr.bf16.mxu0 %v4028_v49  ;;  %1494 = vmatprep.mubr.bf16.mxu1 %v4030_v50 }
 0x240   : > { %1431 = vmatmul.mubr.bf16.gmra.mrb[4].mxu0 %v4032_v51  ;;  %1495 = vmatmul.mubr.bf16.gmra.mrb[4].mxu1 %v4033_v52  ;;  %v1555_v52 = vld [vmem:[#allocation2 + $0x18] sm:$0xff] }
 0x241   : > { %1438 = vmatprep.mubr.bf16.mxu0 %v4034_v53  ;;  %1502 = vmatprep.mubr.bf16.mxu1 %v4036_v54  ;;  %v1571_v53 = vld [vmem:[#allocation2 + $0x98] sm:$0xff] }
 0x248   : > { %1439 = vmatmul.mubr.bf16.gmra.mrb[8].mxu0 %v4038_v55  ;;  %1503 = vmatmul.mubr.bf16.gmra.mrb[8].mxu1 %v4039_v56  ;;  %v1587_v55 = vmul.f32 %v4929_v14, %v1554_v42 }
 0x249   : > { %1446 = vmatprep.mubr.bf16.mxu0 %v4040_v58  ;;  %1510 = vmatprep.mubr.bf16.mxu1 %v4042_v59  ;;  %v1603_v58 = vmul.f32 %v4929_v14, %v1570_v43 }
 0x250   : > { %1447 = vmatmul.mubr.bf16.gmra.mrb[12].mxu0 %v4044_v60  ;;  %1511 = vmatmul.mubr.bf16.gmra.mrb[12].mxu1 %v4045_v57 }
 0x251   : > { %1454 = vmatprep.mubr.bf16.mxu0 %v4046_v61  ;;  %1518 = vmatprep.mubr.bf16.mxu1 %v4048_v62 }
 0x258   : > { %1455 = vmatmul.mubr.bf16.gmra.mrb[16].mxu0 %v4050_v63  ;;  %1519 = vmatmul.mubr.bf16.gmra.mrb[16].mxu1 %v4051_v1 }
 0x259   : > { %1462 = vmatprep.mubr.bf16.mxu0 %v4052_v2  ;;  %1526 = vmatprep.mubr.bf16.mxu1 %v4054_v3  ;;  %v1588_v2 = vmul.f32 %v4929_v14, %v1555_v52  ;;  %v1574_v52 = vld [vmem:[#allocation2 + $0xb0] sm:$0xff] }
 0x260   : > { %1463 = vmatmul.mubr.bf16.gmra.mrb[20].mxu0 %v4056_v4  ;;  %1527 = vmatmul.mubr.bf16.gmra.mrb[20].mxu1 %v4057_v5  ;;  %v1604_v4 = vmul.f32 %v4929_v14, %v1571_v53  ;;  %v1687_v53 = vld [vmem:[#allocation4 + $0x28] sm:$0xff] }
 0x261   : > { %1470 = vmatprep.mubr.bf16.mxu0 %v4058_v6  ;;  %1534 = vmatprep.mubr.bf16.mxu1 %v4060_v7 }
 0x268   : > { %1471 = vmatmul.mubr.bf16.gmra.mrb[24].mxu0 %v4062_v8  ;;  %1535 = vmatmul.mubr.bf16.gmra.mrb[24].mxu1 %v4063_v0  ;;  %v1684_v0 = vld [vmem:[#allocation4 + $0x10] sm:$0xff] }
 0x269   : > { %1478 = vmatprep.mubr.bf16.mxu0 %v4064_v9  ;;  %1542 = vmatprep.mubr.bf16.mxu1 %v4066_v10  ;;  %v1700_v9 = vld [vmem:[#allocation4 + $0x90] sm:$0xff] }
 0x270   : > { %1479 = vmatmul.mubr.bf16.gmra.mrb[28].mxu0 %v4068_v11  ;;  %1543 = vmatmul.mubr.bf16.gmra.mrb[28].mxu1 %v4069_v12 }
 0x30b   : > { %v3302_v16 = vpop.f32.mrb[0].mxu0  ;;  %v3350_v17 = vpop.f32.mrb[0].mxu1 }
 0x30c   : > { %v3303_v20 = vpop.f32.mrb[1].mxu0  ;;  %v3351_v21 = vpop.f32.mrb[1].mxu1 }
 0x30d   : > { %v3304_v22 = vadd.f32 %v3303_v20, %v3302_v16  ;;  %v3352_v24 = vadd.f32 %v3351_v21, %v3350_v17  ;;  %v3305_v26 = vpop.f32.mrb[2].mxu0  ;;  %v3353_v27 = vpop.f32.mrb[2].mxu1  ;;  %v1572_v16 = vld [vmem:[#allocation2 + $0xa0] sm:$0xff]  ;;  %v1685_v17 = vld [vmem:[#allocation4 + $0x18] sm:$0xff] }
 0x30e   : > { %v3306_v28 = vpop.f32.mrb[3].mxu0  ;;  %v3354_v30 = vpop.f32.mrb[3].mxu1 }
 0x30f   : > { %v1617_v32 = vmul.f32 2.0, %v3304_v22  ;;  %v1633_v33 = vmul.f32 2.0, %v3352_v24  ;;  %v3307_v34 = vadd.f32 %v3306_v28, %v3305_v26  ;;  %v3355_v35 = vadd.f32 %v3354_v30, %v3353_v27  ;;  %v1573_v26 = vld [vmem:[#allocation2 + $0xa8] sm:$0xff] }
 0x310   : > { %v1589_v28 = vmul.f32 %v4929_v14, %v1556_v15  ;;  %v1605_v30 = vmul.f32 %v4929_v14, %v1572_v16 }
 0x311   : > { %v1649_v38 = vadd.f32 %v1617_v32, %v1585_v23  ;;  %v1665_v39 = vadd.f32 %v1633_v33, %v1601_v25  ;;  %v1618_v40 = vmul.f32 2.0, %v3307_v34  ;;  %v1634_v41 = vmul.f32 2.0, %v3355_v35  ;;  %v1557_v25 = vld [vmem:[#allocation2 + $0x28] sm:$0xff] }
 0x313   : > { %v1714_v46 = vsub.f32 %v1649_v38, %v1682_v36  ;;  %v1730_v47 = vsub.f32 %v1665_v39, %v1698_v37  ;;  %v1650_v48 = vadd.f32 %v1618_v40, %v1586_v29  ;;  %v1666_v49 = vadd.f32 %v1634_v41, %v1602_v31  ;;  %v3308_v50 = vpop.f32.mrb[4].mxu0  ;;  %v3356_v51 = vpop.f32.mrb[4].mxu1 }
 0x314   : > { %v3309_v54 = vpop.f32.mrb[5].mxu0  ;;  %v3357_v56 = vpop.f32.mrb[5].mxu1  ;;  %v1590_v38 = vmul.f32 %v4929_v14, %v1557_v25  ;;  %v1606_v40 = vmul.f32 %v4929_v14, %v1573_v26  ;;  %v1576_v25 = vld [vmem:[#allocation2 + $0xc0] sm:$0xff]  ;;  %v1689_v26 = vld [vmem:[#allocation4 + $0x38] sm:$0xff] }
 0x315   : > { %1746 = vst [vmem:[#allocation6] sm:$0xff] %v1714_v46  ;;  %1762 = vst [vmem:[#allocation6 + $0x80] sm:$0xff] %v1730_v47  ;;  %v1715_v59 = vsub.f32 %v1650_v48, %v1683_v44  ;;  %v1731_v60 = vsub.f32 %v1666_v49, %v1699_v45  ;;  %v3310_v57 = vadd.f32 %v3309_v54, %v3308_v50  ;;  %v3311_v62 = vpop.f32.mrb[6].mxu0  ;;  %v3359_v63 = vpop.f32.mrb[6].mxu1  ;;  %v1686_v45 = vld [vmem:[#allocation4 + $0x20] sm:$0xff]  ;;  %v1703_v54 = vld [vmem:[#allocation4 + $0xa8] sm:$0xff] }
 0x316   : > { %v3358_v61 = vadd.f32 %v3357_v56, %v3356_v51  ;;  %v3312_v1 = vpop.f32.mrb[7].mxu0  ;;  %v3360_v3 = vpop.f32.mrb[7].mxu1  ;;  %v1702_v46 = vld [vmem:[#allocation4 + $0xa0] sm:$0xff]  ;;  %v1558_v51 = vld [vmem:[#allocation2 + $0x30] sm:$0xff] }
 0x317   : > { %1747 = vst [vmem:[#allocation6 + $0x8] sm:$0xff] %v1715_v59  ;;  %1763 = vst [vmem:[#allocation6 + $0x88] sm:$0xff] %v1731_v60  ;;  %v1619_v5 = vmul.f32 2.0, %v3310_v57  ;;  %v3313_v7 = vadd.f32 %v3312_v1, %v3311_v62  ;;  %v3361_v8 = vadd.f32 %v3360_v3, %v3359_v63  ;;  %v1575_v62 = vld [vmem:[#allocation2 + $0xb8] sm:$0xff]  ;;  %v1591_v1 = vmul.f32 %v4929_v14, %v1558_v51 }
 0x318   : > { %v1635_v6 = vmul.f32 2.0, %v3358_v61  ;;  %v1559_v61 = vld [vmem:[#allocation2 + $0x38] sm:$0xff]  ;;  %v1607_v3 = vmul.f32 %v4929_v14, %v1574_v52 }
 0x319   : > { %v1651_v10 = vadd.f32 %v1619_v5, %v1587_v55  ;;  %v1620_v12 = vmul.f32 2.0, %v3313_v7  ;;  %v1636_v13 = vmul.f32 2.0, %v3361_v8 }
 0x31a   : > { %v1667_v11 = vadd.f32 %v1635_v6, %v1603_v58 }
 0x31b   : > { %v1716_v19 = vsub.f32 %v1651_v10, %v1684_v0  ;;  %v1652_v21 = vadd.f32 %v1620_v12, %v1588_v2  ;;  %v1668_v22 = vadd.f32 %v1636_v13, %v1604_v4  ;;  %v3314_v23 = vpop.f32.mrb[8].mxu0  ;;  %v3362_v24 = vpop.f32.mrb[8].mxu1  ;;  %v1592_v10 = vmul.f32 %v4929_v14, %v1559_v61  ;;  %v1578_v61 = vld [vmem:[#allocation2 + $0xd0] sm:$0xff] }
 0x31c   : > { %v1732_v20 = vsub.f32 %v1667_v11, %v1700_v9  ;;  %v3315_v27 = vpop.f32.mrb[9].mxu0  ;;  %v3363_v29 = vpop.f32.mrb[9].mxu1  ;;  %v1608_v12 = vmul.f32 %v4929_v14, %v1575_v62  ;;  %v1691_v62 = vld [vmem:[#allocation4 + $0x48] sm:$0xff] }
 0x31d   : > { %1748 = vst [vmem:[#allocation6 + $0x10] sm:$0xff] %v1716_v19  ;;  %v1717_v31 = vsub.f32 %v1652_v21, %v1685_v17  ;;  %v1733_v32 = vsub.f32 %v1668_v22, %v1701_v18  ;;  %v3316_v33 = vadd.f32 %v3315_v27, %v3314_v23  ;;  %v3364_v34 = vadd.f32 %v3363_v29, %v3362_v24  ;;  %v3317_v35 = vpop.f32.mrb[10].mxu0  ;;  %v3365_v36 = vpop.f32.mrb[10].mxu1  ;;  %v1688_v18 = vld [vmem:[#allocation4 + $0x30] sm:$0xff]  ;;  %v1560_v24 = vld [vmem:[#allocation2 + $0x40] sm:$0xff]  ;;  %v1705_v27 = vld [vmem:[#allocation4 + $0xb8] sm:$0xff] }
 0x31e   : > { %1764 = vst [vmem:[#allocation6 + $0x90] sm:$0xff] %v1732_v20  ;;  %v3318_v37 = vpop.f32.mrb[11].mxu0  ;;  %v3366_v39 = vpop.f32.mrb[11].mxu1  ;;  %v1704_v19 = vld [vmem:[#allocation4 + $0xb0] sm:$0xff] }
 0x31f   : > { %1749 = vst [vmem:[#allocation6 + $0x18] sm:$0xff] %v1717_v31  ;;  %1765 = vst [vmem:[#allocation6 + $0x98] sm:$0xff] %v1733_v32  ;;  %v1621_v41 = vmul.f32 2.0, %v3316_v33  ;;  %v1637_v42 = vmul.f32 2.0, %v3364_v34  ;;  %v3319_v43 = vadd.f32 %v3318_v37, %v3317_v35  ;;  %v3367_v44 = vadd.f32 %v3366_v39, %v3365_v36  ;;  %v1561_v34 = vld [vmem:[#allocation2 + $0x48] sm:$0xff] }
 0x320   : > { %v1577_v35 = vld [vmem:[#allocation2 + $0xc8] sm:$0xff]  ;;  %v1593_v37 = vmul.f32 %v4929_v14, %v1560_v24  ;;  %v1609_v39 = vmul.f32 %v4929_v14, %v1576_v25 }
 0x321   : > { %v1653_v47 = vadd.f32 %v1621_v41, %v1589_v28  ;;  %v1669_v48 = vadd.f32 %v1637_v42, %v1605_v30  ;;  %v1622_v49 = vmul.f32 2.0, %v3319_v43  ;;  %v1638_v50 = vmul.f32 2.0, %v3367_v44 }
 0x323   : > { %v1718_v55 = vsub.f32 %v1653_v47, %v1686_v45  ;;  %v1734_v56 = vsub.f32 %v1669_v48, %v1702_v46  ;;  %v1654_v58 = vadd.f32 %v1622_v49, %v1590_v38  ;;  %v1670_v59 = vadd.f32 %v1638_v50, %v1606_v40  ;;  %v3320_v60 = vpop.f32.mrb[12].mxu0  ;;  %v3368_v57 = vpop.f32.mrb[12].mxu1 }
 0x324   : > { %v3321_v63 = vpop.f32.mrb[13].mxu0  ;;  %v3369_v2 = vpop.f32.mrb[13].mxu1  ;;  %v1594_v47 = vmul.f32 %v4929_v14, %v1561_v34  ;;  %v1610_v49 = vmul.f32 %v4929_v14, %v1577_v35  ;;  %v1580_v34 = vld [vmem:[#allocation2 + $0xe0] sm:$0xff]  ;;  %v1693_v35 = vld [vmem:[#allocation4 + $0x58] sm:$0xff] }
 0x325   : > { %1750 = vst [vmem:[#allocation6 + $0x20] sm:$0xff] %v1718_v55  ;;  %1766 = vst [vmem:[#allocation6 + $0xa0] sm:$0xff] %v1734_v56  ;;  %v1719_v4 = vsub.f32 %v1654_v58, %v1687_v53  ;;  %v1735_v5 = vsub.f32 %v1670_v59, %v1703_v54  ;;  %v3322_v6 = vadd.f32 %v3321_v63, %v3320_v60  ;;  %v3323_v8 = vpop.f32.mrb[14].mxu0  ;;  %v3371_v0 = vpop.f32.mrb[14].mxu1  ;;  %v1690_v54 = vld [vmem:[#allocation4 + $0x40] sm:$0xff]  ;;  %v1707_v63 = vld [vmem:[#allocation4 + $0xc8] sm:$0xff] }
 0x326   : > { %v3370_v7 = vadd.f32 %v3369_v2, %v3368_v57  ;;  %v3324_v9 = vpop.f32.mrb[15].mxu0  ;;  %v3372_v11 = vpop.f32.mrb[15].mxu1  ;;  %v1706_v55 = vld [vmem:[#allocation4 + $0xc0] sm:$0xff]  ;;  %v1562_v57 = vld [vmem:[#allocation2 + $0x50] sm:$0xff] }
 0x327   : > { %1751 = vst [vmem:[#allocation6 + $0x28] sm:$0xff] %v1719_v4  ;;  %1767 = vst [vmem:[#allocation6 + $0xa8] sm:$0xff] %v1735_v5  ;;  %v1623_v13 = vmul.f32 2.0, %v3322_v6  ;;  %v3325_v16 = vadd.f32 %v3324_v9, %v3323_v8  ;;  %v3373_v17 = vadd.f32 %v3372_v11, %v3371_v0  ;;  %v1579_v8 = vld [vmem:[#allocation2 + $0xd8] sm:$0xff]  ;;  %v1595_v9 = vmul.f32 %v4929_v14, %v1562_v57 }
 0x328   : > { %v1639_v15 = vmul.f32 2.0, %v3370_v7  ;;  %v1563_v7 = vld [vmem:[#allocation2 + $0x58] sm:$0xff]  ;;  %v1611_v11 = vmul.f32 %v4929_v14, %v1578_v61 }
 0x329   : > { %v1655_v20 = vadd.f32 %v1623_v13, %v1591_v1  ;;  %v1624_v22 = vmul.f32 2.0, %v3325_v16  ;;  %v1640_v23 = vmul.f32 2.0, %v3373_v17 }
 0x32a   : > { %v1671_v21 = vadd.f32 %v1639_v15, %v1607_v3 }
 0x32b   : > { %v1720_v28 = vsub.f32 %v1655_v20, %v1688_v18  ;;  %v1656_v30 = vadd.f32 %v1624_v22, %v1592_v10  ;;  %v1672_v31 = vadd.f32 %v1640_v23, %v1608_v12  ;;  %v3326_v32 = vpop.f32.mrb[16].mxu0  ;;  %v3374_v33 = vpop.f32.mrb[16].mxu1  ;;  %v1596_v20 = vmul.f32 %v4929_v14, %v1563_v7  ;;  %v1582_v7 = vld [vmem:[#allocation2 + $0xf0] sm:$0xff] }
 0x32c   : > { %v1736_v29 = vsub.f32 %v1671_v21, %v1704_v19  ;;  %v3327_v36 = vpop.f32.mrb[17].mxu0  ;;  %v3375_v38 = vpop.f32.mrb[17].mxu1  ;;  %v1612_v22 = vmul.f32 %v4929_v14, %v1579_v8  ;;  %v1695_v8 = vld [vmem:[#allocation4 + $0x68] sm:$0xff] }
 0x32d   : > { %1752 = vst [vmem:[#allocation6 + $0x30] sm:$0xff] %v1720_v28  ;;  %v1721_v40 = vsub.f32 %v1656_v30, %v1689_v26  ;;  %v1737_v41 = vsub.f32 %v1672_v31, %v1705_v27  ;;  %v3328_v42 = vadd.f32 %v3327_v36, %v3326_v32  ;;  %v3376_v43 = vadd.f32 %v3375_v38, %v3374_v33  ;;  %v3329_v44 = vpop.f32.mrb[18].mxu0  ;;  %v3377_v45 = vpop.f32.mrb[18].mxu1  ;;  %v1692_v27 = vld [vmem:[#allocation4 + $0x50] sm:$0xff]  ;;  %v1564_v33 = vld [vmem:[#allocation2 + $0x60] sm:$0xff]  ;;  %v1709_v36 = vld [vmem:[#allocation4 + $0xd8] sm:$0xff] }
 0x32e   : > { %1768 = vst [vmem:[#allocation6 + $0xb0] sm:$0xff] %v1736_v29  ;;  %v3330_v46 = vpop.f32.mrb[19].mxu0  ;;  %v3378_v48 = vpop.f32.mrb[19].mxu1  ;;  %v1708_v28 = vld [vmem:[#allocation4 + $0xd0] sm:$0xff] }
 0x32f   : > { %1753 = vst [vmem:[#allocation6 + $0x38] sm:$0xff] %v1721_v40  ;;  %1769 = vst [vmem:[#allocation6 + $0xb8] sm:$0xff] %v1737_v41  ;;  %v1625_v50 = vmul.f32 2.0, %v3328_v42  ;;  %v1641_v51 = vmul.f32 2.0, %v3376_v43  ;;  %v3331_v52 = vadd.f32 %v3330_v46, %v3329_v44  ;;  %v3379_v53 = vadd.f32 %v3378_v48, %v3377_v45  ;;  %v1565_v43 = vld [vmem:[#allocation2 + $0x68] sm:$0xff] }
 0x330   : > { %v1581_v44 = vld [vmem:[#allocation2 + $0xe8] sm:$0xff]  ;;  %v1597_v46 = vmul.f32 %v4929_v14, %v1564_v33  ;;  %v1613_v48 = vmul.f32 %v4929_v14, %v1580_v34 }
 0x331   : > { %v1657_v56 = vadd.f32 %v1625_v50, %v1593_v37  ;;  %v1673_v58 = vadd.f32 %v1641_v51, %v1609_v39  ;;  %v1626_v59 = vmul.f32 2.0, %v3331_v52  ;;  %v1642_v60 = vmul.f32 2.0, %v3379_v53 }
 0x333   : > { %v1722_v1 = vsub.f32 %v1657_v56, %v1690_v54  ;;  %v1738_v2 = vsub.f32 %v1673_v58, %v1706_v55  ;;  %v1658_v3 = vadd.f32 %v1626_v59, %v1594_v47  ;;  %v1674_v4 = vadd.f32 %v1642_v60, %v1610_v49  ;;  %v3332_v5 = vpop.f32.mrb[20].mxu0  ;;  %v3380_v6 = vpop.f32.mrb[20].mxu1 }
 0x334   : > { %v3333_v0 = vpop.f32.mrb[21].mxu0  ;;  %v3381_v10 = vpop.f32.mrb[21].mxu1  ;;  %v1598_v56 = vmul.f32 %v4929_v14, %v1565_v43  ;;  %v1614_v59 = vmul.f32 %v4929_v14, %v1581_v44  ;;  %v1713_v43 = vld [vmem:[#allocation4 + $0xf8] sm:$0xff] }
 0x335   : > { %1754 = vst [vmem:[#allocation6 + $0x40] sm:$0xff] %v1722_v1  ;;  %1770 = vst [vmem:[#allocation6 + $0xc0] sm:$0xff] %v1738_v2  ;;  %v1723_v12 = vsub.f32 %v1658_v3, %v1691_v62  ;;  %v1739_v13 = vsub.f32 %v1674_v4, %v1707_v63  ;;  %v3334_v15 = vadd.f32 %v3333_v0, %v3332_v5  ;;  %v3335_v17 = vpop.f32.mrb[22].mxu0  ;;  %v3383_v18 = vpop.f32.mrb[22].mxu1  ;;  %v1694_v63 = vld [vmem:[#allocation4 + $0x60] sm:$0xff]  ;;  %v1711_v0 = vld [vmem:[#allocation4 + $0xe8] sm:$0xff] }
 0x336   : > { %v3382_v16 = vadd.f32 %v3381_v10, %v3380_v6  ;;  %v3336_v19 = vpop.f32.mrb[23].mxu0  ;;  %v3384_v21 = vpop.f32.mrb[23].mxu1  ;;  %v1710_v1 = vld [vmem:[#allocation4 + $0xe0] sm:$0xff]  ;;  %v1566_v6 = vld [vmem:[#allocation2 + $0x70] sm:$0xff] }
 0x337   : > { %1755 = vst [vmem:[#allocation6 + $0x48] sm:$0xff] %v1723_v12  ;;  %1771 = vst [vmem:[#allocation6 + $0xc8] sm:$0xff] %v1739_v13  ;;  %v1627_v23 = vmul.f32 2.0, %v3334_v15  ;;  %v3337_v25 = vadd.f32 %v3336_v19, %v3335_v17  ;;  %v3385_v26 = vadd.f32 %v3384_v21, %v3383_v18  ;;  %v1583_v17 = vld [vmem:[#allocation2 + $0xf8] sm:$0xff]  ;;  %v1599_v19 = vmul.f32 %v4929_v14, %v1566_v6 }
 0x338   : > { %v1643_v24 = vmul.f32 2.0, %v3382_v16  ;;  %v1567_v16 = vld [vmem:[#allocation2 + $0x78] sm:$0xff]  ;;  %v1615_v21 = vmul.f32 %v4929_v14, %v1582_v7 }
 0x339   : > { %v1659_v29 = vadd.f32 %v1627_v23, %v1595_v9  ;;  %v1628_v31 = vmul.f32 2.0, %v3337_v25  ;;  %v1644_v32 = vmul.f32 2.0, %v3385_v26 }
 0x33a   : > { %v1675_v30 = vadd.f32 %v1643_v24, %v1611_v11 }
 0x33b   : > { %v1724_v37 = vsub.f32 %v1659_v29, %v1692_v27  ;;  %v1660_v39 = vadd.f32 %v1628_v31, %v1596_v20  ;;  %v1676_v40 = vadd.f32 %v1644_v32, %v1612_v22  ;;  %v3338_v41 = vpop.f32.mrb[24].mxu0  ;;  %v3386_v42 = vpop.f32.mrb[24].mxu1  ;;  %v1600_v29 = vmul.f32 %v4929_v14, %v1567_v16 }
 0x33c   : > { %v1740_v38 = vsub.f32 %v1675_v30, %v1708_v28  ;;  %v3339_v45 = vpop.f32.mrb[25].mxu0  ;;  %v3387_v47 = vpop.f32.mrb[25].mxu1  ;;  %v1616_v31 = vmul.f32 %v4929_v14, %v1583_v17 }
 0x33d   : > { %1756 = vst [vmem:[#allocation6 + $0x50] sm:$0xff] %v1724_v37  ;;  %v1725_v49 = vsub.f32 %v1660_v39, %v1693_v35  ;;  %v1741_v50 = vsub.f32 %v1676_v40, %v1709_v36  ;;  %v3340_v51 = vadd.f32 %v3339_v45, %v3338_v41  ;;  %v3388_v52 = vadd.f32 %v3387_v47, %v3386_v42  ;;  %v3341_v53 = vpop.f32.mrb[26].mxu0  ;;  %v3389_v54 = vpop.f32.mrb[26].mxu1  ;;  %v1696_v36 = vld [vmem:[#allocation4 + $0x70] sm:$0xff]  ;;  %v1697_v42 = vld [vmem:[#allocation4 + $0x78] sm:$0xff] }
 0x33e   : > { %1772 = vst [vmem:[#allocation6 + $0xd0] sm:$0xff] %v1740_v38  ;;  %v3342_v55 = vpop.f32.mrb[27].mxu0  ;;  %v3390_v58 = vpop.f32.mrb[27].mxu1  ;;  %v1712_v37 = vld [vmem:[#allocation4 + $0xf0] sm:$0xff] }
 0x33f   : > { %1757 = vst [vmem:[#allocation6 + $0x58] sm:$0xff] %v1725_v49  ;;  %1773 = vst [vmem:[#allocation6 + $0xd8] sm:$0xff] %v1741_v50  ;;  %v1629_v60 = vmul.f32 2.0, %v3340_v51  ;;  %v1645_v57 = vmul.f32 2.0, %v3388_v52  ;;  %v3343_v61 = vadd.f32 %v3342_v55, %v3341_v53  ;;  %v3391_v62 = vadd.f32 %v3390_v58, %v3389_v54 }
 0x341   : > { %v1661_v2 = vadd.f32 %v1629_v60, %v1597_v46  ;;  %v1677_v3 = vadd.f32 %v1645_v57, %v1613_v48  ;;  %v1630_v4 = vmul.f32 2.0, %v3343_v61  ;;  %v1646_v5 = vmul.f32 2.0, %v3391_v62 }
 0x343   : > { %v1726_v9 = vsub.f32 %v1661_v2, %v1694_v63  ;;  %v1742_v10 = vsub.f32 %v1677_v3, %v1710_v1  ;;  %v1662_v11 = vadd.f32 %v1630_v4, %v1598_v56  ;;  %v1678_v12 = vadd.f32 %v1646_v5, %v1614_v59  ;;  %v3344_v13 = vpop.f32.mrb[28].mxu0  ;;  %v3392_v15 = vpop.f32.mrb[28].mxu1 }
 0x344   : > { %v3345_v18 = vpop.f32.mrb[29].mxu0  ;;  %v3393_v20 = vpop.f32.mrb[29].mxu1 }
 0x345   : > { %1758 = vst [vmem:[#allocation6 + $0x60] sm:$0xff] %v1726_v9  ;;  %1774 = vst [vmem:[#allocation6 + $0xe0] sm:$0xff] %v1742_v10  ;;  %v1727_v22 = vsub.f32 %v1662_v11, %v1695_v8  ;;  %v1743_v23 = vsub.f32 %v1678_v12, %v1711_v0  ;;  %v3346_v24 = vadd.f32 %v3345_v18, %v3344_v13  ;;  %v3347_v26 = vpop.f32.mrb[30].mxu0  ;;  %v3395_v27 = vpop.f32.mrb[30].mxu1 }
 0x346   : > { %v3394_v25 = vadd.f32 %v3393_v20, %v3392_v15  ;;  %v3348_v28 = vpop.f32.mrb[31].mxu0  ;;  %v3396_v30 = vpop.f32.mrb[31].mxu1 }
 0x347   : > { %1759 = vst [vmem:[#allocation6 + $0x68] sm:$0xff] %v1727_v22  ;;  %1775 = vst [vmem:[#allocation6 + $0xe8] sm:$0xff] %v1743_v23  ;;  %v1631_v32 = vmul.f32 2.0, %v3346_v24  ;;  %v3349_v34 = vadd.f32 %v3348_v28, %v3347_v26  ;;  %v3397_v35 = vadd.f32 %v3396_v30, %v3395_v27 }
 0x348   : > { %v1647_v33 = vmul.f32 2.0, %v3394_v25 }
 0x349   : > { %v1663_v38 = vadd.f32 %v1631_v32, %v1599_v19  ;;  %v1632_v40 = vmul.f32 2.0, %v3349_v34  ;;  %v1648_v41 = vmul.f32 2.0, %v3397_v35 }
 0x34a   : > { %v1679_v39 = vadd.f32 %v1647_v33, %v1615_v21 }
 0x34b   : > { %v1728_v44 = vsub.f32 %v1663_v38, %v1696_v36  ;;  %v1664_v46 = vadd.f32 %v1632_v40, %v1600_v29  ;;  %v1680_v47 = vadd.f32 %v1648_v41, %v1616_v31 }
 0x34c   : > { %v1744_v45 = vsub.f32 %v1679_v39, %v1712_v37 }
 0x34d   : > { %1760 = vst [vmem:[#allocation6 + $0x70] sm:$0xff] %v1728_v44  ;;  %v1729_v14 = vsub.f32 %v1664_v46, %v1697_v42  ;;  %v1745_v48 = vsub.f32 %v1680_v47, %v1713_v43 }
 0x34e   : > { %1776 = vst [vmem:[#allocation6 + $0xf0] sm:$0xff] %v1744_v45 }
 0x34f   : > { %1761 = vst [vmem:[#allocation6 + $0x78] sm:$0xff] %v1729_v14  ;;  %1777 = vst [vmem:[#allocation6 + $0xf8] sm:$0xff] %v1745_v48 }
 0x350 PF: > { %v1810_v49 = vld [vmem:[%s4829_s0] sm:$0xff]  ;;  %v1811_v50 = vld [vmem:[%s4829_s0 + $0x8] sm:$0xff]  ;;  %v1812_v51 = vld [vmem:[%s4829_s0 + $0x10] sm:$0xff]  ;;  %s2091_s5 = ssub.f32 1.0, %s4844_s28  ;;  %p2157_p2 = scmp.lt.s32.totalorder %s4464_s16, 3 }
 0x351   : > { %v3766_v52 = vpack.c.bf16 %v1811_v50, %v1810_v49  ;;  %v1813_v53 = vld [vmem:[%s4829_s0 + $0x18] sm:$0xff]  ;;  %v1814_v55 = vld [vmem:[%s4829_s0 + $0x20] sm:$0xff]  ;;  %v1815_v56 = vld [vmem:[%s4829_s0 + $0x28] sm:$0xff]  ;;  %p3230_p3 = scmp.ne.s32.totalorder %s4464_s16, 4 }
 0x352   : > { %v3770_v54 = vpack.c.bf16 %v1813_v53, %v1812_v51  ;;  %v3774_v58 = vpack.c.bf16 %v1815_v56, %v1814_v55  ;;  %v4969_v59 = vld [vmem:[#allocation6] sm:$0xff]  ;;  %v1816_v57 = vld [vmem:[%s4829_s0 + $0x30] sm:$0xff]  ;;  %v1817_v61 = vld [vmem:[%s4829_s0 + $0x38] sm:$0xff]  ;;  %v2092_v42 = vstv %s2091_s5  ;;  %s5029_s22 = scalar_select %p2157_p2, 1, 0 }
 0x353   : > { %3767 = vmatprep.subr.bf16.mxu0 %v3766_v52  ;;  %3862 = vmatprep.subr.bf16.mxu1 %v3766_v52  ;;  %v4971_v60 = vld [vmem:[#allocation6 + $0x80] sm:$0xff]  ;;  %v3778_v62 = vpack.c.bf16 %v1817_v61, %v1816_v57  ;;  %v1819_v1 = vld [vmem:[%s4829_s0 + $0x48] sm:$0xff]  ;;  %v1820_v3 = vld [vmem:[%s4829_s0 + $0x50] sm:$0xff]  ;;  %v2093_v43 = vmul.f32 %v2092_v42, %v4969_v59 }
 0x354   : > { %3769 = vmatpush3.bf16.msra.mxu0 %v3766_v52  ;;  %3870 = vmatpush3.bf16.msra.mxu1 %v3766_v52  ;;  %v1818_v63 = vld [vmem:[%s4829_s0 + $0x40] sm:$0xff]  ;;  %v1821_v4 = vld [vmem:[%s4829_s0 + $0x58] sm:$0xff]  ;;  %v1823_v7 = vld [vmem:[%s4829_s0 + $0x68] sm:$0xff]  ;;  %v2109_v44 = vmul.f32 %v2092_v42, %v4971_v60 }
 0x355   : > { %3771 = vmatprep.subr.bf16.mxu0 %v3770_v54  ;;  %3863 = vmatprep.subr.bf16.mxu1 %v3770_v54  ;;  %v3782_v2 = vpack.c.bf16 %v1819_v1, %v1818_v63  ;;  %v3786_v5 = vpack.c.bf16 %v1821_v4, %v1820_v3  ;;  %v1822_v6 = vld [vmem:[%s4829_s0 + $0x60] sm:$0xff]  ;;  %v1824_v0 = vld [vmem:[%s4829_s0 + $0x70] sm:$0xff]  ;;  %v1825_v9 = vld [vmem:[%s4829_s0 + $0x78] sm:$0xff] }
 0x356   : > { %3606 = vmatprep.mubr.f32.mxu0 %v4969_v59  ;;  %3630 = vmatprep.mubr.f32.mxu1 %v4971_v60  ;;  %v3790_v8 = vpack.c.bf16 %v1823_v7, %v1822_v6  ;;  %v3794_v10 = vpack.c.bf16 %v1825_v9, %v1824_v0  ;;  %v4985_v11 = vld [vmem:[#allocation6 + $0x8] sm:$0xff]  ;;  %v4989_v13 = vld [vmem:[#allocation6 + $0x10] sm:$0xff]  ;;  %v1781_v16 = vld [vmem:[#allocation6 + $0x18] sm:$0xff]  ;;  %v5061_v7 = vstv %s4844_s28 }
 0x357   : > { %v4987_v12 = vld [vmem:[#allocation6 + $0x88] sm:$0xff]  ;;  %v4991_v15 = vld [vmem:[#allocation6 + $0x90] sm:$0xff]  ;;  %v1797_v17 = vld [vmem:[#allocation6 + $0x98] sm:$0xff]  ;;  %v2094_v45 = vmul.f32 %v2092_v42, %v4985_v11  ;;  %v5004_v47 = vmul.f32 %v2092_v42, %v4989_v13  ;;  %v5009_v48 = vmul.f32 %v2092_v42, %v1781_v16 }
 0x358   : > { %3773 = vmatpush3.bf16.msra.mxu0 %v3770_v54  ;;  %3871 = vmatpush3.bf16.msra.mxu1 %v3770_v54  ;;  %v1782_v18 = vld [vmem:[#allocation6 + $0x20] sm:$0xff]  ;;  %v1783_v20 = vld [vmem:[#allocation6 + $0x28] sm:$0xff]  ;;  %v1784_v22 = vld [vmem:[#allocation6 + $0x30] sm:$0xff]  ;;  %v2110_v46 = vmul.f32 %v2092_v42, %v4987_v12  ;;  %v5007_v14 = vmul.f32 %v2092_v42, %v4991_v15  ;;  %v5011_v49 = vmul.f32 %v2092_v42, %v1797_v17 }
 0x359   : > { %3775 = vmatprep.subr.bf16.mxu0 %v3774_v58  ;;  %3864 = vmatprep.subr.bf16.mxu1 %v3774_v58  ;;  %v1798_v19 = vld [vmem:[#allocation6 + $0xa0] sm:$0xff]  ;;  %v1799_v21 = vld [vmem:[#allocation6 + $0xa8] sm:$0xff]  ;;  %v1800_v23 = vld [vmem:[#allocation6 + $0xb0] sm:$0xff]  ;;  %v5013_v50 = vmul.f32 %v2092_v42, %v1782_v18  ;;  %v5017_v52 = vmul.f32 %v2092_v42, %v1783_v20  ;;  %v5021_v54 = vmul.f32 %v2092_v42, %v1784_v22 }
 0x35a   : > { %v1785_v24 = vld [vmem:[#allocation6 + $0x38] sm:$0xff]  ;;  %v1786_v26 = vld [vmem:[#allocation6 + $0x40] sm:$0xff]  ;;  %v1787_v28 = vld [vmem:[#allocation6 + $0x48] sm:$0xff]  ;;  %v5015_v51 = vmul.f32 %v2092_v42, %v1798_v19  ;;  %v5019_v53 = vmul.f32 %v2092_v42, %v1799_v21  ;;  %v5023_v55 = vmul.f32 %v2092_v42, %v1800_v23 }
 0x35b   : > { %v1801_v25 = vld [vmem:[#allocation6 + $0xb8] sm:$0xff]  ;;  %v1802_v27 = vld [vmem:[#allocation6 + $0xc0] sm:$0xff]  ;;  %v1803_v29 = vld [vmem:[#allocation6 + $0xc8] sm:$0xff]  ;;  %v5025_v56 = vmul.f32 %v2092_v42, %v1785_v24  ;;  %v5033_v59 = vmul.f32 %v2092_v42, %v1786_v26  ;;  %v5037_v57 = vmul.f32 %v2092_v42, %v1787_v28 }
 0x35c   : > { %3777 = vmatpush3.bf16.msra.mxu0 %v3774_v58  ;;  %3872 = vmatpush3.bf16.msra.mxu1 %v3774_v58  ;;  %v1788_v30 = vld [vmem:[#allocation6 + $0x50] sm:$0xff]  ;;  %v1789_v32 = vld [vmem:[#allocation6 + $0x58] sm:$0xff]  ;;  %v1790_v34 = vld [vmem:[#allocation6 + $0x60] sm:$0xff]  ;;  %v5031_v58 = vmul.f32 %v2092_v42, %v1801_v25  ;;  %v5035_v60 = vmul.f32 %v2092_v42, %v1802_v27 }
 0x35d   : > { %3779 = vmatprep.subr.bf16.mxu0 %v3778_v62  ;;  %3865 = vmatprep.subr.bf16.mxu1 %v3778_v62  ;;  %v1804_v31 = vld [vmem:[#allocation6 + $0xd0] sm:$0xff]  ;;  %v1805_v33 = vld [vmem:[#allocation6 + $0xd8] sm:$0xff]  ;;  %v1806_v35 = vld [vmem:[#allocation6 + $0xe0] sm:$0xff]  ;;  %v5048_v63 = vmul.f32 %v2092_v42, %v1788_v30  ;;  %v5056_v4 = vmul.f32 %v2092_v42, %v1790_v34 }
 0x35e   : > { %v1791_v36 = vld [vmem:[#allocation6 + $0x68] sm:$0xff]  ;;  %v1792_v38 = vld [vmem:[#allocation6 + $0x70] sm:$0xff]  ;;  %v1793_v40 = vld [vmem:[#allocation6 + $0x78] sm:$0xff]  ;;  %v5050_v1 = vmul.f32 %v2092_v42, %v1804_v31  ;;  %v5054_v3 = vmul.f32 %v2092_v42, %v1805_v33 }
 0x35f   : > { %v1807_v37 = vld [vmem:[#allocation6 + $0xe8] sm:$0xff]  ;;  %v1808_v39 = vld [vmem:[#allocation6 + $0xf0] sm:$0xff]  ;;  %v1809_v41 = vld [vmem:[#allocation6 + $0xf8] sm:$0xff]  ;;  %v5063_v0 = vmul.f32 %v2092_v42, %v1791_v36 }
 0x360   : > { %3781 = vmatpush3.bf16.msra.mxu0 %v3778_v62  ;;  %3873 = vmatpush3.bf16.msra.mxu1 %v3778_v62  ;;  %v5044_v61 = vld [vmem:[%s560_s10] ss:$0 sm:$0xff]  ;;  %v5046_v62 = vmul.f32 %v2092_v42, %v1803_v29 }
 0x361   : > { %3783 = vmatprep.subr.bf16.mxu0 %v3782_v2  ;;  %3866 = vmatprep.subr.bf16.mxu1 %v3782_v2 }
 0x364   : > { %3785 = vmatpush3.bf16.msra.mxu0 %v3782_v2  ;;  %3874 = vmatpush3.bf16.msra.mxu1 %v3782_v2  ;;  %v5052_v2 = vmul.f32 %v2092_v42, %v1789_v32 }
 0x365   : > { %3787 = vmatprep.subr.bf16.mxu0 %v3786_v5  ;;  %3867 = vmatprep.subr.bf16.mxu1 %v3786_v5 }
 0x368   : > { %3789 = vmatpush3.bf16.msra.mxu0 %v3786_v5  ;;  %3875 = vmatpush3.bf16.msra.mxu1 %v3786_v5  ;;  %v5058_v5 = vmul.f32 %v2092_v42, %v1806_v35 }
 0x369   : > { %3791 = vmatprep.subr.bf16.mxu0 %v3790_v8  ;;  %3868 = vmatprep.subr.bf16.mxu1 %v3790_v8 }
 0x36c   : > { %3793 = vmatpush3.bf16.msra.mxu0 %v3790_v8  ;;  %3876 = vmatpush3.bf16.msra.mxu1 %v3790_v8 }
 0x36d   : > { %3795 = vmatprep.subr.bf16.mxu0 %v3794_v10  ;;  %3869 = vmatprep.subr.bf16.mxu1 %v3794_v10 }
 0x370   : > { %3797 = vmatpush3.bf16.msra.mxu0 %v3794_v10  ;;  %3877 = vmatpush3.bf16.msra.mxu1 %v3794_v10  ;;  %v2191_v10 = vstv %s5029_s22 }
 0x371   : > { %vm5082_vm0 = vcmp.eq.s32.totalorder %v2191_v10, 1 }
 0x373   : > { %3607 = vmatmul.mubr.f32.vlgmr.msra.gmra.mrb[0].mxu0 %v4985_v11  ;;  %3631 = vmatmul.mubr.f32.vlgmr.msra.gmra.mrb[0].mxu1 %v4987_v12 }
 0x374   : > { %3609 = vmatprep.mubr.f32.mxu0 %v4989_v13  ;;  %3633 = vmatprep.mubr.f32.mxu1 %v4991_v15  ;;  %v5068_v15 = vmul.f32 %v2092_v42, %v1807_v37 }
 0x377   : > { %3610 = vmatmul.mubr.f32.gmra.mrb[2].mxu0 %v1781_v16  ;;  %3634 = vmatmul.mubr.f32.gmra.mrb[2].mxu1 %v1797_v17  ;;  %v5070_v16 = vmul.f32 %v2092_v42, %v1792_v38 }
 0x378   : > { %3612 = vmatprep.mubr.f32.mxu0 %v1782_v18  ;;  %3636 = vmatprep.mubr.f32.mxu1 %v1798_v19  ;;  %v5074_v19 = vmul.f32 %v2092_v42, %v1808_v39 }
 0x37b   : > { %3613 = vmatmul.mubr.f32.gmra.mrb[4].mxu0 %v1783_v20  ;;  %3637 = vmatmul.mubr.f32.gmra.mrb[4].mxu1 %v1799_v21  ;;  %v5076_v20 = vmul.f32 %v2092_v42, %v1793_v40 }
 0x37c   : > { %3615 = vmatprep.mubr.f32.mxu0 %v1784_v22  ;;  %3639 = vmatprep.mubr.f32.mxu1 %v1800_v23  ;;  %v5080_v23 = vmul.f32 %v2092_v42, %v1809_v41 }
 0x37f   : > { %3616 = vmatmul.mubr.f32.gmra.mrb[6].mxu0 %v1785_v24  ;;  %3640 = vmatmul.mubr.f32.gmra.mrb[6].mxu1 %v1801_v25 }
 0x380   : > { %3618 = vmatprep.mubr.f32.mxu0 %v1786_v26  ;;  %3642 = vmatprep.mubr.f32.mxu1 %v1802_v27 }
 0x383   : > { %3619 = vmatmul.mubr.f32.gmra.mrb[8].mxu0 %v1787_v28  ;;  %3643 = vmatmul.mubr.f32.gmra.mrb[8].mxu1 %v1803_v29 }
 0x384   : > { %3621 = vmatprep.mubr.f32.mxu0 %v1788_v30  ;;  %3645 = vmatprep.mubr.f32.mxu1 %v1804_v31 }
 0x387   : > { %3622 = vmatmul.mubr.f32.gmra.mrb[10].mxu0 %v1789_v32  ;;  %3646 = vmatmul.mubr.f32.gmra.mrb[10].mxu1 %v1805_v33 }
 0x388   : > { %3624 = vmatprep.mubr.f32.mxu0 %v1790_v34  ;;  %3648 = vmatprep.mubr.f32.mxu1 %v1806_v35 }
 0x38b   : > { %3625 = vmatmul.mubr.f32.gmra.mrb[12].mxu0 %v1791_v36  ;;  %3649 = vmatmul.mubr.f32.gmra.mrb[12].mxu1 %v1807_v37 }
 0x38c   : > { %3627 = vmatprep.mubr.f32.mxu0 %v1792_v38  ;;  %3651 = vmatprep.mubr.f32.mxu1 %v1808_v39 }
 0x38f   : > { %3628 = vmatmul.mubr.f32.gmra.mrb[14].mxu0 %v1793_v40  ;;  %3652 = vmatmul.mubr.f32.gmra.mrb[14].mxu1 %v1809_v41 }
 0x446   : > { %v3608_v6 = vpop.f32.mrb[0].mxu0  ;;  %v3632_v8 = vpop.f32.mrb[0].mxu1 }
 0x447   : > { %v1905_v9 = vadd.f32 %v3608_v6, %v5044_v61  ;;  %v1985_v11 = vadd.f32 %v3632_v8, %v5044_v61  ;;  %v1899_v12 = vpop.f32.mrb[1].mxu0  ;;  %v1979_v13 = vpop.f32.mrb[1].mxu1 }
 0x448   : > { %v1900_v17 = vadd.f32 %v5044_v61, %v1899_v12  ;;  %v1980_v18 = vadd.f32 %v5044_v61, %v1979_v13 }
 0x449   : > { %v2060_v21 = vmul.f32 %v5061_v7, %v1905_v9  ;;  %v2076_v22 = vmul.f32 %v5061_v7, %v1985_v11 }
 0x44a   : > { %v2059_v25 = vmul.f32 %v5061_v7, %v1900_v17  ;;  %v2075_v26 = vmul.f32 %v5061_v7, %v1980_v18  ;;  %v3611_v27 = vpop.f32.mrb[2].mxu0  ;;  %v3635_v28 = vpop.f32.mrb[2].mxu1 }
 0x44b   : > { %v2126_v29 = vadd.f32 %v2094_v45, %v2060_v21  ;;  %v2142_v30 = vadd.f32 %v2110_v46, %v2076_v22  ;;  %v1915_v31 = vadd.f32 %v3611_v27, %v5044_v61  ;;  %v1995_v32 = vadd.f32 %v3635_v28, %v5044_v61  ;;  %v1909_v33 = vpop.f32.mrb[3].mxu0  ;;  %v1989_v34 = vpop.f32.mrb[3].mxu1 }
 0x44c   : > { %v2125_v35 = vadd.f32 %v2093_v43, %v2059_v25  ;;  %v2141_v36 = vadd.f32 %v2109_v44, %v2075_v26  ;;  %v1910_v37 = vadd.f32 %v5044_v61, %v1909_v33  ;;  %v1990_v38 = vadd.f32 %v5044_v61, %v1989_v34 }
 0x44d   : > { %v2159_v39 = vmax.f32 %v2126_v29, 0.0  ;;  %v2175_v40 = vmax.f32 %v2142_v30, 0.0  ;;  %v2062_v41 = vmul.f32 %v5061_v7, %v1915_v31  ;;  %v2078_v42 = vmul.f32 %v5061_v7, %v1995_v32 }
 0x44e   : > { %v2158_v45 = vmax.f32 %v2125_v35, 0.0  ;;  %v2174_v46 = vmax.f32 %v2141_v36, 0.0  ;;  %v2061_v6 = vmul.f32 %v5061_v7, %v1910_v37  ;;  %v2077_v8 = vmul.f32 %v5061_v7, %v1990_v38  ;;  %v3614_v9 = vpop.f32.mrb[4].mxu0  ;;  %v3638_v10 = vpop.f32.mrb[4].mxu1 }
 0x44f   : > { %v5098_v43 = vsel %vm5082_vm0, %v2159_v39, %v2126_v29  ;;  %v5102_v44 = vsel %vm5082_vm0, %v2175_v40, %v2142_v30  ;;  %v2128_v11 = vadd.f32 %v5009_v48, %v2062_v41  ;;  %v2144_v12 = vadd.f32 %v5011_v49, %v2078_v42  ;;  %v1919_v13 = vpop.f32.mrb[5].mxu0  ;;  %v1999_v17 = vpop.f32.mrb[5].mxu1 }
 0x450   : > { %2227 = vst [vmem:[#allocation5 + $0x8] sm:$0xff] %v5098_v43  ;;  %2243 = vst [vmem:[#allocation5 + $0x88] sm:$0xff] %v5102_v44  ;;  %v5110_v18 = vsel %vm5082_vm0, %v2158_v45, %v2125_v35  ;;  %v5114_v21 = vsel %vm5082_vm0, %v2174_v46, %v2141_v36  ;;  %v2127_v22 = vadd.f32 %v5004_v47, %v2061_v6 }
 0x451   : > { %v2143_v48 = vadd.f32 %v5007_v14, %v2077_v8  ;;  %2226 = vst [vmem:[#allocation5] sm:$0xff] %v5110_v18  ;;  %2242 = vst [vmem:[#allocation5 + $0x80] sm:$0xff] %v5114_v21  ;;  %v2161_v49 = vmax.f32 %v2128_v11, 0.0  ;;  %v2177_v25 = vmax.f32 %v2144_v12, 0.0  ;;  %v1925_v26 = vadd.f32 %v3614_v9, %v5044_v61 }
 0x452   : > { %v2005_v27 = vadd.f32 %v3638_v10, %v5044_v61  ;;  %v2160_v28 = vmax.f32 %v2127_v22, 0.0  ;;  %v1920_v30 = vadd.f32 %v5044_v61, %v1919_v13  ;;  %v2000_v31 = vadd.f32 %v5044_v61, %v1999_v17  ;;  %v3617_v32 = vpop.f32.mrb[6].mxu0  ;;  %v3641_v47 = vpop.f32.mrb[6].mxu1 }
 0x453   : > { %v2176_v29 = vmax.f32 %v2143_v48, 0.0  ;;  %v5126_v14 = vsel %vm5082_vm0, %v2161_v49, %v2128_v11  ;;  %v5130_v33 = vsel %vm5082_vm0, %v2177_v25, %v2144_v12  ;;  %v2064_v34 = vmul.f32 %v5061_v7, %v1925_v26  ;;  %v1929_v36 = vpop.f32.mrb[7].mxu0  ;;  %v2009_v37 = vpop.f32.mrb[7].mxu1 }
 0x454   : > { %v2080_v35 = vmul.f32 %v5061_v7, %v2005_v27  ;;  %2229 = vst [vmem:[#allocation5 + $0x18] sm:$0xff] %v5126_v14  ;;  %2245 = vst [vmem:[#allocation5 + $0x98] sm:$0xff] %v5130_v33  ;;  %v5138_v38 = vsel %vm5082_vm0, %v2160_v28, %v2127_v22  ;;  %v2063_v40 = vmul.f32 %v5061_v7, %v1920_v30 }
 0x455   : > { %v5142_v39 = vsel %vm5082_vm0, %v2176_v29, %v2143_v48  ;;  %v2079_v41 = vmul.f32 %v5061_v7, %v2000_v31  ;;  %2228 = vst [vmem:[#allocation5 + $0x10] sm:$0xff] %v5138_v38  ;;  %v2130_v42 = vadd.f32 %v5017_v52, %v2064_v34  ;;  %v1935_v46 = vadd.f32 %v3617_v32, %v5044_v61 }
 0x456   : > { %2244 = vst [vmem:[#allocation5 + $0x90] sm:$0xff] %v5142_v39  ;;  %v2146_v45 = vadd.f32 %v5019_v53, %v2080_v35  ;;  %v2015_v6 = vadd.f32 %v3641_v47, %v5044_v61  ;;  %v2129_v8 = vadd.f32 %v5013_v50, %v2063_v40  ;;  %v1930_v10 = vadd.f32 %v5044_v61, %v1929_v36  ;;  %v3620_v12 = vpop.f32.mrb[8].mxu0  ;;  %v3644_v13 = vpop.f32.mrb[8].mxu1 }
 0x457   : > { %v2145_v9 = vadd.f32 %v5015_v51, %v2079_v41  ;;  %v2010_v11 = vadd.f32 %v5044_v61, %v2009_v37  ;;  %v2163_v17 = vmax.f32 %v2130_v42, 0.0  ;;  %v2066_v52 = vmul.f32 %v5061_v7, %v1935_v46  ;;  %v1939_v48 = vpop.f32.mrb[9].mxu0  ;;  %v2019_v49 = vpop.f32.mrb[9].mxu1 }
 0x458   : > { %v2179_v22 = vmax.f32 %v2146_v45, 0.0  ;;  %v2082_v53 = vmul.f32 %v5061_v7, %v2015_v6  ;;  %v2162_v25 = vmax.f32 %v2129_v8, 0.0  ;;  %v2065_v50 = vmul.f32 %v5061_v7, %v1930_v10 }
 0x459   : > { %v2178_v26 = vmax.f32 %v2145_v9, 0.0  ;;  %v2081_v51 = vmul.f32 %v5061_v7, %v2010_v11  ;;  %v5162_v27 = vsel %vm5082_vm0, %v2163_v17, %v2130_v42  ;;  %v2132_v29 = vadd.f32 %v5025_v56, %v2066_v52 }
 0x45a   : > { %v5166_v28 = vsel %vm5082_vm0, %v2179_v22, %v2146_v45  ;;  %v2148_v30 = vadd.f32 %v5031_v58, %v2082_v53  ;;  %2231 = vst [vmem:[#allocation5 + $0x28] sm:$0xff] %v5162_v27  ;;  %v5174_v31 = vsel %vm5082_vm0, %v2162_v25, %v2129_v8  ;;  %v2131_v47 = vadd.f32 %v5021_v54, %v2065_v50  ;;  %v3623_v35 = vpop.f32.mrb[10].mxu0  ;;  %v3647_v56 = vpop.f32.mrb[10].mxu1 }
 0x45b   : > { %2247 = vst [vmem:[#allocation5 + $0xa8] sm:$0xff] %v5166_v28  ;;  %v5178_v32 = vsel %vm5082_vm0, %v2178_v26, %v2145_v9  ;;  %v2147_v34 = vadd.f32 %v5023_v55, %v2081_v51  ;;  %2230 = vst [vmem:[#allocation5 + $0x20] sm:$0xff] %v5174_v31  ;;  %v2165_v58 = vmax.f32 %v2132_v29, 0.0  ;;  %v1945_v37 = vadd.f32 %v3620_v12, %v5044_v61  ;;  %v1949_v41 = vpop.f32.mrb[11].mxu0  ;;  %v2029_v42 = vpop.f32.mrb[11].mxu1 }
 0x45c   : > { %2246 = vst [vmem:[#allocation5 + $0xa0] sm:$0xff] %v5178_v32  ;;  %v2181_v36 = vmax.f32 %v2148_v30, 0.0  ;;  %v2025_v40 = vadd.f32 %v3644_v13, %v5044_v61  ;;  %v2164_v45 = vmax.f32 %v2131_v47, 0.0  ;;  %v1940_v54 = vadd.f32 %v5044_v61, %v1939_v48 }
 0x45d   : > { %v2180_v46 = vmax.f32 %v2147_v34, 0.0  ;;  %v2020_v55 = vadd.f32 %v5044_v61, %v2019_v49  ;;  %v5190_v6 = vsel %vm5082_vm0, %v2165_v58, %v2132_v29  ;;  %v2068_v9 = vmul.f32 %v5061_v7, %v1945_v37 }
 0x45e   : > { %v5194_v8 = vsel %vm5082_vm0, %v2181_v36, %v2148_v30  ;;  %v2084_v10 = vmul.f32 %v5061_v7, %v2025_v40  ;;  %2233 = vst [vmem:[#allocation5 + $0x38] sm:$0xff] %v5190_v6  ;;  %v5202_v11 = vsel %vm5082_vm0, %v2164_v45, %v2131_v47  ;;  %v2067_v13 = vmul.f32 %v5061_v7, %v1940_v54  ;;  %v3626_v22 = vpop.f32.mrb[12].mxu0  ;;  %v3650_v52 = vpop.f32.mrb[12].mxu1 }
 0x45f   : > { %2249 = vst [vmem:[#allocation5 + $0xb8] sm:$0xff] %v5194_v8  ;;  %v5206_v12 = vsel %vm5082_vm0, %v2180_v46, %v2147_v34  ;;  %v2083_v17 = vmul.f32 %v5061_v7, %v2020_v55  ;;  %2232 = vst [vmem:[#allocation5 + $0x30] sm:$0xff] %v5202_v11  ;;  %v2134_v53 = vadd.f32 %v5037_v57, %v2068_v9  ;;  %v1959_v26 = vpop.f32.mrb[13].mxu0  ;;  %v2039_v50 = vpop.f32.mrb[13].mxu1 }
 0x460   : > { %2248 = vst [vmem:[#allocation5 + $0xb0] sm:$0xff] %v5206_v12  ;;  %v2150_v48 = vadd.f32 %v5046_v62, %v2084_v10  ;;  %v1955_v49 = vadd.f32 %v3623_v35, %v5044_v61  ;;  %v2035_v25 = vadd.f32 %v3647_v56, %v5044_v61  ;;  %v2133_v51 = vadd.f32 %v5033_v59, %v2067_v13 }
 0x461   : > { %v2149_v29 = vadd.f32 %v5035_v60, %v2083_v17  ;;  %v1950_v30 = vadd.f32 %v5044_v61, %v1949_v41  ;;  %v2030_v47 = vadd.f32 %v5044_v61, %v2029_v42  ;;  %v2167_v34 = vmax.f32 %v2134_v53, 0.0 }
 0x462   : > { %v2183_v58 = vmax.f32 %v2150_v48, 0.0  ;;  %v2070_v57 = vmul.f32 %v5061_v7, %v1955_v49  ;;  %v2086_v62 = vmul.f32 %v5061_v7, %v2035_v25  ;;  %v2166_v36 = vmax.f32 %v2133_v51, 0.0  ;;  %v3629_v40 = vpop.f32.mrb[14].mxu0  ;;  %v3653_v59 = vpop.f32.mrb[14].mxu1 }
 0x463   : > { %v2182_v35 = vmax.f32 %v2149_v29, 0.0  ;;  %v2069_v56 = vmul.f32 %v5061_v7, %v1950_v30  ;;  %v2085_v37 = vmul.f32 %v5061_v7, %v2030_v47  ;;  %v5226_v60 = vsel %vm5082_vm0, %v2167_v34, %v2134_v53  ;;  %v1969_v46 = vpop.f32.mrb[15].mxu0  ;;  %v2049_v54 = vpop.f32.mrb[15].mxu1 }
 0x464   : > { %v5230_v41 = vsel %vm5082_vm0, %v2183_v58, %v2150_v48  ;;  %v2136_v42 = vadd.f32 %v5052_v2, %v2070_v57  ;;  %v2152_v45 = vadd.f32 %v5054_v3, %v2086_v62  ;;  %2235 = vst [vmem:[#allocation5 + $0x48] sm:$0xff] %v5226_v60  ;;  %v5238_v55 = vsel %vm5082_vm0, %v2166_v36, %v2133_v51 }
 0x465   : > { %2251 = vst [vmem:[#allocation5 + $0xc8] sm:$0xff] %v5230_v41  ;;  %v5242_v9 = vsel %vm5082_vm0, %v2182_v35, %v2149_v29  ;;  %v2135_v10 = vadd.f32 %v5048_v63, %v2069_v56  ;;  %v2151_v2 = vadd.f32 %v5050_v1, %v2085_v37  ;;  %2234 = vst [vmem:[#allocation5 + $0x40] sm:$0xff] %v5238_v55 }
 0x466   : > { %2250 = vst [vmem:[#allocation5 + $0xc0] sm:$0xff] %v5242_v9  ;;  %v2169_v3 = vmax.f32 %v2136_v42, 0.0  ;;  %v2185_v13 = vmax.f32 %v2152_v45, 0.0  ;;  %v1965_v17 = vadd.f32 %v3626_v22, %v5044_v61  ;;  %v2045_v53 = vadd.f32 %v3650_v52, %v5044_v61 }
 0x467   : > { %v2168_v48 = vmax.f32 %v2135_v10, 0.0  ;;  %v2184_v49 = vmax.f32 %v2151_v2, 0.0  ;;  %v1960_v25 = vadd.f32 %v5044_v61, %v1959_v26  ;;  %v2040_v51 = vadd.f32 %v5044_v61, %v2039_v50 }
 0x468   : > { %v5254_v63 = vsel %vm5082_vm0, %v2169_v3, %v2136_v42  ;;  %v5258_v1 = vsel %vm5082_vm0, %v2185_v13, %v2152_v45  ;;  %v2072_v29 = vmul.f32 %v5061_v7, %v1965_v17  ;;  %v2088_v22 = vmul.f32 %v5061_v7, %v2045_v53 }
 0x469   : > { %2237 = vst [vmem:[#allocation5 + $0x58] sm:$0xff] %v5254_v63  ;;  %2253 = vst [vmem:[#allocation5 + $0xd8] sm:$0xff] %v5258_v1  ;;  %v5266_v52 = vsel %vm5082_vm0, %v2168_v48, %v2135_v10  ;;  %v5270_v26 = vsel %vm5082_vm0, %v2184_v49, %v2151_v2  ;;  %v2071_v50 = vmul.f32 %v5061_v7, %v1960_v25 }
 0x46a   : > { %v2087_v30 = vmul.f32 %v5061_v7, %v2040_v51  ;;  %2236 = vst [vmem:[#allocation5 + $0x50] sm:$0xff] %v5266_v52  ;;  %2252 = vst [vmem:[#allocation5 + $0xd0] sm:$0xff] %v5270_v26  ;;  %v2138_v47 = vadd.f32 %v5063_v0, %v2072_v29  ;;  %v2154_v34 = vadd.f32 %v5068_v15, %v2088_v22 }
 0x46b   : > { %v1975_v58 = vadd.f32 %v3629_v40, %v5044_v61  ;;  %v2055_v57 = vadd.f32 %v3653_v59, %v5044_v61  ;;  %v2137_v62 = vadd.f32 %v5056_v4, %v2071_v50  ;;  %v1970_v35 = vadd.f32 %v5044_v61, %v1969_v46 }
 0x46c   : > { %v2153_v36 = vadd.f32 %v5058_v5, %v2087_v30  ;;  %v2050_v56 = vadd.f32 %v5044_v61, %v2049_v54  ;;  %v2171_v37 = vmax.f32 %v2138_v47, 0.0  ;;  %v2187_v42 = vmax.f32 %v2154_v34, 0.0 }
 0x46d   : > { %v2074_v45 = vmul.f32 %v5061_v7, %v1975_v58  ;;  %v2090_v0 = vmul.f32 %v5061_v7, %v2055_v57  ;;  %v2170_v10 = vmax.f32 %v2137_v62, 0.0  ;;  %v2073_v40 = vmul.f32 %v5061_v7, %v1970_v35 }
 0x46e   : > { %v2186_v15 = vmax.f32 %v2153_v36, 0.0  ;;  %v2089_v59 = vmul.f32 %v5061_v7, %v2050_v56  ;;  %v5290_v4 = vsel %vm5082_vm0, %v2171_v37, %v2138_v47  ;;  %v5294_v5 = vsel %vm5082_vm0, %v2187_v42, %v2154_v34 }
 0x46f   : > { %v2140_v61 = vadd.f32 %v5076_v20, %v2074_v45  ;;  %v2156_v46 = vadd.f32 %v5080_v23, %v2090_v0  ;;  %2239 = vst [vmem:[#allocation5 + $0x68] sm:$0xff] %v5290_v4  ;;  %2255 = vst [vmem:[#allocation5 + $0xe8] sm:$0xff] %v5294_v5  ;;  %v5302_v54 = vsel %vm5082_vm0, %v2170_v10, %v2137_v62  ;;  %2261 = sbr.rel (%p3230_p3) target bundleno = 1775 (0x6ef), region = 104 }
 0x470   : > { %v5306_v7 = vsel %vm5082_vm0, %v2186_v15, %v2153_v36  ;;  %v2139_v2 = vadd.f32 %v5070_v16, %v2073_v40  ;;  %v2155_v3 = vadd.f32 %v5074_v19, %v2089_v59  ;;  %2238 = vst [vmem:[#allocation5 + $0x60] sm:$0xff] %v5302_v54 }
 0x471   : > { %2254 = vst [vmem:[#allocation5 + $0xe0] sm:$0xff] %v5306_v7  ;;  %v2173_v20 = vmax.f32 %v2140_v61, 0.0  ;;  %v2189_v23 = vmax.f32 %v2156_v46, 0.0 }
 0x472   : > { %v2172_v13 = vmax.f32 %v2139_v2, 0.0  ;;  %v2188_v17 = vmax.f32 %v2155_v3, 0.0 }
 0x473   : > { %v5314_v53 = vsel %vm5082_vm0, %v2173_v20, %v2140_v61  ;;  %v5318_v48 = vsel %vm5082_vm0, %v2189_v23, %v2156_v46 }
 0x474   : > { %2241 = vst [vmem:[#allocation5 + $0x78] sm:$0xff] %v5314_v53  ;;  %2257 = vst [vmem:[#allocation5 + $0xf8] sm:$0xff] %v5318_v48  ;;  %v5324_v16 = vsel %vm5082_vm0, %v2172_v13, %v2139_v2  ;;  %v5328_v19 = vsel %vm5082_vm0, %v2188_v17, %v2155_v3 }
 0x475   : > { %2240 = vst [vmem:[#allocation5 + $0x70] sm:$0xff] %v5324_v16  ;;  %2256 = vst [vmem:[#allocation5 + $0xf0] sm:$0xff] %v5328_v19 }
 0x476   : > { %v2294_v49 = vld [vmem:[#allocation19] sm:$0xff]  ;;  %v2295_v25 = vld [vmem:[#allocation19 + $0x8] sm:$0xff]  ;;  %v2296_v51 = vld [vmem:[#allocation19 + $0x10] sm:$0xff]  ;;  %v2262_v29 = vmax.f32 %v5110_v18, 0.0  ;;  %v2278_v22 = vmax.f32 %v5114_v21, 0.0  ;;  %v2263_v61 = vmax.f32 %v5098_v43, 0.0 }
 0x477   : > { %v3798_v50 = vpack.c.bf16 %v2295_v25, %v2294_v49  ;;  %v2297_v30 = vld [vmem:[#allocation19 + $0x18] sm:$0xff]  ;;  %v2298_v24 = vld [vmem:[#allocation19 + $0x20] sm:$0xff]  ;;  %v2299_v34 = vld [vmem:[#allocation19 + $0x28] sm:$0xff]  ;;  %v2279_v46 = vmax.f32 %v5102_v44, 0.0  ;;  %v2264_v2 = vmax.f32 %v5138_v38, 0.0  ;;  %v2280_v3 = vmax.f32 %v5142_v39, 0.0 }
 0x478   : > { %v3802_v47 = vpack.c.bf16 %v2297_v30, %v2296_v51  ;;  %3686 = vmatprep.mubr.f32.mxu0 %v2262_v29  ;;  %3710 = vmatprep.mubr.f32.mxu1 %v2278_v22  ;;  %v3806_v58 = vpack.c.bf16 %v2299_v34, %v2298_v24  ;;  %v2300_v57 = vld [vmem:[#allocation19 + $0x30] sm:$0xff]  ;;  %v2301_v62 = vld [vmem:[#allocation19 + $0x38] sm:$0xff]  ;;  %v2302_v21 = vld [vmem:[#allocation19 + $0x40] sm:$0xff]  ;;  %v2265_v20 = vmax.f32 %v5126_v14, 0.0  ;;  %v2281_v23 = vmax.f32 %v5130_v33, 0.0  ;;  %s5923_s25 = sld [smem:[#allocation46_spill]] }
 0x479   : > { %3799 = vmatprep.subr.bf16.mxu0 %v3798_v50  ;;  %3878 = vmatprep.subr.bf16.mxu1 %v3798_v50  ;;  %v3810_v18 = vpack.c.bf16 %v2301_v62, %v2300_v57  ;;  %v2303_v36 = vld [vmem:[#allocation19 + $0x48] sm:$0xff]  ;;  %v2304_v56 = vld [vmem:[#allocation19 + $0x50] sm:$0xff]  ;;  %v2305_v37 = vld [vmem:[#allocation19 + $0x58] sm:$0xff]  ;;  %v2266_v13 = vmax.f32 %v5174_v31, 0.0  ;;  %v2282_v43 = vmax.f32 %v5178_v32, 0.0  ;;  %v2267_v44 = vmax.f32 %v5162_v27, 0.0 }
 0x47a   : > { %3801 = vmatpush3.bf16.msra.mxu0 %v3798_v50  ;;  %3886 = vmatpush3.bf16.msra.mxu1 %v3798_v50  ;;  %v3814_v35 = vpack.c.bf16 %v2303_v36, %v2302_v21  ;;  %v3818_v42 = vpack.c.bf16 %v2305_v37, %v2304_v56  ;;  %v2306_v45 = vld [vmem:[#allocation19 + $0x60] sm:$0xff]  ;;  %v2307_v0 = vld [vmem:[#allocation19 + $0x68] sm:$0xff]  ;;  %v2308_v15 = vld [vmem:[#allocation19 + $0x70] sm:$0xff]  ;;  %v2283_v38 = vmax.f32 %v5166_v28, 0.0  ;;  %v2268_v39 = vmax.f32 %v5202_v11, 0.0 }
 0x47b   : > { %3803 = vmatprep.subr.bf16.mxu0 %v3802_v47  ;;  %3879 = vmatprep.subr.bf16.mxu1 %v3802_v47  ;;  %v3822_v10 = vpack.c.bf16 %v2307_v0, %v2306_v45  ;;  %v2309_v40 = vld [vmem:[#allocation19 + $0x78] sm:$0xff]  ;;  %v2284_v14 = vmax.f32 %v5206_v12, 0.0  ;;  %v2269_v33 = vmax.f32 %v5190_v6, 0.0  ;;  %v2285_v31 = vmax.f32 %v5194_v8, 0.0 }
 0x47c   : > { %v3826_v59 = vpack.c.bf16 %v2309_v40, %v2308_v15  ;;  %v2270_v32 = vmax.f32 %v5238_v55, 0.0  ;;  %v2286_v27 = vmax.f32 %v5242_v9, 0.0  ;;  %v2271_v28 = vmax.f32 %v5226_v60, 0.0 }
 0x47d   : > { %v2287_v11 = vmax.f32 %v5230_v41, 0.0  ;;  %v2272_v12 = vmax.f32 %v5266_v52, 0.0  ;;  %v2288_v6 = vmax.f32 %v5270_v26, 0.0  ;;  %v2273_v8 = vmax.f32 %v5254_v63, 0.0 }
 0x47e   : > { %3805 = vmatpush3.bf16.msra.mxu0 %v3802_v47  ;;  %3887 = vmatpush3.bf16.msra.mxu1 %v3802_v47  ;;  %v2289_v55 = vmax.f32 %v5258_v1, 0.0  ;;  %v2274_v9 = vmax.f32 %v5302_v54, 0.0  ;;  %v2290_v60 = vmax.f32 %v5306_v7, 0.0  ;;  %v2275_v41 = vmax.f32 %v5290_v4, 0.0 }
 0x47f   : > { %3807 = vmatprep.subr.bf16.mxu0 %v3806_v58  ;;  %3880 = vmatprep.subr.bf16.mxu1 %v3806_v58  ;;  %v2291_v52 = vmax.f32 %v5294_v5, 0.0  ;;  %v2276_v26 = vmax.f32 %v5324_v16, 0.0  ;;  %v2292_v63 = vmax.f32 %v5328_v19, 0.0  ;;  %v2277_v1 = vmax.f32 %v5314_v53, 0.0  ;;  %v5370_v5 = vld [vmem:[%s5923_s25] ss:$0 sm:$0xff] }
 0x480   : > { %v2293_v54 = vmax.f32 %v5318_v48, 0.0  ;;  %v2542_v7 = vlaneseq }
 0x482   : > { %3809 = vmatpush3.bf16.msra.mxu0 %v3806_v58  ;;  %3888 = vmatpush3.bf16.msra.mxu1 %v3806_v58  ;;  %v5365_v4 = vand.u32 127, %v2542_v7 }
 0x483   : > { %3811 = vmatprep.subr.bf16.mxu0 %v3810_v18  ;;  %3881 = vmatprep.subr.bf16.mxu1 %v3810_v18 }
 0x484   : > { %vm2544_vm1 = vcmp.lt.s32.totalorder %v5365_v4, 4 }
 0x486   : > { %3813 = vmatpush3.bf16.msra.mxu0 %v3810_v18  ;;  %3889 = vmatpush3.bf16.msra.mxu1 %v3810_v18 }
 0x487   : > { %3815 = vmatprep.subr.bf16.mxu0 %v3814_v35  ;;  %3882 = vmatprep.subr.bf16.mxu1 %v3814_v35 }
 0x48a   : > { %3817 = vmatpush3.bf16.msra.mxu0 %v3814_v35  ;;  %3890 = vmatpush3.bf16.msra.mxu1 %v3814_v35 }
 0x48b   : > { %3819 = vmatprep.subr.bf16.mxu0 %v3818_v42  ;;  %3883 = vmatprep.subr.bf16.mxu1 %v3818_v42 }
 0x48e   : > { %3821 = vmatpush3.bf16.msra.mxu0 %v3818_v42  ;;  %3891 = vmatpush3.bf16.msra.mxu1 %v3818_v42 }
 0x48f   : > { %3823 = vmatprep.subr.bf16.mxu0 %v3822_v10  ;;  %3884 = vmatprep.subr.bf16.mxu1 %v3822_v10 }
 0x492   : > { %3825 = vmatpush3.bf16.msra.mxu0 %v3822_v10  ;;  %3892 = vmatpush3.bf16.msra.mxu1 %v3822_v10 }
 0x493   : > { %3827 = vmatprep.subr.bf16.mxu0 %v3826_v59  ;;  %3885 = vmatprep.subr.bf16.mxu1 %v3826_v59 }
 0x496   : > { %3829 = vmatpush3.bf16.msra.mxu0 %v3826_v59  ;;  %3893 = vmatpush3.bf16.msra.mxu1 %v3826_v59 }
 0x499   : > { %3687 = vmatmul.mubr.f32.vlgmr.msra.gmra.mrb[0].mxu0 %v2263_v61  ;;  %3711 = vmatmul.mubr.f32.vlgmr.msra.gmra.mrb[0].mxu1 %v2279_v46 }
 0x49a   : > { %3689 = vmatprep.mubr.f32.mxu0 %v2264_v2  ;;  %3713 = vmatprep.mubr.f32.mxu1 %v2280_v3 }
 0x49d   : > { %3690 = vmatmul.mubr.f32.gmra.mrb[2].mxu0 %v2265_v20  ;;  %3714 = vmatmul.mubr.f32.gmra.mrb[2].mxu1 %v2281_v23 }
 0x49e   : > { %3692 = vmatprep.mubr.f32.mxu0 %v2266_v13  ;;  %3716 = vmatprep.mubr.f32.mxu1 %v2282_v43 }
 0x4a1   : > { %3693 = vmatmul.mubr.f32.gmra.mrb[4].mxu0 %v2267_v44  ;;  %3717 = vmatmul.mubr.f32.gmra.mrb[4].mxu1 %v2283_v38 }
 0x4a2   : > { %3695 = vmatprep.mubr.f32.mxu0 %v2268_v39  ;;  %3719 = vmatprep.mubr.f32.mxu1 %v2284_v14 }
 0x4a5   : > { %3696 = vmatmul.mubr.f32.gmra.mrb[6].mxu0 %v2269_v33  ;;  %3720 = vmatmul.mubr.f32.gmra.mrb[6].mxu1 %v2285_v31 }
 0x4a6   : > { %3698 = vmatprep.mubr.f32.mxu0 %v2270_v32  ;;  %3722 = vmatprep.mubr.f32.mxu1 %v2286_v27 }
 0x4a9   : > { %3699 = vmatmul.mubr.f32.gmra.mrb[8].mxu0 %v2271_v28  ;;  %3723 = vmatmul.mubr.f32.gmra.mrb[8].mxu1 %v2287_v11 }
 0x4aa   : > { %3701 = vmatprep.mubr.f32.mxu0 %v2272_v12  ;;  %3725 = vmatprep.mubr.f32.mxu1 %v2288_v6 }
 0x4ad   : > { %3702 = vmatmul.mubr.f32.gmra.mrb[10].mxu0 %v2273_v8  ;;  %3726 = vmatmul.mubr.f32.gmra.mrb[10].mxu1 %v2289_v55 }
 0x4ae   : > { %3704 = vmatprep.mubr.f32.mxu0 %v2274_v9  ;;  %3728 = vmatprep.mubr.f32.mxu1 %v2290_v60 }
 0x4b1   : > { %3705 = vmatmul.mubr.f32.gmra.mrb[12].mxu0 %v2275_v41  ;;  %3729 = vmatmul.mubr.f32.gmra.mrb[12].mxu1 %v2291_v52 }
 0x4b2   : > { %3707 = vmatprep.mubr.f32.mxu0 %v2276_v26  ;;  %3731 = vmatprep.mubr.f32.mxu1 %v2292_v63 }
 0x4b5   : > { %3708 = vmatmul.mubr.f32.gmra.mrb[14].mxu0 %v2277_v1  ;;  %3732 = vmatmul.mubr.f32.gmra.mrb[14].mxu1 %v2293_v54 }
 0x56c   : > { %v3688_v17 = vpop.f32.mrb[0].mxu0  ;;  %v3712_v16 = vpop.f32.mrb[0].mxu1 }
 0x56d   : > { %v2389_v53 = vadd.f32 %v3688_v17, %v5370_v5  ;;  %v2469_v48 = vadd.f32 %v3712_v16, %v5370_v5  ;;  %v2383_v19 = vpop.f32.mrb[1].mxu0  ;;  %v2463_v49 = vpop.f32.mrb[1].mxu1 }
 0x56e   : > { %v2384_v25 = vadd.f32 %v5370_v5, %v2383_v19  ;;  %v2464_v58 = vadd.f32 %v5370_v5, %v2463_v49 }
 0x56f   : > { %v5378_v51 = vsel %vm2544_vm1, %v2469_v48, -1e+30  ;;  %v5382_v29 = vsel %vm2544_vm1, %v2389_v53, -1e+30 }
 0x570   : > { %2611 = vmax.xlane.f32.xlu1 %v5378_v51  ;;  %2579 = vmax.xlane.f32.xlu0 %v5382_v29  ;;  %v3691_v22 = vpop.f32.mrb[2].mxu0  ;;  %v3715_v50 = vpop.f32.mrb[2].mxu1  ;;  %v5395_v62 = vsel %vm2544_vm1, %v2384_v25, -1e+30  ;;  %v5407_v45 = vsel %vm2544_vm1, %v2464_v58, -1e+30 }
 0x571   : > { %v2399_v30 = vadd.f32 %v3691_v22, %v5370_v5  ;;  %v2393_v47 = vpop.f32.mrb[3].mxu0  ;;  %v2479_v24 = vadd.f32 %v3715_v50, %v5370_v5  ;;  %v2473_v34 = vpop.f32.mrb[3].mxu1 }
 0x572   : > { %v2394_v37 = vadd.f32 %v5370_v5, %v2393_v47  ;;  %v2474_v42 = vadd.f32 %v5370_v5, %v2473_v34 }
 0x573   : > { %v5391_v57 = vsel %vm2544_vm1, %v2399_v30, -1e+30  ;;  %v5401_v36 = vsel %vm2544_vm1, %v2479_v24, -1e+30 }
 0x574   : > { %2583 = vmax.xlane.f32.xlu1 %v5391_v57  ;;  %2577 = vmax.xlane.f32.xlu0 %v5395_v62  ;;  %v3694_v18 = vpop.f32.mrb[4].mxu0  ;;  %v3718_v21 = vpop.f32.mrb[4].mxu1  ;;  %v5415_v46 = vsel %vm2544_vm1, %v2394_v37, -1e+30  ;;  %v5419_v2 = vsel %vm2544_vm1, %v2474_v42, -1e+30 }
 0x575   : > { %v2403_v35 = vpop.f32.mrb[5].mxu0  ;;  %v2483_v56 = vpop.f32.mrb[5].mxu1  ;;  %v2409_v15 = vadd.f32 %v3694_v18, %v5370_v5  ;;  %v2489_v23 = vadd.f32 %v3718_v21, %v5370_v5 }
 0x576   : > { %v2404_v40 = vadd.f32 %v5370_v5, %v2403_v35  ;;  %v2484_v13 = vadd.f32 %v5370_v5, %v2483_v56 }
 0x577   : > { %v5427_v43 = vsel %vm2544_vm1, %v2409_v15, -1e+30  ;;  %v5439_v27 = vsel %vm2544_vm1, %v2489_v23, -1e+30 }
 0x578   : > { %2615 = vmax.xlane.f32.xlu1 %v5401_v36  ;;  %2609 = vmax.xlane.f32.xlu0 %v5407_v45  ;;  %v3697_v0 = vpop.f32.mrb[6].mxu0  ;;  %v3721_v10 = vpop.f32.mrb[6].mxu1  ;;  %v5431_v44 = vsel %vm2544_vm1, %v2404_v40, -1e+30  ;;  %v5443_v28 = vsel %vm2544_vm1, %v2484_v13, -1e+30 }
 0x579   : > { %v2413_v59 = vpop.f32.mrb[7].mxu0  ;;  %v2493_v61 = vpop.f32.mrb[7].mxu1  ;;  %v2419_v31 = vadd.f32 %v3697_v0, %v5370_v5  ;;  %v2499_v55 = vadd.f32 %v3721_v10, %v5370_v5 }
 0x57a   : > { %v2414_v32 = vadd.f32 %v5370_v5, %v2413_v59  ;;  %v2494_v9 = vadd.f32 %v5370_v5, %v2493_v61 }
 0x57b   : > { %v5451_v60 = vsel %vm2544_vm1, %v2419_v31, -1e+30  ;;  %v5463_v17 = vsel %vm2544_vm1, %v2499_v55, -1e+30 }
 0x57c   : > { %2581 = vmax.xlane.f32.xlu1 %v5415_v46  ;;  %2613 = vmax.xlane.f32.xlu0 %v5419_v2  ;;  %v3700_v3 = vpop.f32.mrb[8].mxu0  ;;  %v3724_v20 = vpop.f32.mrb[8].mxu1  ;;  %v5455_v41 = vsel %vm2544_vm1, %v2414_v32, -1e+30  ;;  %v5467_v16 = vsel %vm2544_vm1, %v2494_v9, -1e+30 }
 0x57d   : > { %v2423_v38 = vpop.f32.mrb[9].mxu0  ;;  %v2503_v39 = vpop.f32.mrb[9].mxu1  ;;  %v2429_v54 = vadd.f32 %v3700_v3, %v5370_v5  ;;  %v2509_v19 = vadd.f32 %v3724_v20, %v5370_v5 }
 0x57e   : > { %v2424_v7 = vadd.f32 %v5370_v5, %v2423_v38  ;;  %v2504_v49 = vadd.f32 %v5370_v5, %v2503_v39 }
 0x57f   : > { %v5475_v25 = vsel %vm2544_vm1, %v2429_v54, -1e+30  ;;  %v5487_v47 = vsel %vm2544_vm1, %v2509_v19, -1e+30 }
 0x580   : > { %2587 = vmax.xlane.f32.xlu1 %v5427_v43  ;;  %2585 = vmax.xlane.f32.xlu0 %v5431_v44  ;;  %v3703_v14 = vpop.f32.mrb[10].mxu0  ;;  %v3727_v33 = vpop.f32.mrb[10].mxu1  ;;  %v5479_v22 = vsel %vm2544_vm1, %v2424_v7, -1e+30  ;;  %v5491_v24 = vsel %vm2544_vm1, %v2504_v49, -1e+30 }
 0x581   : > { %v2433_v11 = vpop.f32.mrb[11].mxu0  ;;  %v2513_v12 = vpop.f32.mrb[11].mxu1  ;;  %5924 = vst [vmem:[#allocation29_spill] sm:$0xff] %v5479_v22  ;;  %v2439_v50 = vadd.f32 %v3703_v14, %v5370_v5  ;;  %5925 = vst [vmem:[#allocation30_spill] sm:$0xff] %v5491_v24  ;;  %v2519_v34 = vadd.f32 %v3727_v33, %v5370_v5 }
 0x582   : > { %v2434_v30 = vadd.f32 %v5370_v5, %v2433_v11  ;;  %v2514_v58 = vadd.f32 %v5370_v5, %v2513_v12 }
 0x583   : > { %v5499_v18 = vsel %vm2544_vm1, %v2439_v50, -1e+30  ;;  %v5511_v37 = vsel %vm2544_vm1, %v2519_v34, -1e+30 }
 0x584   : > { %2619 = vmax.xlane.f32.xlu1 %v5439_v27  ;;  %2617 = vmax.xlane.f32.xlu0 %v5443_v28  ;;  %v3706_v6 = vpop.f32.mrb[12].mxu0  ;;  %v3730_v8 = vpop.f32.mrb[12].mxu1  ;;  %v5503_v21 = vsel %vm2544_vm1, %v2434_v30, -1e+30  ;;  %v5515_v42 = vsel %vm2544_vm1, %v2514_v58, -1e+30 }
 0x585   : > { %v2443_v52 = vpop.f32.mrb[13].mxu0  ;;  %v2523_v26 = vpop.f32.mrb[13].mxu1  ;;  %5926 = vst [vmem:[#allocation31_spill] sm:$0xff] %v5503_v21  ;;  %v2449_v35 = vadd.f32 %v3706_v6, %v5370_v5  ;;  %5927 = vst [vmem:[#allocation32_spill] sm:$0xff] %v5515_v42  ;;  %v2529_v0 = vadd.f32 %v3730_v8, %v5370_v5 }
 0x586   : > { %v2444_v56 = vadd.f32 %v5370_v5, %v2443_v52  ;;  %v2524_v10 = vadd.f32 %v5370_v5, %v2523_v26 }
 0x587   : > { %v5523_v15 = vsel %vm2544_vm1, %v2449_v35, -1e+30  ;;  %v5535_v3 = vsel %vm2544_vm1, %v2529_v0, -1e+30 }
 0x588   : > { %2591 = vmax.xlane.f32.xlu1 %v5451_v60  ;;  %2589 = vmax.xlane.f32.xlu0 %v5455_v41  ;;  %v3709_v63 = vpop.f32.mrb[14].mxu0  ;;  %v3733_v1 = vpop.f32.mrb[14].mxu1  ;;  %v5527_v40 = vsel %vm2544_vm1, %v2444_v56, -1e+30  ;;  %v5539_v20 = vsel %vm2544_vm1, %v2524_v10, -1e+30 }
 0x589   : > { %v2453_v53 = vpop.f32.mrb[15].mxu0  ;;  %v2533_v48 = vpop.f32.mrb[15].mxu1  ;;  %5928 = vst [vmem:[#allocation33_spill] sm:$0xff] %v5527_v40  ;;  %v2459_v59 = vadd.f32 %v3709_v63, %v5370_v5  ;;  %5929 = vst [vmem:[#allocation34_spill] sm:$0xff] %v5539_v20  ;;  %v2539_v23 = vadd.f32 %v3733_v1, %v5370_v5 }
 0x58a   : > { %v2454_v61 = vadd.f32 %v5370_v5, %v2453_v53  ;;  %v2534_v13 = vadd.f32 %v5370_v5, %v2533_v48 }
 0x58b   : > { %v5547_v38 = vsel %vm2544_vm1, %v2459_v59, -1e+30  ;;  %v5557_v14 = vsel %vm2544_vm1, %v2539_v23, -1e+30 }
 0x58c   : > { %2623 = vmax.xlane.f32.xlu1 %v5463_v17  ;;  %2621 = vmax.xlane.f32.xlu0 %v5467_v16  ;;  %v5551_v39 = vsel %vm2544_vm1, %v2454_v61, -1e+30  ;;  %5931 = vst [vmem:[#allocation36_spill] sm:$0xff] %v5557_v14  ;;  %v5561_v33 = vsel %vm2544_vm1, %v2534_v13, -1e+30 }
 0x58d   : > { %5930 = vst [vmem:[#allocation35_spill] sm:$0xff] %v5551_v39  ;;  %5932 = vst [vmem:[#allocation37_spill] sm:$0xff] %v5561_v33 }
 0x590   : > { %2595 = vmax.xlane.f32.xlu1 %v5475_v25  ;;  %2593 = vmax.xlane.f32.xlu0 %v5479_v22 }
 0x594   : > { %2627 = vmax.xlane.f32.xlu1 %v5487_v47  ;;  %2625 = vmax.xlane.f32.xlu0 %v5491_v24 }
 0x598   : > { %2599 = vmax.xlane.f32.xlu1 %v5499_v18  ;;  %2597 = vmax.xlane.f32.xlu0 %v5503_v21 }
 0x59c   : > { %2631 = vmax.xlane.f32.xlu1 %v5511_v37  ;;  %2629 = vmax.xlane.f32.xlu0 %v5515_v42 }
 0x5a0   : > { %2603 = vmax.xlane.f32.xlu1 %v5523_v15  ;;  %2601 = vmax.xlane.f32.xlu0 %v5527_v40 }
 0x5a4   : > { %2635 = vmax.xlane.f32.xlu1 %v5535_v3  ;;  %2633 = vmax.xlane.f32.xlu0 %v5539_v20 }
 0x5a8   : > { %2607 = vmax.xlane.f32.xlu1 %v5547_v38  ;;  %2605 = vmax.xlane.f32.xlu0 %v5551_v39 }
 0x5ac   : > { %2639 = vmax.xlane.f32.xlu1 %v5557_v14  ;;  %2637 = vmax.xlane.f32.xlu0 %v5561_v33 }
 0x5fd   : > { %v5565_v5 = vpop.xlane.xlu1 %2611  ;;  %v5567_v31 = vpop.xlane.xlu0 %2579 }
 0x5fe   : > { %v2658_v32 = vsub.f32 %v5378_v51, %v5565_v5  ;;  %v2642_v11 = vsub.f32 %v5382_v29, %v5567_v31 }
 0x600   : > { %v2707_v12 = vmul.f32 1.442695, %v2658_v32  ;;  %v2675_v6 = vmul.f32 1.442695, %v2642_v11 }
 0x601   : > { %v5573_v8 = vpop.xlane.xlu1 %2583  ;;  %v5575_v55 = vpop.xlane.xlu0 %2577 }
 0x602   : > { %v2644_v9 = vsub.f32 %v5391_v57, %v5573_v8  ;;  %v2641_v52 = vsub.f32 %v5395_v62, %v5575_v55  ;;  %4070 = vpow2.f32 %v2675_v6 }
 0x603   : > { %4072 = vpow2.f32 %v2707_v12 }
 0x604   : > { %v2679_v26 = vmul.f32 1.442695, %v2644_v9  ;;  %v2673_v63 = vmul.f32 1.442695, %v2641_v52 }
 0x605   : > { %v5581_v1 = vpop.xlane.xlu1 %2615  ;;  %v5583_v54 = vpop.xlane.xlu0 %2609 }
 0x606   : > { %v2660_v7 = vsub.f32 %v5401_v36, %v5581_v1  ;;  %v2657_v53 = vsub.f32 %v5407_v45, %v5583_v54  ;;  %4074 = vpow2.f32 %v2673_v63 }
 0x607   : > { %4076 = vpow2.f32 %v2679_v26 }
 0x608   : > { %v2705_v48 = vmul.f32 1.442695, %v2657_v53  ;;  %v2711_v19 = vmul.f32 1.442695, %v2660_v7 }
 0x609   : > { %v5589_v49 = vpop.xlane.xlu1 %2581  ;;  %v5591_v50 = vpop.xlane.xlu0 %2613 }
 0x60a   : > { %v2643_v30 = vsub.f32 %v5415_v46, %v5589_v49  ;;  %v2659_v34 = vsub.f32 %v5419_v2, %v5591_v50  ;;  %4078 = vpow2.f32 %v2705_v48 }
 0x60b   : > { %4080 = vpow2.f32 %v2711_v19 }
 0x60c   : > { %v2677_v58 = vmul.f32 1.442695, %v2643_v30  ;;  %v4071_v35 = vpop.eup %4070  ;;  %v2709_v56 = vmul.f32 1.442695, %v2659_v34 }
 0x60d   : > { %v5597_v0 = vpop.xlane.xlu1 %2587  ;;  %v5599_v10 = vpop.xlane.xlu0 %2585  ;;  %v2738_v13 = vsel %vm2544_vm1, %v4071_v35, 0.0 }
 0x60e   : > { %v4073_v59 = vpop.eup %4072  ;;  %4082 = vpow2.f32 %v2677_v58  ;;  %v2646_v61 = vsub.f32 %v5427_v43, %v5597_v0  ;;  %v2645_v23 = vsub.f32 %v5431_v44, %v5599_v10  ;;  %2771 = vadd.xlane.f32.xlu1 %v2738_v13 }
 0x60f   : > { %4084 = vpow2.f32 %v2709_v56  ;;  %v2754_v52 = vsel %vm2544_vm1, %v4073_v59, 0.0 }
 0x610   : > { %v2683_v32 = vmul.f32 1.442695, %v2646_v61  ;;  %v4075_v11 = vpop.eup %4074  ;;  %v2681_v12 = vmul.f32 1.442695, %v2645_v23 }
 0x611   : > { %v5607_v6 = vpop.xlane.xlu1 %2619  ;;  %v5609_v9 = vpop.xlane.xlu0 %2617  ;;  %v2737_v53 = vsel %vm2544_vm1, %v4075_v11, 0.0 }
 0x612   : > { %v4077_v26 = vpop.eup %4076  ;;  %4086 = vpow2.f32 %v2683_v32  ;;  %v2662_v63 = vsub.f32 %v5439_v27, %v5607_v6  ;;  %v2661_v7 = vsub.f32 %v5443_v28, %v5609_v9  ;;  %2803 = vadd.xlane.f32.xlu1 %v2754_v52  ;;  %2769 = vadd.xlane.f32.xlu0 %v2737_v53 }
 0x613   : > { %4088 = vpow2.f32 %v2681_v12  ;;  %v2740_v35 = vsel %vm2544_vm1, %v4077_v26, 0.0 }
 0x614   : > { %v2715_v48 = vmul.f32 1.442695, %v2662_v63  ;;  %v4079_v19 = vpop.eup %4078  ;;  %v2713_v30 = vmul.f32 1.442695, %v2661_v7 }
 0x615   : > { %v5619_v34 = vpop.xlane.xlu1 %2591  ;;  %v5621_v58 = vpop.xlane.xlu0 %2589  ;;  %v2753_v61 = vsel %vm2544_vm1, %v4079_v19, 0.0 }
 0x616   : > { %4090 = vpow2.f32 %v2715_v48  ;;  %v2648_v56 = vsub.f32 %v5451_v60, %v5619_v34  ;;  %v2647_v59 = vsub.f32 %v5455_v41, %v5621_v58  ;;  %v4081_v23 = vpop.eup %4080  ;;  %2775 = vadd.xlane.f32.xlu1 %v2740_v35  ;;  %2801 = vadd.xlane.f32.xlu0 %v2753_v61 }
 0x617   : > { %4092 = vpow2.f32 %v2713_v30  ;;  %v2756_v53 = vsel %vm2544_vm1, %v4081_v23, 0.0 }
 0x618   : > { %v4083_v13 = vpop.eup %4082  ;;  %v2687_v32 = vmul.f32 1.442695, %v2648_v56  ;;  %v2685_v11 = vmul.f32 1.442695, %v2647_v59 }
 0x619   : > { %v5631_v12 = vpop.xlane.xlu1 %2623  ;;  %v5633_v52 = vpop.xlane.xlu0 %2621  ;;  %v2739_v26 = vsel %vm2544_vm1, %v4083_v13, 0.0 }
 0x61a   : > { %4094 = vpow2.f32 %v2687_v32  ;;  %v2664_v63 = vsub.f32 %v5463_v17, %v5631_v12  ;;  %v2663_v7 = vsub.f32 %v5467_v16, %v5633_v52  ;;  %v4085_v48 = vpop.eup %4084  ;;  %2807 = vadd.xlane.f32.xlu1 %v2756_v53  ;;  %2773 = vadd.xlane.f32.xlu0 %v2739_v26 }
 0x61b   : > { %4096 = vpow2.f32 %v2685_v11  ;;  %v2755_v32 = vsel %vm2544_vm1, %v4085_v48, 0.0 }
 0x61c   : > { %v4087_v19 = vpop.eup %4086  ;;  %v2719_v30 = vmul.f32 1.442695, %v2664_v63  ;;  %v2717_v35 = vmul.f32 1.442695, %v2663_v7 }
 0x61d   : > { %v5643_v56 = vpop.xlane.xlu1 %2595  ;;  %v5645_v59 = vpop.xlane.xlu0 %2593  ;;  %v2742_v61 = vsel %vm2544_vm1, %v4087_v19, 0.0 }
 0x61e   : > { %5933 = vst [vmem:[#allocation38_spill] sm:$0xff] %v5645_v59  ;;  %4098 = vpow2.f32 %v2719_v30  ;;  %v2650_v13 = vsub.f32 %v5475_v25, %v5643_v56  ;;  %v2649_v23 = vsub.f32 %v5479_v22, %v5645_v59  ;;  %v4089_v26 = vpop.eup %4088  ;;  %2779 = vadd.xlane.f32.xlu1 %v2742_v61  ;;  %2805 = vadd.xlane.f32.xlu0 %v2755_v32 }
 0x61f   : > { %4100 = vpow2.f32 %v2717_v35  ;;  %v2741_v61 = vsel %vm2544_vm1, %v4089_v26, 0.0 }
 0x620   : > { %v4091_v11 = vpop.eup %4090  ;;  %v2691_v63 = vmul.f32 1.442695, %v2650_v13  ;;  %v2689_v7 = vmul.f32 1.442695, %v2649_v23 }
 0x621   : > { %v5655_v53 = vpop.xlane.xlu1 %2627  ;;  %v5657_v19 = vpop.xlane.xlu0 %2625  ;;  %v2758_v30 = vsel %vm2544_vm1, %v4091_v11, 0.0 }
 0x622   : > { %5934 = vst [vmem:[#allocation39_spill] sm:$0xff] %v5657_v19  ;;  %4102 = vpow2.f32 %v2691_v63  ;;  %v2666_v22 = vsub.f32 %v5487_v47, %v5655_v53  ;;  %v2665_v48 = vsub.f32 %v5491_v24, %v5657_v19  ;;  %v4093_v13 = vpop.eup %4092  ;;  %2811 = vadd.xlane.f32.xlu1 %v2758_v30  ;;  %2777 = vadd.xlane.f32.xlu0 %v2741_v61 }
 0x623   : > { %4104 = vpow2.f32 %v2689_v7  ;;  %v2757_v30 = vsel %vm2544_vm1, %v4093_v13, 0.0 }
 0x624   : > { %v4095_v35 = vpop.eup %4094  ;;  %v2723_v23 = vmul.f32 1.442695, %v2666_v22  ;;  %v2721_v32 = vmul.f32 1.442695, %v2665_v48 }
 0x625   : > { %v5667_v59 = vpop.xlane.xlu1 %2599  ;;  %v5669_v11 = vpop.xlane.xlu0 %2597  ;;  %v2744_v63 = vsel %vm2544_vm1, %v4095_v35, 0.0 }
 0x626   : > { %5935 = vst [vmem:[#allocation40_spill] sm:$0xff] %v5669_v11  ;;  %4106 = vpow2.f32 %v2723_v23  ;;  %v2652_v24 = vsub.f32 %v5499_v18, %v5667_v59  ;;  %v2651_v26 = vsub.f32 %v5503_v21, %v5669_v11  ;;  %v4097_v22 = vpop.eup %4096  ;;  %2783 = vadd.xlane.f32.xlu1 %v2744_v63  ;;  %2809 = vadd.xlane.f32.xlu0 %v2757_v30 }
 0x627   : > { %4108 = vpow2.f32 %v2721_v32  ;;  %v2743_v63 = vsel %vm2544_vm1, %v4097_v22, 0.0 }
 0x628   : > { %v4099_v7 = vpop.eup %4098  ;;  %v2695_v48 = vmul.f32 1.442695, %v2652_v24  ;;  %v2693_v61 = vmul.f32 1.442695, %v2651_v26 }
 0x629   : > { %v5679_v19 = vpop.xlane.xlu1 %2631  ;;  %v5681_v35 = vpop.xlane.xlu0 %2629  ;;  %v2760_v23 = vsel %vm2544_vm1, %v4099_v7, 0.0 }
 0x62a   : > { %5936 = vst [vmem:[#allocation41_spill] sm:$0xff] %v5681_v35  ;;  %4110 = vpow2.f32 %v2695_v48  ;;  %v2668_v21 = vsub.f32 %v5511_v37, %v5679_v19  ;;  %v2667_v13 = vsub.f32 %v5515_v42, %v5681_v35  ;;  %v4101_v24 = vpop.eup %4100  ;;  %2815 = vadd.xlane.f32.xlu1 %v2760_v23  ;;  %2781 = vadd.xlane.f32.xlu0 %v2743_v63 }
 0x62b   : > { %4112 = vpow2.f32 %v2693_v61  ;;  %v2759_v23 = vsel %vm2544_vm1, %v4101_v24, 0.0 }
 0x62c   : > { %v4103_v32 = vpop.eup %4102  ;;  %v2727_v26 = vmul.f32 1.442695, %v2668_v21  ;;  %v2725_v30 = vmul.f32 1.442695, %v2667_v13 }
 0x62d   : > { %v5691_v11 = vpop.xlane.xlu1 %2603  ;;  %v5693_v7 = vpop.xlane.xlu0 %2601  ;;  %v2746_v48 = vsel %vm2544_vm1, %v4103_v32, 0.0 }
 0x62e   : > { %5937 = vst [vmem:[#allocation42_spill] sm:$0xff] %v5693_v7  ;;  %4114 = vpow2.f32 %v2727_v26  ;;  %v2654_v42 = vsub.f32 %v5523_v15, %v5691_v11  ;;  %v2653_v22 = vsub.f32 %v5527_v40, %v5693_v7  ;;  %v4105_v21 = vpop.eup %4104  ;;  %2787 = vadd.xlane.f32.xlu1 %v2746_v48  ;;  %2813 = vadd.xlane.f32.xlu0 %v2759_v23 }
 0x62f   : > { %4116 = vpow2.f32 %v2725_v30  ;;  %v2745_v48 = vsel %vm2544_vm1, %v4105_v21, 0.0 }
 0x630   : > { %v4107_v61 = vpop.eup %4106  ;;  %v2699_v13 = vmul.f32 1.442695, %v2654_v42  ;;  %v2697_v63 = vmul.f32 1.442695, %v2653_v22 }
 0x631   : > { %v5703_v35 = vpop.xlane.xlu1 %2635  ;;  %v5705_v32 = vpop.xlane.xlu0 %2633  ;;  %v2762_v26 = vsel %vm2544_vm1, %v4107_v61, 0.0 }
 0x632   : > { %5938 = vst [vmem:[#allocation43_spill] sm:$0xff] %v5705_v32  ;;  %4118 = vpow2.f32 %v2699_v13  ;;  %v2670_v40 = vsub.f32 %v5535_v3, %v5703_v35  ;;  %v2669_v24 = vsub.f32 %v5539_v20, %v5705_v32  ;;  %v4109_v42 = vpop.eup %4108  ;;  %2819 = vadd.xlane.f32.xlu1 %v2762_v26  ;;  %2785 = vadd.xlane.f32.xlu0 %v2745_v48 }
 0x633   : > { %4120 = vpow2.f32 %v2697_v63  ;;  %v2761_v26 = vsel %vm2544_vm1, %v4109_v42, 0.0 }
 0x634   : > { %v4111_v30 = vpop.eup %4110  ;;  %v2731_v22 = vmul.f32 1.442695, %v2670_v40  ;;  %v2729_v23 = vmul.f32 1.442695, %v2669_v24 }
 0x635   : > { %v5715_v7 = vpop.xlane.xlu1 %2607  ;;  %v5717_v61 = vpop.xlane.xlu0 %2605  ;;  %v2748_v13 = vsel %vm2544_vm1, %v4111_v30, 0.0 }
 0x636   : > { %4122 = vpow2.f32 %v2731_v22  ;;  %v2656_v20 = vsub.f32 %v5547_v38, %v5715_v7  ;;  %v2655_v21 = vsub.f32 %v5551_v39, %v5717_v61  ;;  %v4113_v40 = vpop.eup %4112  ;;  %2791 = vadd.xlane.f32.xlu1 %v2748_v13  ;;  %2817 = vadd.xlane.f32.xlu0 %v2761_v26 }
 0x637   : > { %4124 = vpow2.f32 %v2729_v23  ;;  %v2747_v13 = vsel %vm2544_vm1, %v4113_v40, 0.0 }
 0x638   : > { %v4115_v63 = vpop.eup %4114  ;;  %v2703_v24 = vmul.f32 1.442695, %v2656_v20  ;;  %v2701_v48 = vmul.f32 1.442695, %v2655_v21 }
 0x639   : > { %v5727_v32 = vpop.xlane.xlu1 %2639  ;;  %v5729_v30 = vpop.xlane.xlu0 %2637  ;;  %v2764_v22 = vsel %vm2544_vm1, %v4115_v63, 0.0 }
 0x63a   : > { %4126 = vpow2.f32 %v2703_v24  ;;  %v2672_v39 = vsub.f32 %v5557_v14, %v5727_v32  ;;  %v2671_v42 = vsub.f32 %v5561_v33, %v5729_v30  ;;  %v4117_v20 = vpop.eup %4116  ;;  %2823 = vadd.xlane.f32.xlu1 %v2764_v22  ;;  %2789 = vadd.xlane.f32.xlu0 %v2747_v13 }
 0x63b   : > { %4128 = vpow2.f32 %v2701_v48  ;;  %v2763_v24 = vsel %vm2544_vm1, %v4117_v20, 0.0 }
 0x63c   : > { %v4119_v23 = vpop.eup %4118  ;;  %v2735_v21 = vmul.f32 1.442695, %v2672_v39  ;;  %v2733_v26 = vmul.f32 1.442695, %v2671_v42 }
 0x63d   : > { %v2750_v63 = vsel %vm2544_vm1, %v4119_v23, 0.0  ;;  %v4121_v14 = vpop.eup %4120 }
 0x63e   : > { %4130 = vpow2.f32 %v2735_v21  ;;  %2795 = vadd.xlane.f32.xlu1 %v2750_v63  ;;  %2821 = vadd.xlane.f32.xlu0 %v2763_v24  ;;  %v2749_v39 = vsel %vm2544_vm1, %v4121_v14, 0.0 }
 0x63f   : > { %4132 = vpow2.f32 %v2733_v26 }
 0x640   : > { %v4123_v33 = vpop.eup %4122 }
 0x641   : > { %v2766_v40 = vsel %vm2544_vm1, %v4123_v33, 0.0  ;;  %v4125_v48 = vpop.eup %4124 }
 0x642   : > { %2827 = vadd.xlane.f32.xlu1 %v2766_v40  ;;  %2793 = vadd.xlane.f32.xlu0 %v2749_v39  ;;  %v2765_v13 = vsel %vm2544_vm1, %v4125_v48, 0.0 }
 0x644   : > { %v4127_v22 = vpop.eup %4126 }
 0x645   : > { %v2752_v42 = vsel %vm2544_vm1, %v4127_v22, 0.0  ;;  %v4129_v20 = vpop.eup %4128 }
 0x646   : > { %2799 = vadd.xlane.f32.xlu1 %v2752_v42  ;;  %2825 = vadd.xlane.f32.xlu0 %v2765_v13  ;;  %v2751_v14 = vsel %vm2544_vm1, %v4129_v20, 0.0 }
 0x648   : > { %v4131_v23 = vpop.eup %4130 }
 0x649   : > { %v2768_v33 = vsel %vm2544_vm1, %v4131_v23, 0.0  ;;  %v4133_v21 = vpop.eup %4132 }
 0x64a   : > { %2831 = vadd.xlane.f32.xlu1 %v2768_v33  ;;  %2797 = vadd.xlane.f32.xlu0 %v2751_v14  ;;  %v2767_v26 = vsel %vm2544_vm1, %v4133_v21, 0.0 }
 0x64e   : > { %2829 = vadd.xlane.f32.xlu0 %v2767_v26 }
 0x69b   : > { %v2772_v63 = vpop.xlane.xlu1 %2771 }
 0x69c   : > { %4134 = vlog2.f32 %v2772_v63 }
 0x69f   : > { %v2804_v24 = vpop.xlane.xlu1 %2803  ;;  %v2770_v40 = vpop.xlane.xlu0 %2769 }
 0x6a0   : > { %4136 = vlog2.f32 %v2804_v24 }
 0x6a1   : > { %4138 = vlog2.f32 %v2770_v40 }
 0x6a3   : > { %v2776_v39 = vpop.xlane.xlu1 %2775  ;;  %v2802_v48 = vpop.xlane.xlu0 %2801 }
 0x6a4   : > { %4140 = vlog2.f32 %v2776_v39 }
 0x6a5   : > { %4142 = vlog2.f32 %v2802_v48 }
 0x6a6   : > { %v4135_v22 = vpop.eup %4134 }
 0x6a7   : > { %v2836_v42 = vmul.f32 0.6931472, %v4135_v22  ;;  %v2808_v13 = vpop.xlane.xlu1 %2807  ;;  %v2774_v20 = vpop.xlane.xlu0 %2773 }
 0x6a8   : > { %4144 = vlog2.f32 %v2808_v13 }
 0x6a9   : > { %v2898_v23 = vadd.f32 %v2836_v42, %v5567_v31  ;;  %4146 = vlog2.f32 %v2774_v20 }
 0x6aa   : > { %v4137_v4 = vpop.eup %4136 }
 0x6ab   : > { %v4139_v33 = vpop.eup %4138  ;;  %v2930_v14 = vsub.f32 %v5382_v29, %v2898_v23  ;;  %v2868_v21 = vmul.f32 0.6931472, %v4137_v4  ;;  %v2780_v26 = vpop.xlane.xlu1 %2779 }
 0x6ac   : > { %v2806_v63 = vpop.xlane.xlu0 %2805  ;;  %v2834_v24 = vmul.f32 0.6931472, %v4139_v33  ;;  %4148 = vlog2.f32 %v2780_v26 }
 0x6ad   : > { %2962 = vst [vmem:[#allocation20 + $0x8] sm:$0xff] %v2930_v14  ;;  %v2914_v40 = vadd.f32 %v2868_v21, %v5565_v5  ;;  %4150 = vlog2.f32 %v2806_v63 }
 0x6ae   : > { %v4141_v39 = vpop.eup %4140  ;;  %v2897_v48 = vadd.f32 %v2834_v24, %v5575_v55 }
 0x6af   : > { %v4143_v22 = vpop.eup %4142  ;;  %v2946_v31 = vsub.f32 %v5378_v51, %v2914_v40  ;;  %v2840_v42 = vmul.f32 0.6931472, %v4141_v39  ;;  %v2812_v13 = vpop.xlane.xlu1 %2811 }
 0x6b0   : > { %v2778_v20 = vpop.xlane.xlu0 %2777  ;;  %v2929_v29 = vsub.f32 %v5395_v62, %v2897_v48  ;;  %v2866_v23 = vmul.f32 0.6931472, %v4143_v22  ;;  %4152 = vlog2.f32 %v2812_v13 }
 0x6b1   : > { %2978 = vst [vmem:[#allocation20 + $0x88] sm:$0xff] %v2946_v31  ;;  %v2900_v4 = vadd.f32 %v2840_v42, %v5573_v8  ;;  %4154 = vlog2.f32 %v2778_v20 }
 0x6b2   : > { %v4145_v33 = vpop.eup %4144  ;;  %2961 = vst [vmem:[#allocation20] sm:$0xff] %v2929_v29  ;;  %v2913_v5 = vadd.f32 %v2866_v23, %v5583_v54 }
 0x6b3   : > { %v4147_v14 = vpop.eup %4146  ;;  %v2932_v55 = vsub.f32 %v5391_v57, %v2900_v4  ;;  %v2872_v21 = vmul.f32 0.6931472, %v4145_v33  ;;  %v2784_v51 = vpop.xlane.xlu1 %2783 }
 0x6b4   : > { %v2810_v26 = vpop.xlane.xlu0 %2809  ;;  %v2945_v63 = vsub.f32 %v5407_v45, %v2913_v5  ;;  %v2838_v24 = vmul.f32 0.6931472, %v4147_v14  ;;  %4156 = vlog2.f32 %v2784_v51 }
 0x6b5   : > { %2964 = vst [vmem:[#allocation20 + $0x18] sm:$0xff] %v2932_v55  ;;  %v2916_v62 = vadd.f32 %v2872_v21, %v5581_v1  ;;  %4158 = vlog2.f32 %v2810_v26 }
 0x6b6   : > { %v4149_v8 = vpop.eup %4148  ;;  %2977 = vst [vmem:[#allocation20 + $0x80] sm:$0xff] %v2945_v63  ;;  %v2899_v40 = vadd.f32 %v2838_v24, %v5589_v49 }
 0x6b7   : > { %v4151_v39 = vpop.eup %4150  ;;  %v2948_v54 = vsub.f32 %v5401_v36, %v2916_v62  ;;  %v2844_v48 = vmul.f32 0.6931472, %v4149_v8  ;;  %v2816_v57 = vpop.xlane.xlu1 %2815 }
 0x6b8   : > { %v2782_v22 = vpop.xlane.xlu0 %2781  ;;  %v2931_v31 = vsub.f32 %v5415_v46, %v2899_v40  ;;  %v2870_v42 = vmul.f32 0.6931472, %v4151_v39  ;;  %4160 = vlog2.f32 %v2816_v57 }
 0x6b9   : > { %2980 = vst [vmem:[#allocation20 + $0x98] sm:$0xff] %v2948_v54  ;;  %v2902_v45 = vadd.f32 %v2844_v48, %v5597_v0  ;;  %4162 = vlog2.f32 %v2782_v22 }
 0x6ba   : > { %v4153_v1 = vpop.eup %4152  ;;  %2963 = vst [vmem:[#allocation20 + $0x10] sm:$0xff] %v2931_v31  ;;  %v2915_v13 = vadd.f32 %v2870_v42, %v5591_v50 }
 0x6bb   : > { %v4155_v20 = vpop.eup %4154  ;;  %v2934_v49 = vsub.f32 %v5427_v43, %v2902_v45  ;;  %v2876_v29 = vmul.f32 0.6931472, %v4153_v1  ;;  %v2788_v36 = vpop.xlane.xlu1 %2787 }
 0x6bc   : > { %v2814_v23 = vpop.xlane.xlu0 %2813  ;;  %v2947_v4 = vsub.f32 %v5419_v2, %v2915_v13  ;;  %v2842_v33 = vmul.f32 0.6931472, %v4155_v20  ;;  %4164 = vlog2.f32 %v2788_v36  ;;  %v5939_v36 = vld [vmem:[#allocation38_spill] sm:$0xff] }
 0x6bd   : > { %2966 = vst [vmem:[#allocation20 + $0x28] sm:$0xff] %v2934_v49  ;;  %v2918_v46 = vadd.f32 %v2876_v29, %v5607_v6  ;;  %4166 = vlog2.f32 %v2814_v23 }
 0x6be   : > { %v4157_v0 = vpop.eup %4156  ;;  %2979 = vst [vmem:[#allocation20 + $0x90] sm:$0xff] %v2947_v4  ;;  %v2901_v5 = vadd.f32 %v2842_v33, %v5599_v10 }
 0x6bf   : > { %v4159_v14 = vpop.eup %4158  ;;  %v2950_v50 = vsub.f32 %v5439_v27, %v2918_v46  ;;  %v2848_v55 = vmul.f32 0.6931472, %v4157_v0  ;;  %v2820_v43 = vpop.xlane.xlu1 %2819  ;;  %v5940_v0 = vld [vmem:[#allocation29_spill] sm:$0xff] }
 0x6c0   : > { %v2786_v21 = vpop.xlane.xlu0 %2785  ;;  %v2933_v51 = vsub.f32 %v5431_v44, %v2901_v5  ;;  %v2874_v26 = vmul.f32 0.6931472, %v4159_v14  ;;  %4168 = vlog2.f32 %v2820_v43 }
 0x6c1   : > { %2982 = vst [vmem:[#allocation20 + $0xa8] sm:$0xff] %v2950_v50  ;;  %v2904_v2 = vadd.f32 %v2848_v55, %v5619_v34  ;;  %4170 = vlog2.f32 %v2786_v21  ;;  %v5941_v50 = vld [vmem:[#allocation39_spill] sm:$0xff] }
 0x6c2   : > { %v4161_v6 = vpop.eup %4160  ;;  %2965 = vst [vmem:[#allocation20 + $0x20] sm:$0xff] %v2933_v51  ;;  %v2917_v63 = vadd.f32 %v2874_v26, %v5609_v9 }
 0x6c3   : > { %v4163_v24 = vpop.eup %4162  ;;  %v2936_v10 = vsub.f32 %v5451_v60, %v2904_v2  ;;  %v2880_v62 = vmul.f32 0.6931472, %v4161_v6  ;;  %v2792_v27 = vpop.xlane.xlu1 %2791  ;;  %v5942_v2 = vld [vmem:[#allocation30_spill] sm:$0xff] }
 0x6c4   : > { %v2818_v8 = vpop.xlane.xlu0 %2817  ;;  %v2949_v40 = vsub.f32 %v5443_v28, %v2917_v63  ;;  %v2846_v39 = vmul.f32 0.6931472, %v4163_v24  ;;  %4172 = vlog2.f32 %v2792_v27 }
 0x6c5   : > { %2968 = vst [vmem:[#allocation20 + $0x38] sm:$0xff] %v2936_v10  ;;  %v2920_v44 = vadd.f32 %v2880_v62, %v5631_v12  ;;  %4174 = vlog2.f32 %v2818_v8  ;;  %v5943_v10 = vld [vmem:[#allocation40_spill] sm:$0xff] }
 0x6c6   : > { %v4165_v34 = vpop.eup %4164  ;;  %2981 = vst [vmem:[#allocation20 + $0xa0] sm:$0xff] %v2949_v40  ;;  %v2903_v54 = vadd.f32 %v2846_v39, %v5621_v58 }
 0x6c7   : > { %v4167_v48 = vpop.eup %4166  ;;  %v2952_v9 = vsub.f32 %v5463_v17, %v2920_v44  ;;  %v2852_v57 = vmul.f32 0.6931472, %v4165_v34  ;;  %v2824_v60 = vpop.xlane.xlu1 %2823  ;;  %v5944_v44 = vld [vmem:[#allocation31_spill] sm:$0xff] }
 0x6c8   : > { %v2790_v22 = vpop.xlane.xlu0 %2789  ;;  %v2935_v31 = vsub.f32 %v5455_v41, %v2903_v54  ;;  %v2878_v42 = vmul.f32 0.6931472, %v4167_v48  ;;  %4176 = vlog2.f32 %v2824_v60 }
 0x6c9   : > { %2984 = vst [vmem:[#allocation20 + $0xb8] sm:$0xff] %v2952_v9  ;;  %v2906_v28 = vadd.f32 %v2852_v57, %v5643_v56  ;;  %4178 = vlog2.f32 %v2790_v22  ;;  %v5945_v9 = vld [vmem:[#allocation41_spill] sm:$0xff] }
 0x6ca   : > { %v4169_v12 = vpop.eup %4168  ;;  %2967 = vst [vmem:[#allocation20 + $0x30] sm:$0xff] %v2935_v31  ;;  %v2919_v45 = vadd.f32 %v2878_v42, %v5633_v52  ;;  %v5946_v42 = vld [vmem:[#allocation32_spill] sm:$0xff] }
 0x6cb   : > { %v4171_v1 = vpop.eup %4170  ;;  %v2938_v58 = vsub.f32 %v5475_v25, %v2906_v28  ;;  %v2884_v13 = vmul.f32 0.6931472, %v4169_v12  ;;  %v2796_v17 = vpop.xlane.xlu1 %2795 }
 0x6cc   : > { %v2822_v20 = vpop.xlane.xlu0 %2821  ;;  %v2951_v49 = vsub.f32 %v5467_v16, %v2919_v45  ;;  %v2850_v29 = vmul.f32 0.6931472, %v4171_v1  ;;  %4180 = vlog2.f32 %v2796_v17 }
 0x6cd   : > { %2970 = vst [vmem:[#allocation20 + $0x48] sm:$0xff] %v2938_v58  ;;  %v2922_v41 = vadd.f32 %v2884_v13, %v5655_v53  ;;  %4182 = vlog2.f32 %v2822_v20 }
 0x6ce   : > { %v4173_v56 = vpop.eup %4172  ;;  %2983 = vst [vmem:[#allocation20 + $0xb0] sm:$0xff] %v2951_v49  ;;  %v2905_v23 = vadd.f32 %v2850_v29, %v5939_v36  ;;  %v5948_v49 = vld [vmem:[#allocation33_spill] sm:$0xff]  ;;  %v5949_v36 = vld [vmem:[#allocation43_spill] sm:$0xff] }
 0x6cf   : > { %v4175_v4 = vpop.eup %4174  ;;  %v2954_v52 = vsub.f32 %v5487_v47, %v2922_v41  ;;  %v2856_v33 = vmul.f32 0.6931472, %v4173_v56  ;;  %v2828_v25 = vpop.xlane.xlu1 %2827 }
 0x6d0   : > { %v2794_v46 = vpop.xlane.xlu0 %2793  ;;  %v2937_v5 = vsub.f32 %v5940_v0, %v2905_v23  ;;  %v2882_v14 = vmul.f32 0.6931472, %v4175_v4  ;;  %4184 = vlog2.f32 %v2828_v25 }
 0x6d1   : > { %2986 = vst [vmem:[#allocation20 + $0xc8] sm:$0xff] %v2954_v52  ;;  %v2908_v16 = vadd.f32 %v2856_v33, %v5667_v59  ;;  %4186 = vlog2.f32 %v2794_v46  ;;  %v5950_v33 = vld [vmem:[#allocation34_spill] sm:$0xff] }
 0x6d2   : > { %v4177_v53 = vpop.eup %4176  ;;  %2969 = vst [vmem:[#allocation20 + $0x40] sm:$0xff] %v2937_v5  ;;  %v2921_v55 = vadd.f32 %v2882_v14, %v5941_v50  ;;  %v5951_v14 = vld [vmem:[#allocation36_spill] sm:$0xff] }
 0x6d3   : > { %v4179_v43 = vpop.eup %4178  ;;  %v2940_v21 = vsub.f32 %v5499_v18, %v2908_v16  ;;  %v2888_v51 = vmul.f32 0.6931472, %v4177_v53  ;;  %v2800_v47 = vpop.xlane.xlu1 %2799  ;;  %v5952_v53 = vld [vmem:[#allocation35_spill] sm:$0xff] }
 0x6d4   : > { %v2826_v26 = vpop.xlane.xlu0 %2825  ;;  %v2953_v6 = vsub.f32 %v5942_v2, %v2921_v55  ;;  %v2854_v63 = vmul.f32 0.6931472, %v4179_v43  ;;  %4188 = vlog2.f32 %v2800_v47 }
 0x6d5   : > { %2972 = vst [vmem:[#allocation20 + $0x58] sm:$0xff] %v2940_v21  ;;  %v2924_v24 = vadd.f32 %v2888_v51, %v5679_v19  ;;  %4190 = vlog2.f32 %v2826_v26 }
 0x6d6   : > { %v4181_v59 = vpop.eup %4180  ;;  %2985 = vst [vmem:[#allocation20 + $0xc0] sm:$0xff] %v2953_v6  ;;  %v2907_v62 = vadd.f32 %v2854_v63, %v5943_v10 }
 0x6d7   : > { %v4183_v27 = vpop.eup %4182  ;;  %v2956_v8 = vsub.f32 %v5511_v37, %v2924_v24  ;;  %v2860_v40 = vmul.f32 0.6931472, %v4181_v59  ;;  %v2832_v18 = vpop.xlane.xlu1 %2831 }
 0x6d8   : > { %v2798_v39 = vpop.xlane.xlu0 %2797  ;;  %v2939_v34 = vsub.f32 %v5944_v44, %v2907_v62  ;;  %v2886_v54 = vmul.f32 0.6931472, %v4183_v27  ;;  %4192 = vlog2.f32 %v2832_v18 }
 0x6d9   : > { %2988 = vst [vmem:[#allocation20 + $0xd8] sm:$0xff] %v2956_v8  ;;  %v2910_v48 = vadd.f32 %v2860_v40, %v5691_v11  ;;  %4194 = vlog2.f32 %v2798_v39  ;;  %v5947_v11 = vld [vmem:[#allocation42_spill] sm:$0xff] }
 0x6da   : > { %v4185_v19 = vpop.eup %4184  ;;  %2971 = vst [vmem:[#allocation20 + $0x50] sm:$0xff] %v2939_v34  ;;  %v2923_v57 = vadd.f32 %v2886_v54, %v5945_v9 }
 0x6db   : > { %v4187_v60 = vpop.eup %4186  ;;  %v2942_v22 = vsub.f32 %v5523_v15, %v2910_v48  ;;  %v2892_v31 = vmul.f32 0.6931472, %v4185_v19 }
 0x6dc   : > { %v2830_v37 = vpop.xlane.xlu0 %2829  ;;  %v2955_v28 = vsub.f32 %v5946_v42, %v2923_v57  ;;  %v2858_v12 = vmul.f32 0.6931472, %v4187_v60 }
 0x6dd   : > { %4196 = vlog2.f32 %v2830_v37  ;;  %2974 = vst [vmem:[#allocation20 + $0x68] sm:$0xff] %v2942_v22  ;;  %v2926_v45 = vadd.f32 %v2892_v31, %v5703_v35 }
 0x6de   : > { %v4189_v1 = vpop.eup %4188  ;;  %2987 = vst [vmem:[#allocation20 + $0xd0] sm:$0xff] %v2955_v28  ;;  %v2909_v58 = vadd.f32 %v2858_v12, %v5947_v11 }
 0x6df   : > { %v4191_v13 = vpop.eup %4190  ;;  %v2958_v17 = vsub.f32 %v5535_v3, %v2926_v45  ;;  %v2864_v20 = vmul.f32 0.6931472, %v4189_v1 }
 0x6e0   : > { %v2941_v29 = vsub.f32 %v5948_v49, %v2909_v58  ;;  %v2890_v15 = vmul.f32 0.6931472, %v4191_v13 }
 0x6e1   : > { %2990 = vst [vmem:[#allocation20 + $0xe8] sm:$0xff] %v2958_v17  ;;  %v2912_v41 = vadd.f32 %v2864_v20, %v5715_v7 }
 0x6e2   : > { %v4193_v56 = vpop.eup %4192  ;;  %2973 = vst [vmem:[#allocation20 + $0x60] sm:$0xff] %v2941_v29  ;;  %v2925_v23 = vadd.f32 %v2890_v15, %v5949_v36 }
 0x6e3   : > { %v4195_v4 = vpop.eup %4194  ;;  %v2944_v35 = vsub.f32 %v5547_v38, %v2912_v41  ;;  %v2896_v52 = vmul.f32 0.6931472, %v4193_v56  ;;  %v5953_v38 = vld [vmem:[#allocation37_spill] sm:$0xff] }
 0x6e4   : > { %v2957_v25 = vsub.f32 %v5950_v33, %v2925_v23  ;;  %v2862_v46 = vmul.f32 0.6931472, %v4195_v4 }
 0x6e5   : > { %2976 = vst [vmem:[#allocation20 + $0x78] sm:$0xff] %v2944_v35  ;;  %v2928_v3 = vadd.f32 %v2896_v52, %v5727_v32 }
 0x6e6   : > { %2989 = vst [vmem:[#allocation20 + $0xe0] sm:$0xff] %v2957_v25  ;;  %v2911_v5 = vadd.f32 %v2862_v46, %v5717_v61 }
 0x6e7   : > { %v4197_v0 = vpop.eup %4196  ;;  %v2960_v7 = vsub.f32 %v5951_v14, %v2928_v3 }
 0x6e8   : > { %v2894_v16 = vmul.f32 0.6931472, %v4197_v0  ;;  %v2943_v50 = vsub.f32 %v5952_v53, %v2911_v5 }
 0x6e9   : > { %2992 = vst [vmem:[#allocation20 + $0xf8] sm:$0xff] %v2960_v7 }
 0x6ea   : > { %v2927_v55 = vadd.f32 %v2894_v16, %v5729_v30  ;;  %2975 = vst [vmem:[#allocation20 + $0x70] sm:$0xff] %v2943_v50 }
 0x6ec   : > { %v2959_v43 = vsub.f32 %v5953_v38, %v2927_v55 }
 0x6ee   : > { %2991 = vst [vmem:[#allocation20 + $0xf0] sm:$0xff] %v2959_v43 }
 0x6ef PF: > { %p3960_p8 = scmp.eq.s32.totalorder %s4573_s21, 4  ;;  %s4484_s0 = smov [#allocation20]  }
 0x6f0   : > { %s3002_s9 = sshll.u32 %s4484_s0, 4  ;;  %s3003_s9 = int_to_ptr.vmem [resolvable:$true] %s3002_s9 }
 0x6f1   : > { %s4368_s28 = scalar_lea.vmem %s3003_s9, 4096  ;;  %p4375_p5 = scmp.lt.s32.totalorder %s3003_s9, %s3003_s9 }
 0x6f2   : > { %p4369_p4 = scmp.ne.s32.totalorder %s3003_s9, %s4368_s28  ;;  %p4376_p11 = scmp.lt.s32.totalorder %s4368_s28, %s4368_s28 }
 0x6f4   : > { %p4370_p10 = pnand %p4369_p4, %p3960_p8  ;;  %p4377_p12 = por %p4376_p11, %p4375_p5 }
 0x6f6   : > { %p4371_p1 = pneg %p4370_p10 }
 0x6f8   : > { %p4378_p13 = pnand %p4377_p12, %p4371_p1 }
 0x6fa   : > { %4381 = shalt.err (!%p4378_p13)
}
 0x6fb   : > { %s5954_s12 = sld [smem:[#allocation47_spill]] }
 0x701   : > { %s4382_s10 = scalar_lea.hbm %s5954_s12, 4096 }
 0x702   : > { %p4383_p6 = scmp.ne.s32.totalorder %s5954_s12, %s4382_s10  ;;  %p4388_p0 = scmp.lt.u32.totalorder %s4382_s10, %s5954_s12 }
 0x704   : > { %p4384_p9 = pnand %p4383_p6, %p3960_p8 }
 0x706   : > { %p4385_p7 = pneg %p4384_p9 }
 0x708   : > { %p4390_p2 = pnand %p4388_p0, %p4385_p7 }
 0x70a   : > { %4393 = shalt.err (!%p4390_p2)
}
 0x70b   : > { %s4485_s22 = smov 128   ;;  %s4486_s26 = smov 8  }
 0x70c   : > { %3921 = dma.vmem_to_hbm [thread:$0]  (%p3960_p8), %s3003_s9, 4096, %s5954_s12, [#allocation9], %s4485_s22, %s4485_s22, %s4486_s26  }
 0x70d   : > { %4447 = dma.done.wait (%p3960_p8), [#allocation9], 4096  }
 0x70e   : > { %4449 = vsyncadd (%p3960_p8), [#allocation9], 4294963200 }
 0x70f PF: > { %s32_s18 = sadd.s32 1, %s4472_s18   ;;  %s5955_s13 = smov %s4456_s14 }
 0x710   : > { %p29_p3 = scmp.ge.s32.totalorder %s32_s18, 7   ;;  %s5956_s14 = smov %s4460_s15 }
 0x711   : > { %s5957_s15 = smov %s4803_s23  ;;  %s5958_s16 = smov %s4468_s17 }
 0x712   : > { %s5959_s17 = smov %s5961_s29  ;;  %31 = sbr.rel (!%p29_p3) target bundleno = 16 (0x10), region = 166 }
 0x719   :  { %3018 = vsyncpa [#allocation8], 1 }
 0x71a   :  { %3020 = vsyncpa [#allocation8 + $0x1], 1 }
 0x71b   :  { %3021 = vsyncpa [#allocation15], 1 }
 0x71c   :  { %3023 = vsyncpa [#allocation15 + $0x1], 1 }
 0x71d   :  { %3024 = vsyncpa [#allocation18], 1 }
 0x71e   :  { %3026 = vsyncpa [#allocation18 + $0x1], 1 }
 0x71f   :  { %3027 = vsyncpa [#allocation9], 1 }
 0x720   :  { %3029 = vsyncpa [#allocation9 + $0x1], 1 }
 0x721   :  { %3030 = vsyncpa [#allocation10], 1 }
 0x722   :  { %3032 = vsyncpa [#allocation10 + $0x1], 1 }
 0x723   :  { %3033 = vsyncpa [#allocation11], 1 }
 0x724   :  { %3035 = vsyncpa [#allocation11 + $0x1], 1 }

</bundles_post_ra>
